<compile_context>
chip_gen: v7x
topology: tpu7x:2x2x1
jax: 0.10.0
libtpu: 0.0.40
codegen_flags: <defaults>
</compile_context>

<pallas_src>
import jax
import jax.numpy as jnp
from jax.experimental import pallas as pl
from jax.experimental.pallas import tpu as pltpu

IN, H1, H2 = 512 * 4, 1024, 512


def parity_mlp_kernel(x_ref, w1_ref, b1_ref, w2_ref, b2_ref, w3_ref, b3_ref, o_ref):
    # x: (B, 2048) f32; w1/w2 bf16 in (in, out) layout; w3 bf16 (1, 512) row; biases f32.
    x = x_ref[...]
    # bf16 x bf16 MXU matmuls with f32 accumulation; intermediates stay f32.
    h1 = jnp.dot(x.astype(jnp.bfloat16), w1_ref[...],
                 preferred_element_type=jnp.float32) + b1_ref[...]
    h1 = jnp.maximum(h1, 0.0)                                           # (B, 1024) f32
    h2 = jnp.dot(h1.astype(jnp.bfloat16), w2_ref[...],
                 preferred_element_type=jnp.float32) + b2_ref[...]
    h2 = jnp.maximum(h2, 0.0)                                           # (B, 512) f32
    # Final N=1 layer as VPU multiply + XLU lane-reduce (skips an MXU pass).
    w3_row = w3_ref[...].astype(jnp.float32)                            # (1, 512)
    out = jnp.sum(h2 * w3_row, axis=-1, keepdims=True) + b3_ref[...]    # (B, 1)
    o_ref[...] = out.astype(o_ref.dtype)


def prepare_params(params):
    """One-time conversion: PyTorch (out,in) weights -> kernel (in,out) bf16 layout."""
    return {
        "w1": params["w1"].T.astype(jnp.bfloat16),               # (2048, 1024)
        "b1": params["b1"].reshape(1, -1).astype(jnp.float32),   # (1, 1024)
        "w2": params["w2"].T.astype(jnp.bfloat16),               # (1024, 512)
        "b2": params["b2"].reshape(1, -1).astype(jnp.float32),   # (1, 512)
        "w3": params["w3"].reshape(1, -1).astype(jnp.bfloat16),  # (1, 512) row
        "b3": params["b3"].reshape(1, -1).astype(jnp.float32),   # (1, 1)
    }


def parity_net_forward(x, kp):
    """x: (B, 2048) f32. kp: output of prepare_params() (no per-call transposes)."""
    B = x.shape[0]
    weight_bytes = 2 * (IN * H1 + H1 * H2 + H2)        # bf16 weights
    bias_bytes = 4 * (H1 + H2 + 1)                     # f32 biases
    act_bytes = 4 * (B * IN + B)                       # f32 input + output
    cost = pl.CostEstimate(
        flops=2 * B * (IN * H1 + H1 * H2 + H2),
        transcendentals=0,
        bytes_accessed=weight_bytes + bias_bytes + act_bytes,
    )
    vmem_spec = pl.BlockSpec(memory_space=pltpu.MemorySpace.VMEM)
    return pl.pallas_call(
        parity_mlp_kernel,
        out_shape=jax.ShapeDtypeStruct((B, 1), jnp.float32),
        in_specs=[vmem_spec] * 7,
        out_specs=vmem_spec,
        cost_estimate=cost,
    )(x, kp["w1"], kp["b1"], kp["w2"], kp["b2"], kp["w3"], kp["b3"])


def init_params(key, input_size=IN):
    # Deterministic synthetic init (PyTorch Linear layout: weight (out, in), bias (out,)).
    ks = jax.random.split(key, 6)

    def lin(kw, kb, fan_in, fan_out):
        bound = 1.0 / (fan_in ** 0.5)
        w = jax.random.uniform(kw, (fan_out, fan_in), jnp.float32, -bound, bound)
        b = jax.random.uniform(kb, (fan_out,), jnp.float32, -bound, bound)
        return w, b

    w1, b1 = lin(ks[0], ks[1], input_size, H1)
    w2, b2 = lin(ks[2], ks[3], H1, H2)
    w3, b3 = lin(ks[4], ks[5], H2, 1)
    return {"w1": w1, "b1": b1, "w2": w2, "b2": b2, "w3": w3, "b3": b3}


if __name__ == "__main__":
    key = jax.random.PRNGKey(0)
    k_x, k_p = jax.random.split(key)

    batch = 8
    x = jax.random.normal(k_x, (batch, IN), dtype=jnp.float32)
    params = init_params(k_p, IN)
    kp = prepare_params(params)   # one-time layout/dtype conversion

    out = parity_net_forward(x, kp)
    out = jax.block_until_ready(out)
    assert out.shape == (batch, 1)

    # Precision-matched reference: bf16-rounded weights/MXU inputs, f32 accumulation.
    w1 = kp["w1"].astype(jnp.float32)
    w2 = kp["w2"].astype(jnp.float32)
    w3 = kp["w3"].astype(jnp.float32)
    xb = x.astype(jnp.bfloat16).astype(jnp.float32)
    h1 = jnp.maximum(xb @ w1 + kp["b1"], 0.0)
    h1b = h1.astype(jnp.bfloat16).astype(jnp.float32)
    h2 = jnp.maximum(h1b @ w2 + kp["b2"], 0.0)
    ref_bf16 = jnp.sum(h2 * w3, axis=-1, keepdims=True) + kp["b3"]
    assert jnp.allclose(out, ref_bf16, atol=5e-3, rtol=5e-3), "mismatch vs bf16-matched reference"

    # Loose sanity check vs full-f32 PyTorch-equivalent forward (bf16 weights -> wider tol).
    h1f = jnp.maximum(x @ params["w1"].T + params["b1"], 0.0)
    h2f = jnp.maximum(h1f @ params["w2"].T + params["b2"], 0.0)
    ref_f32 = h2f @ params["w3"].T + params["b3"]
    assert jnp.allclose(out, ref_f32, atol=5e-2, rtol=5e-2), "mismatch vs f32 reference"

    print("KERNEL_OK")
</pallas_src>

<mosaic_0001>
module attributes {stable_mosaic.version = 11 : i64} {
  func.func @parity_mlp_kernel(%arg0: memref<8x2048xf32, #tpu.memory_space<vmem>>, %arg1: memref<2048x1024xbf16, #tpu.memory_space<vmem>>, %arg2: memref<1x1024xf32, #tpu.memory_space<vmem>>, %arg3: memref<1024x512xbf16, #tpu.memory_space<vmem>>, %arg4: memref<1x512xf32, #tpu.memory_space<vmem>>, %arg5: memref<1x512xbf16, #tpu.memory_space<vmem>>, %arg6: memref<1x1xf32, #tpu.memory_space<vmem>>, %arg7: memref<8x1xf32, #tpu.memory_space<vmem>>) attributes {dimension_semantics = [], scalar_prefetch = 0 : i64, scratch_operands = 0 : i64, tpu.core_type = #tpu.core_type<tc>} {
    %c0 = arith.constant 0 : index
    %c0_0 = arith.constant 0 : index
    %0 = vector.load %arg0[%c0, %c0_0] : memref<8x2048xf32, #tpu.memory_space<vmem>>, vector<8x2048xf32>
    %1 = arith.truncf %0 : vector<8x2048xf32> to vector<8x2048xbf16>
    %c0_1 = arith.constant 0 : index
    %c0_2 = arith.constant 0 : index
    %2 = vector.load %arg1[%c0_1, %c0_2] : memref<2048x1024xbf16, #tpu.memory_space<vmem>>, vector<2048x1024xbf16>
    %cst = arith.constant dense<0.000000e+00> : vector<8x1024xf32>
    %3 = tpu.matmul %1, %2, %cst {dimension_numbers = #tpu.dot_dimension_numbers<[1], [0], [0], [1], [0, 0, 1, 1], [], []>} : vector<8x2048xbf16>, vector<2048x1024xbf16>, vector<8x1024xf32> -> vector<8x1024xf32>
    %c0_3 = arith.constant 0 : index
    %c0_4 = arith.constant 0 : index
    %4 = vector.load %arg2[%c0_3, %c0_4] : memref<1x1024xf32, #tpu.memory_space<vmem>>, vector<1x1024xf32>
    %5 = vector.broadcast %4 : vector<1x1024xf32> to vector<8x1024xf32>
    %6 = arith.addf %3, %5 : vector<8x1024xf32>
    %cst_5 = arith.constant 0.000000e+00 : f32
    %7 = vector.broadcast %cst_5 : f32 to vector<8x1024xf32>
    %8 = arith.maximumf %6, %7 : vector<8x1024xf32>
    %9 = arith.truncf %8 : vector<8x1024xf32> to vector<8x1024xbf16>
    %c0_6 = arith.constant 0 : index
    %c0_7 = arith.constant 0 : index
    %10 = vector.load %arg3[%c0_6, %c0_7] : memref<1024x512xbf16, #tpu.memory_space<vmem>>, vector<1024x512xbf16>
    %cst_8 = arith.constant dense<0.000000e+00> : vector<8x512xf32>
    %11 = tpu.matmul %9, %10, %cst_8 {dimension_numbers = #tpu.dot_dimension_numbers<[1], [0], [0], [1], [0, 0, 1, 1], [], []>} : vector<8x1024xbf16>, vector<1024x512xbf16>, vector<8x512xf32> -> vector<8x512xf32>
    %c0_9 = arith.constant 0 : index
    %c0_10 = arith.constant 0 : index
    %12 = vector.load %arg4[%c0_9, %c0_10] : memref<1x512xf32, #tpu.memory_space<vmem>>, vector<1x512xf32>
    %13 = vector.broadcast %12 : vector<1x512xf32> to vector<8x512xf32>
    %14 = arith.addf %11, %13 : vector<8x512xf32>
    %cst_11 = arith.constant 0.000000e+00 : f32
    %15 = vector.broadcast %cst_11 : f32 to vector<8x512xf32>
    %16 = arith.maximumf %14, %15 : vector<8x512xf32>
    %c0_12 = arith.constant 0 : index
    %c0_13 = arith.constant 0 : index
    %17 = vector.load %arg5[%c0_12, %c0_13] : memref<1x512xbf16, #tpu.memory_space<vmem>>, vector<1x512xbf16>
    %18 = arith.extf %17 : vector<1x512xbf16> to vector<1x512xf32>
    %19 = vector.broadcast %18 : vector<1x512xf32> to vector<8x512xf32>
    %20 = arith.mulf %16, %19 : vector<8x512xf32>
    %cst_14 = arith.constant dense<0.000000e+00> : vector<8xf32>
    %21 = vector.multi_reduction <add>, %20, %cst_14 [1] : vector<8x512xf32> to vector<8xf32>
    %22 = vector.shape_cast %21 : vector<8xf32> to vector<8x1xf32>
    %c0_15 = arith.constant 0 : index
    %c0_16 = arith.constant 0 : index
    %23 = vector.load %arg6[%c0_15, %c0_16] : memref<1x1xf32, #tpu.memory_space<vmem>>, vector<1x1xf32>
    %24 = vector.broadcast %23 : vector<1x1xf32> to vector<8x1xf32>
    %25 = arith.addf %22, %24 : vector<8x1xf32>
    %c0_17 = arith.constant 0 : index
    %c0_18 = arith.constant 0 : index
    %26 = vector.load %arg7[%c0_17, %c0_18] : memref<8x1xf32, #tpu.memory_space<vmem>>, vector<8x1xf32>
    tpu.vector_store %arg7[%c0_17, %c0_18], %25 {strides = array<i32>} : memref<8x1xf32, #tpu.memory_space<vmem>>, vector<8x1xf32>,
    return
  }
}

</mosaic_0001>

<bundles_post_ra>
// kernel: tpu_custom_call.1
= control target key start
LH: loop header
LB: loop body
LE: loop exit
PB: predicated region body
PF: predicated region fallthrough
CT: control target
= control target key end

     0   :  { %s11852_s0 = inlined_call_operand.hbm [shape: f32[8,2048], index: 0, kind: input, shape index: {}]   ;;  %s11853_s1 = inlined_call_operand.hbm [shape: bf16[2048,1024], index: 1, kind: input, shape index: {}]   ;;  %s11854_s2 = inlined_call_operand.hbm [shape: f32[1,1024], index: 2, kind: input, shape index: {}]   ;;  %s11855_s3 = inlined_call_operand.hbm [shape: bf16[1024,512], index: 3, kind: input, shape index: {}]   ;;  %s11856_s4 = inlined_call_operand.hbm [shape: f32[1,512], index: 4, kind: input, shape index: {}]   ;;  %s11857_s5 = inlined_call_operand.hbm [shape: bf16[1,512], index: 5, kind: input, shape index: {}]   ;;  %s11858_s6 = inlined_call_operand.<no memory space> [shape: f32[1,1], index: 6, kind: input, shape index: {}]   ;;  %s11859_s7 = inlined_call_operand.vmem [shape: f32[8,1], index: 7, kind: output, shape index: {}]  }
   0x1   :  { %v12_v0 = vstv %s11858_s6 }
   0x2   :  { %13 = vst [vmem:[#allocation2] sm:$0x1] %v12_v0 }
   0x3   :  { %14 = vsyncpa [#allocation4], 0 }
   0x4   :  { %15 = vsyncpa [#allocation6], 0 }
   0x5   :  { %16 = vsyncpa [#allocation9], 0 }
   0x6   :  { %17 = vsyncpa [#allocation12], 0  ;;  %s11568_s26 = smov [#allocation5]   ;;  %s11428_s30 = scalar_lea.hbm %s11853_s1, 131072 }
   0x7   :  { %s33_s27 = sshll.u32 %s11568_s26, 4  ;;  %p11429_p0 = scmp.ne.s32.totalorder %s11853_s1, %s11428_s30  ;;  %s34_s27 = int_to_ptr.vmem [resolvable:$true] %s33_s27 }
   0x8   :  { %p11432_p1 = scmp.lt.u32.totalorder %s11428_s30, %s11853_s1 }
   0xa   :  { %p11434_p2 = pnand %p11432_p1, %p11429_p0 }
   0xc   :  { %11437 = shalt.err (!%p11434_p2)
}
   0xd   :  { %s11438_s6 = scalar_lea.vmem %s34_s27, 131072  ;;  %p11443_p4 = scmp.lt.s32.totalorder %s34_s27, %s34_s27 }
   0xe   :  { %p11439_p3 = scmp.ne.s32.totalorder %s34_s27, %s11438_s6  ;;  %p11444_p5 = scmp.lt.s32.totalorder %s11438_s6, %s11438_s6 }
  0x10   :  { %p11445_p6 = por %p11444_p5, %p11443_p4 }
  0x12   :  { %p11446_p7 = pnand %p11445_p6, %p11439_p3 }
  0x14   :  { %11449 = shalt.err (!%p11446_p7)
}
  0x15   :  { %s11569_s12 = smov 512   ;;  %s11570_s13 = smov 32  }
  0x16   :  { %39 = dma.hbm_to_vmem [thread:$0]  %s11853_s1, 131072, %s34_s27, [#allocation6], %s11569_s12, %s11569_s12, %s11570_s13  }
  0x17   :  { %s11571_s16 = smov [#allocation8]   ;;  %s11450_s20 = scalar_lea.hbm %s11855_s3, 32768 }
  0x18   :  { %s55_s17 = sshll.u32 %s11571_s16, 4  ;;  %p11451_p8 = scmp.ne.s32.totalorder %s11855_s3, %s11450_s20  ;;  %s56_s17 = int_to_ptr.vmem [resolvable:$true] %s55_s17 }
  0x19   :  { %p11454_p9 = scmp.lt.u32.totalorder %s11450_s20, %s11855_s3 }
  0x1b   :  { %p11456_p10 = pnand %p11454_p9, %p11451_p8 }
  0x1d   :  { %11459 = shalt.err (!%p11456_p10)
}
  0x1e   :  { %s11460_s25 = scalar_lea.vmem %s56_s17, 32768  ;;  %p11465_p12 = scmp.lt.s32.totalorder %s56_s17, %s56_s17 }
  0x1f   :  { %p11461_p11 = scmp.ne.s32.totalorder %s56_s17, %s11460_s25  ;;  %p11466_p13 = scmp.lt.s32.totalorder %s11460_s25, %s11460_s25 }
  0x21   :  { %p11467_p0 = por %p11466_p13, %p11465_p12 }
  0x23   :  { %p11468_p1 = pnand %p11467_p0, %p11461_p11 }
  0x25   :  { %11471 = shalt.err (!%p11468_p1)
}
  0x26   :  { %s11572_s1 = smov 256   ;;  %s11573_s26 = smov 16  }
  0x27   :  { %61 = dma.hbm_to_vmem [thread:$0]  %s11855_s3, 32768, %s56_s17, [#allocation9], %s11572_s1, %s11572_s1, %s11573_s26  }
  0x28   :  { %s11574_s29 = smov [#allocation3]   ;;  %s11575_s8 = smov [#allocation7]  }
  0x29   :  { %s24_s30 = sshll.u32 %s11574_s29, 4  ;;  %s46_s9 = sshll.u32 %s11575_s8, 4  ;;  %s25_s30 = int_to_ptr.vmem [resolvable:$true] %s24_s30  ;;  %s47_s9 = int_to_ptr.vmem [resolvable:$true] %s46_s9 }
  0x2a   :  { %s11472_s6 = scalar_lea.hbm %s11852_s0, 2048 }
  0x2b   :  { %p11473_p2 = scmp.ne.s32.totalorder %s11852_s0, %s11472_s6  ;;  %p11476_p3 = scmp.lt.u32.totalorder %s11472_s6, %s11852_s0 }
  0x2d   :  { %p11478_p4 = pnand %p11476_p3, %p11473_p2 }
  0x2f   :  { %11481 = shalt.err (!%p11478_p4)
}
  0x30   :  { %s11482_s3 = scalar_lea.vmem %s25_s30, 2048  ;;  %p11487_p6 = scmp.lt.s32.totalorder %s25_s30, %s25_s30 }
  0x31   :  { %p11483_p5 = scmp.ne.s32.totalorder %s25_s30, %s11482_s3  ;;  %p11488_p7 = scmp.lt.s32.totalorder %s11482_s3, %s11482_s3 }
  0x33   :  { %p11489_p8 = por %p11488_p7, %p11487_p6 }
  0x35   :  { %p11490_p9 = pnand %p11489_p8, %p11483_p5 }
  0x37   :  { %11493 = shalt.err (!%p11490_p9)
}
  0x38   :  { %27 = dma.hbm_to_vmem [thread:$0]  %s11852_s0, 2048, %s25_s30, [#allocation4]  }
  0x39   :  { %s11494_s20 = scalar_lea.hbm %s11854_s2, 128 }
  0x3a   :  { %p11495_p10 = scmp.ne.s32.totalorder %s11854_s2, %s11494_s20  ;;  %p11498_p11 = scmp.lt.u32.totalorder %s11494_s20, %s11854_s2 }
  0x3c   :  { %p11500_p12 = pnand %p11498_p11, %p11495_p10 }
  0x3e   :  { %11503 = shalt.err (!%p11500_p12)
}
  0x3f   :  { %s11504_s25 = scalar_lea.vmem %s47_s9, 128  ;;  %p11509_p0 = scmp.lt.s32.totalorder %s47_s9, %s47_s9 }
  0x40   :  { %p11505_p13 = scmp.ne.s32.totalorder %s47_s9, %s11504_s25  ;;  %p11510_p1 = scmp.lt.s32.totalorder %s11504_s25, %s11504_s25 }
  0x42   :  { %p11511_p2 = por %p11510_p1, %p11509_p0 }
  0x44   :  { %p11512_p3 = pnand %p11511_p2, %p11505_p13 }
  0x46   :  { %11515 = shalt.err (!%p11512_p3)
}
  0x47   :  { %49 = dma.hbm_to_vmem [thread:$0]  %s11854_s2, 128, %s47_s9, [#allocation6]  }
  0x48   :  { %s11576_s26 = smov [#allocation10]   ;;  %s11577_s28 = smov [#allocation11]  }
  0x49   :  { %s68_s27 = sshll.u32 %s11576_s26, 4  ;;  %s78_s29 = sshll.u32 %s11577_s28, 4  ;;  %s69_s27 = int_to_ptr.vmem [resolvable:$true] %s68_s27  ;;  %s79_s29 = int_to_ptr.vmem [resolvable:$true] %s78_s29 }
  0x4a   :  { %s11516_s10 = scalar_lea.hbm %s11856_s4, 64 }
  0x4b   :  { %p11517_p4 = scmp.ne.s32.totalorder %s11856_s4, %s11516_s10  ;;  %p11520_p5 = scmp.lt.u32.totalorder %s11516_s10, %s11856_s4 }
  0x4d   :  { %p11522_p6 = pnand %p11520_p5, %p11517_p4 }
  0x4f   :  { %11525 = shalt.err (!%p11522_p6)
}
  0x50   :  { %s11526_s2 = scalar_lea.vmem %s69_s27, 64  ;;  %p11531_p8 = scmp.lt.s32.totalorder %s69_s27, %s69_s27 }
  0x51   :  { %p11527_p7 = scmp.ne.s32.totalorder %s69_s27, %s11526_s2  ;;  %p11532_p9 = scmp.lt.s32.totalorder %s11526_s2, %s11526_s2 }
  0x53   :  { %p11533_p10 = por %p11532_p9, %p11531_p8 }
  0x55   :  { %p11534_p11 = pnand %p11533_p10, %p11527_p7 }
  0x57   :  { %11537 = shalt.err (!%p11534_p11)
}
  0x58   :  { %71 = dma.hbm_to_vmem [thread:$0]  %s11856_s4, 64, %s69_s27, [#allocation9]  }
  0x59   :  { %s11538_s16 = scalar_lea.hbm %s11857_s5, 64 }
  0x5a   :  { %p11539_p12 = scmp.ne.s32.totalorder %s11857_s5, %s11538_s16  ;;  %p11542_p13 = scmp.lt.u32.totalorder %s11538_s16, %s11857_s5 }
  0x5c   :  { %p11544_p0 = pnand %p11542_p13, %p11539_p12 }
  0x5e   :  { %11547 = shalt.err (!%p11544_p0)
}
  0x5f   :  { %s11548_s21 = scalar_lea.vmem %s79_s29, 64  ;;  %p11553_p2 = scmp.lt.s32.totalorder %s79_s29, %s79_s29 }
  0x60   :  { %p11549_p1 = scmp.ne.s32.totalorder %s79_s29, %s11548_s21  ;;  %p11554_p3 = scmp.lt.s32.totalorder %s11548_s21, %s11548_s21 }
  0x62   :  { %p11555_p4 = por %p11554_p3, %p11553_p2 }
  0x64   :  { %p11556_p5 = pnand %p11555_p4, %p11549_p1 }
  0x66   :  { %11559 = shalt.err (!%p11556_p5)
}
  0x67   :  { %81 = dma.hbm_to_vmem [thread:$0]  %s11857_s5, 64, %s79_s29, [#allocation12]  }
  0x68   :  { %11560 = dma.done.wait [#allocation4], 2048  }
  0x69   :  { %11561 = vsyncadd [#allocation4], 4294965248 }
  0x6a   :  { %11562 = dma.done.wait [#allocation6], 131200  }
  0x6b   :  { %11563 = vsyncadd [#allocation6], 4294836096 }
  0x6c   :  { %11564 = dma.done.wait [#allocation9], 32832  }
  0x6d   :  { %11565 = vsyncadd [#allocation9], 4294934464 }
  0x6e   :  { %11566 = dma.done.wait [#allocation12], 64  }
  0x6f   :  { %11567 = vsyncadd [#allocation12], 4294967232  ;;  %v134_v1 = vld [vmem:[#allocation5] sm:$0xff]  ;;  %v135_v3 = vld [vmem:[#allocation5 + $0x8] sm:$0xff]  ;;  %vm9594_vm0 = vcmask 7168  }
  0x70   :  { %v138_v2 = vld [vmem:[#allocation5 + $0x20] sm:$0xff]  ;;  %v139_v5 = vld [vmem:[#allocation5 + $0x28] sm:$0xff] }
  0x71   :  { %v9605_v4 = vcombine.high %v134_v1, %v138_v2  ;;  %v9604_v6 = vcombine.low %v134_v1, %v138_v2  ;;  %v142_v7 = vld [vmem:[#allocation5 + $0x40] sm:$0xff]  ;;  %v9607_v9 = vcombine.high %v135_v3, %v139_v5  ;;  %v9606_v10 = vcombine.low %v135_v3, %v139_v5  ;;  %v143_v12 = vld [vmem:[#allocation5 + $0x48] sm:$0xff] }
  0x72   :  { %v146_v8 = vld [vmem:[#allocation5 + $0x60] sm:$0xff]  ;;  %v147_v13 = vld [vmem:[#allocation5 + $0x68] sm:$0xff] }
  0x73   :  { %v9613_v11 = vcombine.high %v142_v7, %v146_v8  ;;  %v150_v14 = vld [vmem:[#allocation5 + $0x80] sm:$0xff]  ;;  %6320 = vmatprep.subr.bf16.mxu0 %v9605_v4  ;;  %v9615_v15 = vcombine.high %v143_v12, %v147_v13  ;;  %v151_v17 = vld [vmem:[#allocation5 + $0x88] sm:$0xff]  ;;  %6648 = vmatprep.subr.bf16.mxu1 %v9607_v9  ;;  %v9612_v19 = vcombine.low %v142_v7, %v146_v8 }
  0x74   :  { %v154_v16 = vld [vmem:[#allocation5 + $0xa0] sm:$0xff]  ;;  %v155_v18 = vld [vmem:[#allocation5 + $0xa8] sm:$0xff]  ;;  %6321 = vmatpush1.bf16.msra.mxu0 %v9604_v6  ;;  %6649 = vmatpush1.bf16.msra.mxu1 %v9606_v10  ;;  %v9614_v20 = vcombine.low %v143_v12, %v147_v13 }
  0x75   :  { %6322 = vmatprep.subr.bf16.mxu0 %v9613_v11  ;;  %v9621_v21 = vcombine.high %v150_v14, %v154_v16  ;;  %6650 = vmatprep.subr.bf16.mxu1 %v9615_v15  ;;  %v9623_v22 = vcombine.high %v151_v17, %v155_v18  ;;  %v158_v23 = vld [vmem:[#allocation5 + $0xc0] sm:$0xff]  ;;  %v159_v25 = vld [vmem:[#allocation5 + $0xc8] sm:$0xff]  ;;  %v9620_v27 = vcombine.low %v150_v14, %v154_v16 }
  0x76   :  { %v162_v24 = vld [vmem:[#allocation5 + $0xe0] sm:$0xff]  ;;  %v163_v26 = vld [vmem:[#allocation5 + $0xe8] sm:$0xff]  ;;  %v9622_v28 = vcombine.low %v151_v17, %v155_v18 }
  0x77   :  { %v9629_v29 = vcombine.high %v158_v23, %v162_v24  ;;  %v9631_v30 = vcombine.high %v159_v25, %v163_v26  ;;  %v166_v31 = vld [vmem:[#allocation5 + $0x100] sm:$0xff]  ;;  %v167_v33 = vld [vmem:[#allocation5 + $0x108] sm:$0xff]  ;;  %v9628_v35 = vcombine.low %v158_v23, %v162_v24  ;;  %v9630_v36 = vcombine.low %v159_v25, %v163_v26 }
  0x78   :  { %6323 = vmatpush1.bf16.msra.mxu0 %v9612_v19  ;;  %6651 = vmatpush1.bf16.msra.mxu1 %v9614_v20  ;;  %v170_v32 = vld [vmem:[#allocation5 + $0x120] sm:$0xff]  ;;  %v171_v34 = vld [vmem:[#allocation5 + $0x128] sm:$0xff] }
  0x79   :  { %6324 = vmatprep.subr.bf16.mxu0 %v9621_v21  ;;  %6652 = vmatprep.subr.bf16.mxu1 %v9623_v22  ;;  %v9637_v37 = vcombine.high %v166_v31, %v170_v32  ;;  %v9639_v38 = vcombine.high %v167_v33, %v171_v34  ;;  %v174_v39 = vld [vmem:[#allocation5 + $0x140] sm:$0xff]  ;;  %v175_v41 = vld [vmem:[#allocation5 + $0x148] sm:$0xff]  ;;  %v9636_v43 = vcombine.low %v166_v31, %v170_v32 }
  0x7a   :  { %v178_v40 = vld [vmem:[#allocation5 + $0x160] sm:$0xff]  ;;  %v179_v42 = vld [vmem:[#allocation5 + $0x168] sm:$0xff]  ;;  %v9638_v44 = vcombine.low %v167_v33, %v171_v34 }
  0x7b   :  { %v9645_v45 = vcombine.high %v174_v39, %v178_v40  ;;  %v9647_v46 = vcombine.high %v175_v41, %v179_v42  ;;  %v182_v47 = vld [vmem:[#allocation5 + $0x180] sm:$0xff]  ;;  %v183_v49 = vld [vmem:[#allocation5 + $0x188] sm:$0xff]  ;;  %v9644_v51 = vcombine.low %v174_v39, %v178_v40  ;;  %v9646_v52 = vcombine.low %v175_v41, %v179_v42 }
  0x7c   :  { %6325 = vmatpush1.bf16.msra.mxu0 %v9620_v27  ;;  %6653 = vmatpush1.bf16.msra.mxu1 %v9622_v28  ;;  %v186_v48 = vld [vmem:[#allocation5 + $0x1a0] sm:$0xff]  ;;  %v187_v50 = vld [vmem:[#allocation5 + $0x1a8] sm:$0xff] }
  0x7d   :  { %6326 = vmatprep.subr.bf16.mxu0 %v9629_v29  ;;  %6654 = vmatprep.subr.bf16.mxu1 %v9631_v30  ;;  %v9653_v53 = vcombine.high %v182_v47, %v186_v48  ;;  %v103_v54 = vld [vmem:[#allocation3 + $0x8] sm:$0xff]  ;;  %v9655_v55 = vcombine.high %v183_v49, %v187_v50  ;;  %v190_v56 = vld [vmem:[#allocation5 + $0x1c0] sm:$0xff]  ;;  %v9652_v61 = vcombine.low %v182_v47, %v186_v48 }
  0x7e   :  { %v194_v57 = vld [vmem:[#allocation5 + $0x1e0] sm:$0xff]  ;;  %v11693_v58 = vpack.c.bf16 %v103_v54, %v103_v54  ;;  %v191_v59 = vld [vmem:[#allocation5 + $0x1c8] sm:$0xff]  ;;  %v9654_v62 = vcombine.low %v183_v49, %v187_v50 }
  0x7f   :  { %v195_v60 = vld [vmem:[#allocation5 + $0x1e8] sm:$0xff]  ;;  %v9661_v63 = vcombine.high %v190_v56, %v194_v57  ;;  %v198_v1 = vld [vmem:[#allocation5 + $0x200] sm:$0xff]  ;;  %v9660_v5 = vcombine.low %v190_v56, %v194_v57 }
  0x80   :  { %6327 = vmatpush1.bf16.msra.mxu0 %v9628_v35  ;;  %6655 = vmatpush1.bf16.msra.mxu1 %v9630_v36  ;;  %v9663_v0 = vcombine.high %v191_v59, %v195_v60  ;;  %v202_v2 = vld [vmem:[#allocation5 + $0x220] sm:$0xff]  ;;  %v199_v3 = vld [vmem:[#allocation5 + $0x208] sm:$0xff]  ;;  %v9662_v6 = vcombine.low %v191_v59, %v195_v60 }
  0x81   :  { %6328 = vmatprep.subr.bf16.mxu0 %v9637_v37  ;;  %6656 = vmatprep.subr.bf16.mxu1 %v9639_v38  ;;  %v203_v4 = vld [vmem:[#allocation5 + $0x228] sm:$0xff]  ;;  %v9669_v7 = vcombine.high %v198_v1, %v202_v2  ;;  %v206_v9 = vld [vmem:[#allocation5 + $0x240] sm:$0xff]  ;;  %v9668_v13 = vcombine.low %v198_v1, %v202_v2 }
  0x82   :  { %6352 = vmatprep.mubr.bf16.mxu0 %v11693_v58  ;;  %6680 = vmatprep.mubr.bf16.mxu1 %v11693_v58  ;;  %v9671_v8 = vcombine.high %v199_v3, %v203_v4  ;;  %v210_v10 = vld [vmem:[#allocation5 + $0x260] sm:$0xff]  ;;  %v207_v11 = vld [vmem:[#allocation5 + $0x248] sm:$0xff]  ;;  %v9670_v14 = vcombine.low %v199_v3, %v203_v4 }
  0x83   :  { %v211_v12 = vld [vmem:[#allocation5 + $0x268] sm:$0xff]  ;;  %v9677_v15 = vcombine.high %v206_v9, %v210_v10  ;;  %v214_v17 = vld [vmem:[#allocation5 + $0x280] sm:$0xff]  ;;  %v9676_v21 = vcombine.low %v206_v9, %v210_v10 }
  0x84   :  { %6329 = vmatpush1.bf16.msra.mxu0 %v9636_v43  ;;  %6657 = vmatpush1.bf16.msra.mxu1 %v9638_v44  ;;  %v9679_v16 = vcombine.high %v207_v11, %v211_v12  ;;  %v218_v18 = vld [vmem:[#allocation5 + $0x2a0] sm:$0xff]  ;;  %v215_v19 = vld [vmem:[#allocation5 + $0x288] sm:$0xff]  ;;  %v9678_v22 = vcombine.low %v207_v11, %v211_v12 }
  0x85   :  { %6330 = vmatprep.subr.bf16.mxu0 %v9645_v45  ;;  %6658 = vmatprep.subr.bf16.mxu1 %v9647_v46  ;;  %v219_v20 = vld [vmem:[#allocation5 + $0x2a8] sm:$0xff]  ;;  %v9685_v23 = vcombine.high %v214_v17, %v218_v18  ;;  %v222_v25 = vld [vmem:[#allocation5 + $0x2c0] sm:$0xff]  ;;  %v9684_v29 = vcombine.low %v214_v17, %v218_v18 }
  0x86   :  { %v9687_v24 = vcombine.high %v215_v19, %v219_v20  ;;  %v226_v26 = vld [vmem:[#allocation5 + $0x2e0] sm:$0xff]  ;;  %v223_v27 = vld [vmem:[#allocation5 + $0x2c8] sm:$0xff]  ;;  %v9686_v30 = vcombine.low %v215_v19, %v219_v20 }
  0x87   :  { %v227_v28 = vld [vmem:[#allocation5 + $0x2e8] sm:$0xff]  ;;  %v9693_v31 = vcombine.high %v222_v25, %v226_v26  ;;  %v230_v33 = vld [vmem:[#allocation5 + $0x300] sm:$0xff]  ;;  %v9692_v37 = vcombine.low %v222_v25, %v226_v26 }
  0x88   :  { %6331 = vmatpush1.bf16.msra.mxu0 %v9644_v51  ;;  %6659 = vmatpush1.bf16.msra.mxu1 %v9646_v52  ;;  %v9695_v32 = vcombine.high %v223_v27, %v227_v28  ;;  %v234_v34 = vld [vmem:[#allocation5 + $0x320] sm:$0xff]  ;;  %v231_v35 = vld [vmem:[#allocation5 + $0x308] sm:$0xff]  ;;  %v9694_v38 = vcombine.low %v223_v27, %v227_v28 }
  0x89   :  { %6332 = vmatprep.subr.bf16.mxu0 %v9653_v53  ;;  %6660 = vmatprep.subr.bf16.mxu1 %v9655_v55  ;;  %v235_v36 = vld [vmem:[#allocation5 + $0x328] sm:$0xff]  ;;  %v9701_v39 = vcombine.high %v230_v33, %v234_v34  ;;  %v238_v41 = vld [vmem:[#allocation5 + $0x340] sm:$0xff]  ;;  %v9700_v45 = vcombine.low %v230_v33, %v234_v34 }
  0x8a   :  { %v9703_v40 = vcombine.high %v231_v35, %v235_v36  ;;  %v242_v42 = vld [vmem:[#allocation5 + $0x360] sm:$0xff]  ;;  %v239_v43 = vld [vmem:[#allocation5 + $0x348] sm:$0xff]  ;;  %v9702_v46 = vcombine.low %v231_v35, %v235_v36 }
  0x8b   :  { %v243_v44 = vld [vmem:[#allocation5 + $0x368] sm:$0xff]  ;;  %v9709_v47 = vcombine.high %v238_v41, %v242_v42  ;;  %v246_v49 = vld [vmem:[#allocation5 + $0x380] sm:$0xff]  ;;  %v9708_v53 = vcombine.low %v238_v41, %v242_v42 }
  0x8c   :  { %6333 = vmatpush1.bf16.msra.mxu0 %v9652_v61  ;;  %6661 = vmatpush1.bf16.msra.mxu1 %v9654_v62  ;;  %v9711_v48 = vcombine.high %v239_v43, %v243_v44  ;;  %v250_v50 = vld [vmem:[#allocation5 + $0x3a0] sm:$0xff]  ;;  %v247_v51 = vld [vmem:[#allocation5 + $0x388] sm:$0xff]  ;;  %v9710_v54 = vcombine.low %v239_v43, %v243_v44 }
  0x8d   :  { %6334 = vmatprep.subr.bf16.mxu0 %v9661_v63  ;;  %6662 = vmatprep.subr.bf16.mxu1 %v9663_v0  ;;  %v251_v52 = vld [vmem:[#allocation5 + $0x3a8] sm:$0xff]  ;;  %v9717_v55 = vcombine.high %v246_v49, %v250_v50  ;;  %v254_v57 = vld [vmem:[#allocation5 + $0x3c0] sm:$0xff]  ;;  %v9716_v62 = vcombine.low %v246_v49, %v250_v50 }
  0x8e   :  { %v9719_v56 = vcombine.high %v247_v51, %v251_v52  ;;  %v258_v59 = vld [vmem:[#allocation5 + $0x3e0] sm:$0xff]  ;;  %v255_v60 = vld [vmem:[#allocation5 + $0x3c8] sm:$0xff]  ;;  %v9718_v63 = vcombine.low %v247_v51, %v251_v52 }
  0x8f   :  { %v259_v61 = vld [vmem:[#allocation5 + $0x3e8] sm:$0xff]  ;;  %v9725_v0 = vcombine.high %v254_v57, %v258_v59  ;;  %v262_v2 = vld [vmem:[#allocation5 + $0x400] sm:$0xff] }
  0x90   :  { %6335 = vmatpush1.bf16.msra.mxu0 %v9660_v5  ;;  %6663 = vmatpush1.bf16.msra.mxu1 %v9662_v6  ;;  %v9727_v1 = vcombine.high %v255_v60, %v259_v61  ;;  %v266_v3 = vld [vmem:[#allocation5 + $0x420] sm:$0xff]  ;;  %v263_v4 = vld [vmem:[#allocation5 + $0x408] sm:$0xff]  ;;  %v9724_v6 = vcombine.low %v254_v57, %v258_v59 }
  0x91   :  { %6336 = vmatprep.subr.bf16.mxu0 %v9669_v7  ;;  %6664 = vmatprep.subr.bf16.mxu1 %v9671_v8  ;;  %v267_v5 = vld [vmem:[#allocation5 + $0x428] sm:$0xff]  ;;  %v102_v7 = vld [vmem:[#allocation3] sm:$0xff]  ;;  %v9726_v8 = vcombine.low %v255_v60, %v259_v61  ;;  %v9733_v9 = vcombine.high %v262_v2, %v266_v3  ;;  %v9732_v17 = vcombine.low %v262_v2, %v266_v3 }
  0x92   :  { %v9735_v10 = vcombine.high %v263_v4, %v267_v5  ;;  %v270_v11 = vld [vmem:[#allocation5 + $0x440] sm:$0xff]  ;;  %v9734_v18 = vcombine.low %v263_v4, %v267_v5  ;;  %v283_v25 = vld [vmem:[#allocation5 + $0x4a8] sm:$0xff] }
  0x93   :  { %v274_v12 = vld [vmem:[#allocation5 + $0x460] sm:$0xff]  ;;  %v291_v33 = vld [vmem:[#allocation5 + $0x4e8] sm:$0xff] }
  0x94   :  { %6337 = vmatpush1.bf16.msra.mxu0 %v9668_v13  ;;  %6665 = vmatpush1.bf16.msra.mxu1 %v9670_v14  ;;  %v11697_v13 = vpack.c.bf16 %v102_v7, %v102_v7  ;;  %v271_v14 = vld [vmem:[#allocation5 + $0x448] sm:$0xff]  ;;  %v9741_v19 = vcombine.high %v270_v11, %v274_v12  ;;  %v9740_v26 = vcombine.low %v270_v11, %v274_v12  ;;  %v330_v7 = vld [vmem:[#allocation5 + $0x620] sm:$0xff] }
  0x95   :  { %6338 = vmatprep.subr.bf16.mxu0 %v9677_v15  ;;  %6666 = vmatprep.subr.bf16.mxu1 %v9679_v16  ;;  %v275_v15 = vld [vmem:[#allocation5 + $0x468] sm:$0xff]  ;;  %v105_v16 = vld [vmem:[#allocation3 + $0x18] sm:$0xff] }
  0x96   :  { %v9743_v20 = vcombine.high %v271_v14, %v275_v15  ;;  %v9742_v27 = vcombine.low %v271_v14, %v275_v15  ;;  %v299_v41 = vld [vmem:[#allocation5 + $0x528] sm:$0xff]  ;;  %v334_v15 = vld [vmem:[#allocation5 + $0x640] sm:$0xff] }
  0x97   :  { %v307_v49 = vld [vmem:[#allocation5 + $0x568] sm:$0xff] }
  0x98   :  { %6339 = vmatpush1.bf16.msra.mxu0 %v9676_v21  ;;  %6667 = vmatpush1.bf16.msra.mxu1 %v9678_v22  ;;  %v278_v21 = vld [vmem:[#allocation5 + $0x480] sm:$0xff]  ;;  %v315_v57 = vld [vmem:[#allocation5 + $0x5a8] sm:$0xff] }
  0x99   :  { %6340 = vmatprep.subr.bf16.mxu0 %v9685_v23  ;;  %6668 = vmatprep.subr.bf16.mxu1 %v9687_v24  ;;  %v282_v22 = vld [vmem:[#allocation5 + $0x4a0] sm:$0xff]  ;;  %v279_v23 = vld [vmem:[#allocation5 + $0x488] sm:$0xff]  ;;  %v11699_v24 = vpack.c.bf16 %v105_v16, %v105_v16 }
  0x9a   :  { %v9749_v28 = vcombine.high %v278_v21, %v282_v22  ;;  %v9748_v34 = vcombine.low %v278_v21, %v282_v22  ;;  %v9750_v35 = vcombine.low %v279_v23, %v283_v25  ;;  %v323_v2 = vld [vmem:[#allocation5 + $0x5e8] sm:$0xff]  ;;  %v338_v16 = vld [vmem:[#allocation5 + $0x660] sm:$0xff] }
  0x9b   :  { %v9805_v22 = vcombine.high %v334_v15, %v338_v16 }
  0x9c   :  { %6341 = vmatpush1.bf16.msra.mxu0 %v9684_v29  ;;  %6669 = vmatpush1.bf16.msra.mxu1 %v9686_v30  ;;  %v286_v29 = vld [vmem:[#allocation5 + $0x4c0] sm:$0xff] }
  0x9d   :  { %6342 = vmatprep.subr.bf16.mxu0 %v9693_v31  ;;  %6670 = vmatprep.subr.bf16.mxu1 %v9695_v32  ;;  %v290_v30 = vld [vmem:[#allocation5 + $0x4e0] sm:$0xff]  ;;  %v287_v31 = vld [vmem:[#allocation5 + $0x4c8] sm:$0xff]  ;;  %v9751_v32 = vcombine.high %v279_v23, %v283_v25 }
  0x9e   :  { %v9757_v36 = vcombine.high %v286_v29, %v290_v30  ;;  %v9756_v42 = vcombine.low %v286_v29, %v290_v30  ;;  %v9758_v43 = vcombine.low %v287_v31, %v291_v33  ;;  %v342_v23 = vld [vmem:[#allocation5 + $0x680] sm:$0xff]  ;;  %v9804_v29 = vcombine.low %v334_v15, %v338_v16  ;;  %v104_v15 = vld [vmem:[#allocation3 + $0x10] sm:$0xff] }
  0x9f   :  { %v346_v25 = vld [vmem:[#allocation5 + $0x6a0] sm:$0xff] }
  0xa0   :  { %6343 = vmatpush1.bf16.msra.mxu0 %v9692_v37  ;;  %6671 = vmatpush1.bf16.msra.mxu1 %v9694_v38  ;;  %v294_v37 = vld [vmem:[#allocation5 + $0x500] sm:$0xff] }
  0xa1   :  { %6344 = vmatprep.subr.bf16.mxu0 %v9701_v39  ;;  %6672 = vmatprep.subr.bf16.mxu1 %v9703_v40  ;;  %v298_v38 = vld [vmem:[#allocation5 + $0x520] sm:$0xff]  ;;  %v295_v39 = vld [vmem:[#allocation5 + $0x508] sm:$0xff]  ;;  %v9759_v40 = vcombine.high %v287_v31, %v291_v33  ;;  %v9813_v31 = vcombine.high %v342_v23, %v346_v25 }
  0xa2   :  { %v9765_v44 = vcombine.high %v294_v37, %v298_v38  ;;  %v9764_v50 = vcombine.low %v294_v37, %v298_v38  ;;  %v9766_v51 = vcombine.low %v295_v39, %v299_v41  ;;  %v354_v33 = vld [vmem:[#allocation5 + $0x6e0] sm:$0xff]  ;;  %v9812_v37 = vcombine.low %v342_v23, %v346_v25  ;;  %v107_v25 = vld [vmem:[#allocation3 + $0x28] sm:$0xff] }
  0xa4   :  { %6345 = vmatpush1.bf16.msra.mxu0 %v9700_v45  ;;  %6673 = vmatpush1.bf16.msra.mxu1 %v9702_v46  ;;  %v302_v45 = vld [vmem:[#allocation5 + $0x540] sm:$0xff] }
  0xa5   :  { %6346 = vmatprep.subr.bf16.mxu0 %v9709_v47  ;;  %6674 = vmatprep.subr.bf16.mxu1 %v9711_v48  ;;  %v306_v46 = vld [vmem:[#allocation5 + $0x560] sm:$0xff]  ;;  %v303_v47 = vld [vmem:[#allocation5 + $0x548] sm:$0xff]  ;;  %v9767_v48 = vcombine.high %v295_v39, %v299_v41 }
  0xa6   :  { %v9773_v52 = vcombine.high %v302_v45, %v306_v46  ;;  %v9772_v59 = vcombine.low %v302_v45, %v306_v46  ;;  %v9774_v60 = vcombine.low %v303_v47, %v307_v49  ;;  %v362_v41 = vld [vmem:[#allocation5 + $0x720] sm:$0xff] }
  0xa8   :  { %6347 = vmatpush1.bf16.msra.mxu0 %v9708_v53  ;;  %6675 = vmatpush1.bf16.msra.mxu1 %v9710_v54  ;;  %v310_v53 = vld [vmem:[#allocation5 + $0x580] sm:$0xff] }
  0xa9   :  { %6348 = vmatprep.subr.bf16.mxu0 %v9717_v55  ;;  %6676 = vmatprep.subr.bf16.mxu1 %v9719_v56  ;;  %v314_v54 = vld [vmem:[#allocation5 + $0x5a0] sm:$0xff]  ;;  %v311_v55 = vld [vmem:[#allocation5 + $0x588] sm:$0xff]  ;;  %v9775_v56 = vcombine.high %v303_v47, %v307_v49 }
  0xaa   :  { %v9781_v61 = vcombine.high %v310_v53, %v314_v54  ;;  %v9780_v3 = vcombine.low %v310_v53, %v314_v54  ;;  %v9782_v4 = vcombine.low %v311_v55, %v315_v57  ;;  %v370_v49 = vld [vmem:[#allocation5 + $0x760] sm:$0xff] }
  0xac   :  { %6349 = vmatpush1.bf16.msra.mxu0 %v9716_v62  ;;  %6677 = vmatpush1.bf16.msra.mxu1 %v9718_v63  ;;  %v318_v62 = vld [vmem:[#allocation5 + $0x5c0] sm:$0xff] }
  0xad   :  { %6350 = vmatprep.subr.bf16.mxu0 %v9725_v0  ;;  %6678 = vmatprep.subr.bf16.mxu1 %v9727_v1  ;;  %v322_v63 = vld [vmem:[#allocation5 + $0x5e0] sm:$0xff]  ;;  %v319_v0 = vld [vmem:[#allocation5 + $0x5c8] sm:$0xff]  ;;  %v9783_v1 = vcombine.high %v311_v55, %v315_v57 }
  0xae   :  { %v9789_v5 = vcombine.high %v318_v62, %v322_v63  ;;  %v9788_v11 = vcombine.low %v318_v62, %v322_v63  ;;  %v9790_v12 = vcombine.low %v319_v0, %v323_v2  ;;  %v378_v57 = vld [vmem:[#allocation5 + $0x7a0] sm:$0xff] }
  0xb0   :  { %6351 = vmatpush1.bf16.msra.mxu0 %v9724_v6  ;;  %6679 = vmatpush1.bf16.msra.mxu1 %v9726_v8  ;;  %v326_v6 = vld [vmem:[#allocation5 + $0x600] sm:$0xff]  ;;  %v327_v8 = vld [vmem:[#allocation5 + $0x608] sm:$0xff] }
  0xb1   :  { %6361 = vmatprep.subr.bf16.mxu0 %v9733_v9  ;;  %6689 = vmatprep.subr.bf16.mxu1 %v9735_v10  ;;  %v9791_v9 = vcombine.high %v319_v0, %v323_v2  ;;  %v331_v10 = vld [vmem:[#allocation5 + $0x628] sm:$0xff]  ;;  %v9797_v14 = vcombine.high %v326_v6, %v330_v7  ;;  %v386_v2 = vld [vmem:[#allocation5 + $0x7e0] sm:$0xff] }
  0xb2   :  { %v9798_v21 = vcombine.low %v327_v8, %v331_v10 }
  0xb3   :  { %6353 = vmatmul.mubr.bf16.vlgmr.msra.gmra.mrb[0].mxu0 %v11697_v13  ;;  %6681 = vmatmul.mubr.bf16.vlgmr.msra.gmra.mrb[0].mxu1 %v11697_v13 }
  0xb4   :  { %6362 = vmatpush1.bf16.msra.mxu0 %v9732_v17  ;;  %6690 = vmatpush1.bf16.msra.mxu1 %v9734_v18  ;;  %v335_v17 = vld [vmem:[#allocation5 + $0x648] sm:$0xff]  ;;  %v9799_v18 = vcombine.high %v327_v8, %v331_v10  ;;  %v394_v10 = vld [vmem:[#allocation5 + $0x820] sm:$0xff] }
  0xb5   :  { %6363 = vmatprep.subr.bf16.mxu0 %v9741_v19  ;;  %6691 = vmatprep.subr.bf16.mxu1 %v9743_v20  ;;  %v339_v19 = vld [vmem:[#allocation5 + $0x668] sm:$0xff]  ;;  %v9796_v20 = vcombine.low %v326_v6, %v330_v7  ;;  %v390_v7 = vld [vmem:[#allocation5 + $0x800] sm:$0xff] }
  0xb6   :  { %6393 = vmatprep.mubr.bf16.mxu0 %v11699_v24  ;;  %6721 = vmatprep.mubr.bf16.mxu1 %v11699_v24  ;;  %v9806_v30 = vcombine.low %v335_v17, %v339_v19 }
  0xb8   :  { %6364 = vmatpush1.bf16.msra.mxu0 %v9740_v26  ;;  %6692 = vmatpush1.bf16.msra.mxu1 %v9742_v27  ;;  %v343_v26 = vld [vmem:[#allocation5 + $0x688] sm:$0xff]  ;;  %v9807_v27 = vcombine.high %v335_v17, %v339_v19  ;;  %v398_v17 = vld [vmem:[#allocation5 + $0x840] sm:$0xff]  ;;  %v9861_v19 = vcombine.high %v390_v7, %v394_v10 }
  0xb9   :  { %6365 = vmatprep.subr.bf16.mxu0 %v9749_v28  ;;  %6693 = vmatprep.subr.bf16.mxu1 %v9751_v32  ;;  %v347_v28 = vld [vmem:[#allocation5 + $0x6a8] sm:$0xff]  ;;  %v350_v32 = vld [vmem:[#allocation5 + $0x6c0] sm:$0xff] }
  0xba   :  { %v9814_v38 = vcombine.low %v343_v26, %v347_v28  ;;  %v9821_v39 = vcombine.high %v350_v32, %v354_v33  ;;  %v9820_v45 = vcombine.low %v350_v32, %v354_v33  ;;  %v410_v32 = vld [vmem:[#allocation5 + $0x8a0] sm:$0xff]  ;;  %v407_v33 = vld [vmem:[#allocation5 + $0x888] sm:$0xff] }
  0xbc   :  { %6366 = vmatpush1.bf16.msra.mxu0 %v9748_v34  ;;  %6694 = vmatpush1.bf16.msra.mxu1 %v9750_v35  ;;  %v351_v34 = vld [vmem:[#allocation5 + $0x6c8] sm:$0xff]  ;;  %v9815_v35 = vcombine.high %v343_v26, %v347_v28  ;;  %v11705_v26 = vpack.c.bf16 %v104_v15, %v104_v15 }
  0xbd   :  { %6367 = vmatprep.subr.bf16.mxu0 %v9757_v36  ;;  %6695 = vmatprep.subr.bf16.mxu1 %v9759_v40  ;;  %v355_v36 = vld [vmem:[#allocation5 + $0x6e8] sm:$0xff]  ;;  %v358_v40 = vld [vmem:[#allocation5 + $0x700] sm:$0xff] }
  0xbe   :  { %v9822_v46 = vcombine.low %v351_v34, %v355_v36  ;;  %v9829_v47 = vcombine.high %v358_v40, %v362_v41  ;;  %v9828_v53 = vcombine.low %v358_v40, %v362_v41  ;;  %v418_v40 = vld [vmem:[#allocation5 + $0x8e0] sm:$0xff]  ;;  %v415_v41 = vld [vmem:[#allocation5 + $0x8c8] sm:$0xff] }
  0xc0   :  { %6368 = vmatpush1.bf16.msra.mxu0 %v9756_v42  ;;  %6696 = vmatpush1.bf16.msra.mxu1 %v9758_v43  ;;  %v359_v42 = vld [vmem:[#allocation5 + $0x708] sm:$0xff]  ;;  %v9823_v43 = vcombine.high %v351_v34, %v355_v36 }
  0xc1   :  { %6369 = vmatprep.subr.bf16.mxu0 %v9765_v44  ;;  %6697 = vmatprep.subr.bf16.mxu1 %v9767_v48  ;;  %v363_v44 = vld [vmem:[#allocation5 + $0x728] sm:$0xff]  ;;  %v366_v48 = vld [vmem:[#allocation5 + $0x740] sm:$0xff] }
  0xc2   :  { %v9830_v54 = vcombine.low %v359_v42, %v363_v44  ;;  %v9837_v55 = vcombine.high %v366_v48, %v370_v49  ;;  %v9836_v62 = vcombine.low %v366_v48, %v370_v49  ;;  %v411_v34 = vld [vmem:[#allocation5 + $0x8a8] sm:$0xff]  ;;  %v426_v48 = vld [vmem:[#allocation5 + $0x920] sm:$0xff] }
  0xc3   :  { %v423_v49 = vld [vmem:[#allocation5 + $0x908] sm:$0xff] }
  0xc4   :  { %6370 = vmatpush1.bf16.msra.mxu0 %v9764_v50  ;;  %6698 = vmatpush1.bf16.msra.mxu1 %v9766_v51  ;;  %v367_v50 = vld [vmem:[#allocation5 + $0x748] sm:$0xff]  ;;  %v9831_v51 = vcombine.high %v359_v42, %v363_v44  ;;  %v9879_v42 = vcombine.high %v407_v33, %v411_v34 }
  0xc5   :  { %6371 = vmatprep.subr.bf16.mxu0 %v9773_v52  ;;  %6699 = vmatprep.subr.bf16.mxu1 %v9775_v56  ;;  %v371_v52 = vld [vmem:[#allocation5 + $0x768] sm:$0xff]  ;;  %v374_v56 = vld [vmem:[#allocation5 + $0x780] sm:$0xff] }
  0xc6   :  { %v9838_v63 = vcombine.low %v367_v50, %v371_v52  ;;  %v9845_v0 = vcombine.high %v374_v56, %v378_v57  ;;  %v9844_v6 = vcombine.low %v374_v56, %v378_v57  ;;  %v434_v56 = vld [vmem:[#allocation5 + $0x960] sm:$0xff]  ;;  %v431_v57 = vld [vmem:[#allocation5 + $0x948] sm:$0xff] }
  0xc8   :  { %6372 = vmatpush1.bf16.msra.mxu0 %v9772_v59  ;;  %6700 = vmatpush1.bf16.msra.mxu1 %v9774_v60  ;;  %v375_v59 = vld [vmem:[#allocation5 + $0x788] sm:$0xff]  ;;  %v9839_v60 = vcombine.high %v367_v50, %v371_v52 }
  0xc9   :  { %6373 = vmatprep.subr.bf16.mxu0 %v9781_v61  ;;  %6701 = vmatprep.subr.bf16.mxu1 %v9783_v1  ;;  %v379_v61 = vld [vmem:[#allocation5 + $0x7a8] sm:$0xff]  ;;  %v382_v1 = vld [vmem:[#allocation5 + $0x7c0] sm:$0xff] }
  0xca   :  { %v9846_v8 = vcombine.low %v375_v59, %v379_v61  ;;  %v9852_v16 = vcombine.low %v382_v1, %v386_v2 }
  0xcc   :  { %6374 = vmatpush1.bf16.msra.mxu0 %v9780_v3  ;;  %6702 = vmatpush1.bf16.msra.mxu1 %v9782_v4  ;;  %v383_v3 = vld [vmem:[#allocation5 + $0x7c8] sm:$0xff]  ;;  %v9847_v4 = vcombine.high %v375_v59, %v379_v61 }
  0xcd   :  { %6375 = vmatprep.subr.bf16.mxu0 %v9789_v5  ;;  %6703 = vmatprep.subr.bf16.mxu1 %v9791_v9  ;;  %v387_v5 = vld [vmem:[#allocation5 + $0x7e8] sm:$0xff]  ;;  %v9853_v9 = vcombine.high %v382_v1, %v386_v2  ;;  %v442_v1 = vld [vmem:[#allocation5 + $0x9a0] sm:$0xff] }
  0xce   :  { %v439_v2 = vld [vmem:[#allocation5 + $0x988] sm:$0xff] }
  0xd0   :  { %6376 = vmatpush1.bf16.msra.mxu0 %v9788_v11  ;;  %6704 = vmatpush1.bf16.msra.mxu1 %v9790_v12  ;;  %v391_v11 = vld [vmem:[#allocation5 + $0x808] sm:$0xff] }
  0xd1   :  { %6377 = vmatprep.subr.bf16.mxu0 %v9797_v14  ;;  %6705 = vmatprep.subr.bf16.mxu1 %v9799_v18  ;;  %v395_v12 = vld [vmem:[#allocation5 + $0x828] sm:$0xff]  ;;  %v9855_v14 = vcombine.high %v383_v3, %v387_v5  ;;  %v9854_v18 = vcombine.low %v383_v3, %v387_v5 }
  0xd2   :  { %v9863_v23 = vcombine.high %v391_v11, %v395_v12  ;;  %v9862_v28 = vcombine.low %v391_v11, %v395_v12  ;;  %v451_v12 = vld [vmem:[#allocation5 + $0x9e8] sm:$0xff] }
  0xd4   :  { %6378 = vmatpush1.bf16.msra.mxu0 %v9796_v20  ;;  %6706 = vmatpush1.bf16.msra.mxu1 %v9798_v21  ;;  %v402_v20 = vld [vmem:[#allocation5 + $0x860] sm:$0xff]  ;;  %v399_v21 = vld [vmem:[#allocation5 + $0x848] sm:$0xff] }
  0xd5   :  { %6379 = vmatprep.subr.bf16.mxu0 %v9805_v22  ;;  %6707 = vmatprep.subr.bf16.mxu1 %v9807_v27  ;;  %v403_v22 = vld [vmem:[#allocation5 + $0x868] sm:$0xff]  ;;  %v9860_v27 = vcombine.low %v390_v7, %v394_v10  ;;  %v9868_v36 = vcombine.low %v398_v17, %v402_v20 }
  0xd6   :  { %v447_v10 = vld [vmem:[#allocation5 + $0x9c8] sm:$0xff] }
  0xd8   :  { %6380 = vmatpush1.bf16.msra.mxu0 %v9804_v29  ;;  %6708 = vmatpush1.bf16.msra.mxu1 %v9806_v30  ;;  %v9869_v29 = vcombine.high %v398_v17, %v402_v20  ;;  %v406_v30 = vld [vmem:[#allocation5 + $0x880] sm:$0xff]  ;;  %v9919_v20 = vcombine.high %v447_v10, %v451_v12 }
  0xd9   :  { %6381 = vmatprep.subr.bf16.mxu0 %v9813_v31  ;;  %6709 = vmatprep.subr.bf16.mxu1 %v9815_v35  ;;  %v9871_v31 = vcombine.high %v399_v21, %v403_v22  ;;  %v11707_v35 = vpack.c.bf16 %v107_v25, %v107_v25  ;;  %v9876_v44 = vcombine.low %v406_v30, %v410_v32  ;;  %v454_v17 = vld [vmem:[#allocation5 + $0xa00] sm:$0xff] }
  0xdc   :  { %6382 = vmatpush1.bf16.msra.mxu0 %v9812_v37  ;;  %6710 = vmatpush1.bf16.msra.mxu1 %v9814_v38  ;;  %v9870_v37 = vcombine.low %v399_v21, %v403_v22  ;;  %v9877_v38 = vcombine.high %v406_v30, %v410_v32  ;;  %v459_v21 = vld [vmem:[#allocation5 + $0xa28] sm:$0xff] }
  0xdd   :  { %6383 = vmatprep.subr.bf16.mxu0 %v9821_v39  ;;  %6711 = vmatprep.subr.bf16.mxu1 %v9823_v43  ;;  %v414_v39 = vld [vmem:[#allocation5 + $0x8c0] sm:$0xff]  ;;  %v419_v43 = vld [vmem:[#allocation5 + $0x8e8] sm:$0xff] }
  0xde   :  { %v9887_v50 = vcombine.high %v415_v41, %v419_v43  ;;  %v9884_v52 = vcombine.low %v414_v39, %v418_v40 }
  0xe0   :  { %6384 = vmatpush1.bf16.msra.mxu0 %v9820_v45  ;;  %6712 = vmatpush1.bf16.msra.mxu1 %v9822_v46  ;;  %v9878_v45 = vcombine.low %v407_v33, %v411_v34  ;;  %v9885_v46 = vcombine.high %v414_v39, %v418_v40  ;;  %v475_v40 = vld [vmem:[#allocation5 + $0xaa8] sm:$0xff] }
  0xe1   :  { %6385 = vmatprep.subr.bf16.mxu0 %v9829_v47  ;;  %6713 = vmatprep.subr.bf16.mxu1 %v9831_v51  ;;  %v422_v47 = vld [vmem:[#allocation5 + $0x900] sm:$0xff]  ;;  %v427_v51 = vld [vmem:[#allocation5 + $0x928] sm:$0xff] }
  0xe2   :  { %v9895_v59 = vcombine.high %v423_v49, %v427_v51  ;;  %v9892_v61 = vcombine.low %v422_v47, %v426_v48 }
  0xe4   :  { %6386 = vmatpush1.bf16.msra.mxu0 %v9828_v53  ;;  %6714 = vmatpush1.bf16.msra.mxu1 %v9830_v54  ;;  %v9886_v53 = vcombine.low %v415_v41, %v419_v43  ;;  %v9893_v54 = vcombine.high %v422_v47, %v426_v48  ;;  %v483_v48 = vld [vmem:[#allocation5 + $0xae8] sm:$0xff] }
  0xe5   :  { %6387 = vmatprep.subr.bf16.mxu0 %v9837_v55  ;;  %6715 = vmatprep.subr.bf16.mxu1 %v9839_v60  ;;  %v430_v55 = vld [vmem:[#allocation5 + $0x940] sm:$0xff]  ;;  %v435_v60 = vld [vmem:[#allocation5 + $0x968] sm:$0xff] }
  0xe6   :  { %v9903_v3 = vcombine.high %v431_v57, %v435_v60  ;;  %v9900_v5 = vcombine.low %v430_v55, %v434_v56 }
  0xe8   :  { %6388 = vmatpush1.bf16.msra.mxu0 %v9836_v62  ;;  %6716 = vmatpush1.bf16.msra.mxu1 %v9838_v63  ;;  %v9894_v62 = vcombine.low %v423_v49, %v427_v51  ;;  %v9901_v63 = vcombine.high %v430_v55, %v434_v56  ;;  %v491_v56 = vld [vmem:[#allocation5 + $0xb28] sm:$0xff] }
  0xe9   :  { %6389 = vmatprep.subr.bf16.mxu0 %v9845_v0  ;;  %6717 = vmatprep.subr.bf16.mxu1 %v9847_v4  ;;  %v438_v0 = vld [vmem:[#allocation5 + $0x980] sm:$0xff]  ;;  %v443_v4 = vld [vmem:[#allocation5 + $0x9a8] sm:$0xff] }
  0xea   :  { %v9909_v7 = vcombine.high %v438_v0, %v442_v1  ;;  %v9911_v11 = vcombine.high %v439_v2, %v443_v4  ;;  %v9910_v15 = vcombine.low %v439_v2, %v443_v4 }
  0xec   :  { %6390 = vmatpush1.bf16.msra.mxu0 %v9844_v6  ;;  %6718 = vmatpush1.bf16.msra.mxu1 %v9846_v8  ;;  %v9902_v6 = vcombine.low %v431_v57, %v435_v60  ;;  %v446_v8 = vld [vmem:[#allocation5 + $0x9c0] sm:$0xff] }
  0xed   :  { %6391 = vmatprep.subr.bf16.mxu0 %v9853_v9  ;;  %6719 = vmatprep.subr.bf16.mxu1 %v9855_v14  ;;  %v450_v9 = vld [vmem:[#allocation5 + $0x9e0] sm:$0xff]  ;;  %v9908_v14 = vcombine.low %v438_v0, %v442_v1  ;;  %v499_v1 = vld [vmem:[#allocation5 + $0xb68] sm:$0xff] }
  0xee   :  { %v9916_v22 = vcombine.low %v446_v8, %v450_v9 }
  0xf0   :  { %6392 = vmatpush1.bf16.msra.mxu0 %v9852_v16  ;;  %6720 = vmatpush1.bf16.msra.mxu1 %v9854_v18  ;;  %v9917_v16 = vcombine.high %v446_v8, %v450_v9  ;;  %v458_v18 = vld [vmem:[#allocation5 + $0xa20] sm:$0xff]  ;;  %v507_v9 = vld [vmem:[#allocation5 + $0xba8] sm:$0xff] }
  0xf1   :  { %6402 = vmatprep.subr.bf16.mxu0 %v9861_v19  ;;  %6730 = vmatprep.subr.bf16.mxu1 %v9863_v23  ;;  %v455_v19 = vld [vmem:[#allocation5 + $0xa08] sm:$0xff]  ;;  %v9918_v23 = vcombine.low %v447_v10, %v451_v12  ;;  %v9925_v25 = vcombine.high %v454_v17, %v458_v18  ;;  %v9924_v32 = vcombine.low %v454_v17, %v458_v18 }
  0xf2   :  { %v9927_v30 = vcombine.high %v455_v19, %v459_v21  ;;  %v9926_v33 = vcombine.low %v455_v19, %v459_v21  ;;  %v515_v18 = vld [vmem:[#allocation5 + $0xbe8] sm:$0xff] }
  0xf3   :  { %6394 = vmatmul.mubr.bf16.vlgmr.msra.gmra.mrb[0].mxu0 %v11705_v26  ;;  %6722 = vmatmul.mubr.bf16.vlgmr.msra.gmra.mrb[0].mxu1 %v11705_v26 }
  0xf4   :  { %6403 = vmatpush1.bf16.msra.mxu0 %v9860_v27  ;;  %6731 = vmatpush1.bf16.msra.mxu1 %v9862_v28  ;;  %v462_v27 = vld [vmem:[#allocation5 + $0xa40] sm:$0xff] }
  0xf5   :  { %6404 = vmatprep.subr.bf16.mxu0 %v9869_v29  ;;  %6732 = vmatprep.subr.bf16.mxu1 %v9871_v31  ;;  %v466_v28 = vld [vmem:[#allocation5 + $0xa60] sm:$0xff]  ;;  %v463_v29 = vld [vmem:[#allocation5 + $0xa48] sm:$0xff] }
  0xf6   :  { %6434 = vmatprep.mubr.bf16.mxu0 %v11707_v35  ;;  %6762 = vmatprep.mubr.bf16.mxu1 %v11707_v35  ;;  %v467_v31 = vld [vmem:[#allocation5 + $0xa68] sm:$0xff]  ;;  %v9933_v34 = vcombine.high %v462_v27, %v466_v28  ;;  %v9932_v41 = vcombine.low %v462_v27, %v466_v28 }
  0xf7   :  { %v9935_v39 = vcombine.high %v463_v29, %v467_v31  ;;  %v523_v27 = vld [vmem:[#allocation5 + $0xc28] sm:$0xff] }
  0xf8   :  { %6405 = vmatpush1.bf16.msra.mxu0 %v9868_v36  ;;  %6733 = vmatpush1.bf16.msra.mxu1 %v9870_v37  ;;  %v470_v36 = vld [vmem:[#allocation5 + $0xa80] sm:$0xff] }
  0xf9   :  { %6406 = vmatprep.subr.bf16.mxu0 %v9877_v38  ;;  %6734 = vmatprep.subr.bf16.mxu1 %v9879_v42  ;;  %v474_v37 = vld [vmem:[#allocation5 + $0xaa0] sm:$0xff]  ;;  %v471_v38 = vld [vmem:[#allocation5 + $0xa88] sm:$0xff]  ;;  %v9934_v42 = vcombine.low %v463_v29, %v467_v31 }
  0xfa   :  { %v9941_v43 = vcombine.high %v470_v36, %v474_v37  ;;  %v9943_v47 = vcombine.high %v471_v38, %v475_v40  ;;  %v9940_v49 = vcombine.low %v470_v36, %v474_v37  ;;  %v106_v29 = vld [vmem:[#allocation3 + $0x20] sm:$0xff]  ;;  %v527_v36 = vld [vmem:[#allocation5 + $0xc48] sm:$0xff] }
  0xfb   :  { %v526_v31 = vld [vmem:[#allocation5 + $0xc40] sm:$0xff]  ;;  %v531_v37 = vld [vmem:[#allocation5 + $0xc68] sm:$0xff] }
  0xfc   :  { %6407 = vmatpush1.bf16.msra.mxu0 %v9876_v44  ;;  %6735 = vmatpush1.bf16.msra.mxu1 %v9878_v45  ;;  %v478_v44 = vld [vmem:[#allocation5 + $0xac0] sm:$0xff] }
  0xfd   :  { %6408 = vmatprep.subr.bf16.mxu0 %v9885_v46  ;;  %6736 = vmatprep.subr.bf16.mxu1 %v9887_v50  ;;  %v482_v45 = vld [vmem:[#allocation5 + $0xae0] sm:$0xff]  ;;  %v479_v46 = vld [vmem:[#allocation5 + $0xac8] sm:$0xff]  ;;  %v9942_v50 = vcombine.low %v471_v38, %v475_v40  ;;  %v11713_v40 = vpack.c.bf16 %v106_v29, %v106_v29 }
  0xfe   :  { %v9949_v51 = vcombine.high %v478_v44, %v482_v45  ;;  %v9951_v55 = vcombine.high %v479_v46, %v483_v48  ;;  %v9948_v57 = vcombine.low %v478_v44, %v482_v45  ;;  %v534_v44 = vld [vmem:[#allocation5 + $0xc80] sm:$0xff]  ;;  %v9999_v45 = vcombine.high %v527_v36, %v531_v37  ;;  %v579_v29 = vld [vmem:[#allocation5 + $0xde8] sm:$0xff] }
 0x100   :  { %6409 = vmatpush1.bf16.msra.mxu0 %v9884_v52  ;;  %6737 = vmatpush1.bf16.msra.mxu1 %v9886_v53  ;;  %v486_v52 = vld [vmem:[#allocation5 + $0xb00] sm:$0xff] }
 0x101   :  { %6410 = vmatprep.subr.bf16.mxu0 %v9893_v54  ;;  %6738 = vmatprep.subr.bf16.mxu1 %v9895_v59  ;;  %v490_v53 = vld [vmem:[#allocation5 + $0xb20] sm:$0xff]  ;;  %v487_v54 = vld [vmem:[#allocation5 + $0xb08] sm:$0xff]  ;;  %v9950_v59 = vcombine.low %v479_v46, %v483_v48 }
 0x102   :  { %v9957_v60 = vcombine.high %v486_v52, %v490_v53  ;;  %v9959_v0 = vcombine.high %v487_v54, %v491_v56  ;;  %v9956_v2 = vcombine.low %v486_v52, %v490_v53  ;;  %v538_v46 = vld [vmem:[#allocation5 + $0xca0] sm:$0xff]  ;;  %v539_v48 = vld [vmem:[#allocation5 + $0xca8] sm:$0xff] }
 0x103   :  { %v10005_v52 = vcombine.high %v534_v44, %v538_v46 }
 0x104   :  { %6411 = vmatpush1.bf16.msra.mxu0 %v9892_v61  ;;  %6739 = vmatpush1.bf16.msra.mxu1 %v9894_v62  ;;  %v494_v61 = vld [vmem:[#allocation5 + $0xb40] sm:$0xff] }
 0x105   :  { %6412 = vmatprep.subr.bf16.mxu0 %v9901_v63  ;;  %6740 = vmatprep.subr.bf16.mxu1 %v9903_v3  ;;  %v498_v62 = vld [vmem:[#allocation5 + $0xb60] sm:$0xff]  ;;  %v495_v63 = vld [vmem:[#allocation5 + $0xb48] sm:$0xff]  ;;  %v9958_v3 = vcombine.low %v487_v54, %v491_v56 }
 0x106   :  { %v9965_v4 = vcombine.high %v494_v61, %v498_v62  ;;  %v9967_v8 = vcombine.high %v495_v63, %v499_v1  ;;  %v9964_v10 = vcombine.low %v494_v61, %v498_v62  ;;  %v542_v54 = vld [vmem:[#allocation5 + $0xcc0] sm:$0xff]  ;;  %v543_v56 = vld [vmem:[#allocation5 + $0xcc8] sm:$0xff] }
 0x108   :  { %6413 = vmatpush1.bf16.msra.mxu0 %v9900_v5  ;;  %6741 = vmatpush1.bf16.msra.mxu1 %v9902_v6  ;;  %v502_v5 = vld [vmem:[#allocation5 + $0xb80] sm:$0xff] }
 0x109   :  { %6414 = vmatprep.subr.bf16.mxu0 %v9909_v7  ;;  %6742 = vmatprep.subr.bf16.mxu1 %v9911_v11  ;;  %v506_v6 = vld [vmem:[#allocation5 + $0xba0] sm:$0xff]  ;;  %v503_v7 = vld [vmem:[#allocation5 + $0xb88] sm:$0xff]  ;;  %v9966_v11 = vcombine.low %v495_v63, %v499_v1 }
 0x10a   :  { %v9973_v12 = vcombine.high %v502_v5, %v506_v6  ;;  %v9975_v17 = vcombine.high %v503_v7, %v507_v9  ;;  %v9972_v19 = vcombine.low %v502_v5, %v506_v6  ;;  %v9974_v21 = vcombine.low %v503_v7, %v507_v9  ;;  %v550_v63 = vld [vmem:[#allocation5 + $0xd00] sm:$0xff]  ;;  %v551_v1 = vld [vmem:[#allocation5 + $0xd08] sm:$0xff] }
 0x10b   :  { %v558_v7 = vld [vmem:[#allocation5 + $0xd40] sm:$0xff]  ;;  %v559_v9 = vld [vmem:[#allocation5 + $0xd48] sm:$0xff] }
 0x10c   :  { %6415 = vmatpush1.bf16.msra.mxu0 %v9908_v14  ;;  %6743 = vmatpush1.bf16.msra.mxu1 %v9910_v15  ;;  %v510_v14 = vld [vmem:[#allocation5 + $0xbc0] sm:$0xff] }
 0x10d   :  { %6416 = vmatprep.subr.bf16.mxu0 %v9917_v16  ;;  %6744 = vmatprep.subr.bf16.mxu1 %v9919_v20  ;;  %v514_v15 = vld [vmem:[#allocation5 + $0xbe0] sm:$0xff]  ;;  %v511_v16 = vld [vmem:[#allocation5 + $0xbc8] sm:$0xff] }
 0x10e   :  { %v518_v20 = vld [vmem:[#allocation5 + $0xc00] sm:$0xff]  ;;  %v9983_v28 = vcombine.high %v511_v16, %v515_v18 }
 0x110   :  { %6417 = vmatpush1.bf16.msra.mxu0 %v9916_v22  ;;  %6745 = vmatpush1.bf16.msra.mxu1 %v9918_v23  ;;  %v9981_v22 = vcombine.high %v510_v14, %v514_v15  ;;  %v522_v23 = vld [vmem:[#allocation5 + $0xc20] sm:$0xff] }
 0x111   :  { %6418 = vmatprep.subr.bf16.mxu0 %v9925_v25  ;;  %6746 = vmatprep.subr.bf16.mxu1 %v9927_v30  ;;  %v519_v25 = vld [vmem:[#allocation5 + $0xc08] sm:$0xff]  ;;  %v9980_v30 = vcombine.low %v510_v14, %v514_v15 }
 0x112   :  { %v9991_v38 = vcombine.high %v519_v25, %v523_v27 }
 0x114   :  { %6419 = vmatpush1.bf16.msra.mxu0 %v9924_v32  ;;  %6747 = vmatpush1.bf16.msra.mxu1 %v9926_v33  ;;  %v9982_v32 = vcombine.low %v511_v16, %v515_v18  ;;  %v9989_v33 = vcombine.high %v518_v20, %v522_v23  ;;  %v566_v16 = vld [vmem:[#allocation5 + $0xd80] sm:$0xff]  ;;  %v567_v18 = vld [vmem:[#allocation5 + $0xd88] sm:$0xff] }
 0x115   :  { %6420 = vmatprep.subr.bf16.mxu0 %v9933_v34  ;;  %6748 = vmatprep.subr.bf16.mxu1 %v9935_v39  ;;  %v530_v34 = vld [vmem:[#allocation5 + $0xc60] sm:$0xff]  ;;  %v109_v39 = vld [vmem:[#allocation3 + $0x38] sm:$0xff] }
 0x118   :  { %6421 = vmatpush1.bf16.msra.mxu0 %v9932_v41  ;;  %6749 = vmatpush1.bf16.msra.mxu1 %v9934_v42  ;;  %v9988_v41 = vcombine.low %v518_v20, %v522_v23  ;;  %v9990_v42 = vcombine.low %v519_v25, %v523_v27  ;;  %v574_v25 = vld [vmem:[#allocation5 + $0xdc0] sm:$0xff] }
 0x119   :  { %6422 = vmatprep.subr.bf16.mxu0 %v9941_v43  ;;  %6750 = vmatprep.subr.bf16.mxu1 %v9943_v47  ;;  %v9997_v43 = vcombine.high %v526_v31, %v530_v34  ;;  %v535_v47 = vld [vmem:[#allocation5 + $0xc88] sm:$0xff]  ;;  %v578_v27 = vld [vmem:[#allocation5 + $0xde0] sm:$0xff] }
 0x11a   :  { %v10007_v53 = vcombine.high %v535_v47, %v539_v48 }
 0x11c   :  { %6423 = vmatpush1.bf16.msra.mxu0 %v9940_v49  ;;  %6751 = vmatpush1.bf16.msra.mxu1 %v9942_v50  ;;  %v11715_v49 = vpack.c.bf16 %v109_v39, %v109_v39  ;;  %v9996_v50 = vcombine.low %v526_v31, %v530_v34  ;;  %v582_v34 = vld [vmem:[#allocation5 + $0xe00] sm:$0xff]  ;;  %v10044_v39 = vcombine.low %v574_v25, %v578_v27 }
 0x11d   :  { %6424 = vmatprep.subr.bf16.mxu0 %v9949_v51  ;;  %6752 = vmatprep.subr.bf16.mxu1 %v9951_v55  ;;  %v9998_v51 = vcombine.low %v527_v36, %v531_v37  ;;  %v546_v55 = vld [vmem:[#allocation5 + $0xce0] sm:$0xff]  ;;  %v583_v37 = vld [vmem:[#allocation5 + $0xe08] sm:$0xff] }
 0x11e   :  { %v10013_v61 = vcombine.high %v542_v54, %v546_v55  ;;  %v586_v36 = vld [vmem:[#allocation5 + $0xe20] sm:$0xff] }
 0x120   :  { %6425 = vmatpush1.bf16.msra.mxu0 %v9948_v57  ;;  %6753 = vmatpush1.bf16.msra.mxu1 %v9950_v59  ;;  %v547_v57 = vld [vmem:[#allocation5 + $0xce8] sm:$0xff]  ;;  %v10004_v59 = vcombine.low %v534_v44, %v538_v46  ;;  %v590_v44 = vld [vmem:[#allocation5 + $0xe40] sm:$0xff] }
 0x121   :  { %6426 = vmatprep.subr.bf16.mxu0 %v9957_v60  ;;  %6754 = vmatprep.subr.bf16.mxu1 %v9959_v0  ;;  %v10006_v60 = vcombine.low %v535_v47, %v539_v48  ;;  %v10015_v62 = vcombine.high %v543_v56, %v547_v57  ;;  %v554_v0 = vld [vmem:[#allocation5 + $0xd20] sm:$0xff]  ;;  %v591_v46 = vld [vmem:[#allocation5 + $0xe48] sm:$0xff]  ;;  %v10052_v48 = vcombine.low %v582_v34, %v586_v36 }
 0x122   :  { %v10021_v5 = vcombine.high %v550_v63, %v554_v0  ;;  %v595_v47 = vld [vmem:[#allocation5 + $0xe68] sm:$0xff] }
 0x124   :  { %6427 = vmatpush1.bf16.msra.mxu0 %v9956_v2  ;;  %6755 = vmatpush1.bf16.msra.mxu1 %v9958_v3  ;;  %v555_v2 = vld [vmem:[#allocation5 + $0xd28] sm:$0xff]  ;;  %v10012_v3 = vcombine.low %v542_v54, %v546_v55  ;;  %v602_v54 = vld [vmem:[#allocation5 + $0xea0] sm:$0xff] }
 0x125   :  { %6428 = vmatprep.subr.bf16.mxu0 %v9965_v4  ;;  %6756 = vmatprep.subr.bf16.mxu1 %v9967_v8  ;;  %v10014_v4 = vcombine.low %v543_v56, %v547_v57  ;;  %v10023_v6 = vcombine.high %v551_v1, %v555_v2  ;;  %v562_v8 = vld [vmem:[#allocation5 + $0xd60] sm:$0xff]  ;;  %v599_v55 = vld [vmem:[#allocation5 + $0xe88] sm:$0xff] }
 0x126   :  { %v10029_v14 = vcombine.high %v558_v7, %v562_v8  ;;  %v10028_v20 = vcombine.low %v558_v7, %v562_v8  ;;  %v603_v56 = vld [vmem:[#allocation5 + $0xea8] sm:$0xff]  ;;  %v618_v7 = vld [vmem:[#allocation5 + $0xf20] sm:$0xff] }
 0x127   :  { %v615_v8 = vld [vmem:[#allocation5 + $0xf08] sm:$0xff] }
 0x128   :  { %6429 = vmatpush1.bf16.msra.mxu0 %v9964_v10  ;;  %6757 = vmatpush1.bf16.msra.mxu1 %v9966_v11  ;;  %v563_v10 = vld [vmem:[#allocation5 + $0xd68] sm:$0xff]  ;;  %v10020_v11 = vcombine.low %v550_v63, %v554_v0  ;;  %v610_v63 = vld [vmem:[#allocation5 + $0xee0] sm:$0xff] }
 0x129   :  { %6430 = vmatprep.subr.bf16.mxu0 %v9973_v12  ;;  %6758 = vmatprep.subr.bf16.mxu1 %v9975_v17  ;;  %v10022_v12 = vcombine.low %v551_v1, %v555_v2  ;;  %v10031_v15 = vcombine.high %v559_v9, %v563_v10  ;;  %v570_v17 = vld [vmem:[#allocation5 + $0xda0] sm:$0xff]  ;;  %v607_v0 = vld [vmem:[#allocation5 + $0xec8] sm:$0xff] }
 0x12a   :  { %v611_v1 = vld [vmem:[#allocation5 + $0xee8] sm:$0xff] }
 0x12c   :  { %6431 = vmatpush1.bf16.msra.mxu0 %v9972_v19  ;;  %6759 = vmatpush1.bf16.msra.mxu1 %v9974_v21  ;;  %v571_v19 = vld [vmem:[#allocation5 + $0xda8] sm:$0xff]  ;;  %v10030_v21 = vcombine.low %v559_v9, %v563_v10 }
 0x12d   :  { %6432 = vmatprep.subr.bf16.mxu0 %v9981_v22  ;;  %6760 = vmatprep.subr.bf16.mxu1 %v9983_v28  ;;  %v10037_v22 = vcombine.high %v566_v16, %v570_v17  ;;  %v10039_v23 = vcombine.high %v567_v18, %v571_v19  ;;  %v575_v28 = vld [vmem:[#allocation5 + $0xdc8] sm:$0xff]  ;;  %v10038_v31 = vcombine.low %v567_v18, %v571_v19 }
 0x12e   :  { %v619_v9 = vld [vmem:[#allocation5 + $0xf28] sm:$0xff] }
 0x12f   :  { %v627_v18 = vld [vmem:[#allocation5 + $0xf68] sm:$0xff] }
 0x130   :  { %6433 = vmatpush1.bf16.msra.mxu0 %v9980_v30  ;;  %6761 = vmatpush1.bf16.msra.mxu1 %v9982_v32  ;;  %v10036_v30 = vcombine.low %v566_v16, %v570_v17  ;;  %v10045_v32 = vcombine.high %v574_v25, %v578_v27  ;;  %v626_v16 = vld [vmem:[#allocation5 + $0xf60] sm:$0xff]  ;;  %v623_v17 = vld [vmem:[#allocation5 + $0xf48] sm:$0xff] }
 0x131   :  { %6443 = vmatprep.subr.bf16.mxu0 %v9989_v33  ;;  %6771 = vmatprep.subr.bf16.mxu1 %v9991_v38  ;;  %v10047_v33 = vcombine.high %v575_v28, %v579_v29  ;;  %v587_v38 = vld [vmem:[#allocation5 + $0xe28] sm:$0xff]  ;;  %v634_v25 = vld [vmem:[#allocation5 + $0xfa0] sm:$0xff] }
 0x132   :  { %v631_v27 = vld [vmem:[#allocation5 + $0xf88] sm:$0xff] }
 0x133   :  { %6435 = vmatmul.mubr.bf16.vlgmr.msra.gmra.mrb[0].mxu0 %v11713_v40  ;;  %6763 = vmatmul.mubr.bf16.vlgmr.msra.gmra.mrb[0].mxu1 %v11713_v40 }
 0x134   :  { %6444 = vmatpush1.bf16.msra.mxu0 %v9988_v41  ;;  %6772 = vmatpush1.bf16.msra.mxu1 %v9990_v42  ;;  %v10046_v41 = vcombine.low %v575_v28, %v579_v29  ;;  %v10053_v42 = vcombine.high %v582_v34, %v586_v36  ;;  %v635_v28 = vld [vmem:[#allocation5 + $0xfa8] sm:$0xff]  ;;  %v642_v34 = vld [vmem:[#allocation5 + $0xfe0] sm:$0xff] }
 0x135   :  { %6445 = vmatprep.subr.bf16.mxu0 %v9997_v43  ;;  %6773 = vmatprep.subr.bf16.mxu1 %v9999_v45  ;;  %v10055_v43 = vcombine.high %v583_v37, %v587_v38  ;;  %v594_v45 = vld [vmem:[#allocation5 + $0xe60] sm:$0xff]  ;;  %v639_v36 = vld [vmem:[#allocation5 + $0xfc8] sm:$0xff] }
 0x136   :  { %6475 = vmatprep.mubr.bf16.mxu0 %v11715_v49  ;;  %6803 = vmatprep.mubr.bf16.mxu1 %v11715_v49  ;;  %v10060_v57 = vcombine.low %v590_v44, %v594_v45 }
 0x138   :  { %6446 = vmatpush1.bf16.msra.mxu0 %v9996_v50  ;;  %6774 = vmatpush1.bf16.msra.mxu1 %v9998_v51  ;;  %v10054_v50 = vcombine.low %v583_v37, %v587_v38  ;;  %v10061_v51 = vcombine.high %v590_v44, %v594_v45  ;;  %v643_v37 = vld [vmem:[#allocation5 + $0xfe8] sm:$0xff]  ;;  %v650_v44 = vld [vmem:[#allocation5 + $0x1020] sm:$0xff] }
 0x139   :  { %6447 = vmatprep.subr.bf16.mxu0 %v10005_v52  ;;  %6775 = vmatprep.subr.bf16.mxu1 %v10007_v53  ;;  %v10063_v52 = vcombine.high %v591_v46, %v595_v47  ;;  %v598_v53 = vld [vmem:[#allocation5 + $0xe80] sm:$0xff]  ;;  %v647_v45 = vld [vmem:[#allocation5 + $0x1008] sm:$0xff] }
 0x13a   :  { %v10068_v2 = vcombine.low %v598_v53, %v602_v54 }
 0x13c   :  { %6448 = vmatpush1.bf16.msra.mxu0 %v10004_v59  ;;  %6776 = vmatpush1.bf16.msra.mxu1 %v10006_v60  ;;  %v10062_v59 = vcombine.low %v591_v46, %v595_v47  ;;  %v10069_v60 = vcombine.high %v598_v53, %v602_v54  ;;  %v651_v46 = vld [vmem:[#allocation5 + $0x1028] sm:$0xff]  ;;  %v654_v53 = vld [vmem:[#allocation5 + $0x1040] sm:$0xff] }
 0x13d   :  { %6449 = vmatprep.subr.bf16.mxu0 %v10013_v61  ;;  %6777 = vmatprep.subr.bf16.mxu1 %v10015_v62  ;;  %v10071_v61 = vcombine.high %v599_v55, %v603_v56  ;;  %v606_v62 = vld [vmem:[#allocation5 + $0xec0] sm:$0xff] }
 0x13e   :  { %v10076_v10 = vcombine.low %v606_v62, %v610_v63  ;;  %v658_v54 = vld [vmem:[#allocation5 + $0x1060] sm:$0xff] }
 0x140   :  { %6450 = vmatpush1.bf16.msra.mxu0 %v10012_v3  ;;  %6778 = vmatpush1.bf16.msra.mxu1 %v10014_v4  ;;  %v10070_v3 = vcombine.low %v599_v55, %v603_v56  ;;  %v10077_v4 = vcombine.high %v606_v62, %v610_v63  ;;  %v655_v56 = vld [vmem:[#allocation5 + $0x1048] sm:$0xff]  ;;  %v10125_v62 = vcombine.high %v654_v53, %v658_v54 }
 0x141   :  { %6451 = vmatprep.subr.bf16.mxu0 %v10021_v5  ;;  %6779 = vmatprep.subr.bf16.mxu1 %v10023_v6  ;;  %v10079_v5 = vcombine.high %v607_v0, %v611_v1  ;;  %v614_v6 = vld [vmem:[#allocation5 + $0xf00] sm:$0xff] }
 0x142   :  { %v10084_v19 = vcombine.low %v614_v6, %v618_v7 }
 0x144   :  { %6452 = vmatpush1.bf16.msra.mxu0 %v10020_v11  ;;  %6780 = vmatpush1.bf16.msra.mxu1 %v10022_v12  ;;  %v10078_v11 = vcombine.low %v607_v0, %v611_v1  ;;  %v10085_v12 = vcombine.high %v614_v6, %v618_v7  ;;  %v662_v0 = vld [vmem:[#allocation5 + $0x1080] sm:$0xff] }
 0x145   :  { %6453 = vmatprep.subr.bf16.mxu0 %v10029_v14  ;;  %6781 = vmatprep.subr.bf16.mxu1 %v10031_v15  ;;  %v10087_v14 = vcombine.high %v615_v8, %v619_v9  ;;  %v622_v15 = vld [vmem:[#allocation5 + $0xf40] sm:$0xff] }
 0x146   :  { %v10092_v29 = vcombine.low %v622_v15, %v626_v16  ;;  %v666_v1 = vld [vmem:[#allocation5 + $0x10a0] sm:$0xff] }
 0x147   :  { %v10133_v7 = vcombine.high %v662_v0, %v666_v1 }
 0x148   :  { %6454 = vmatpush1.bf16.msra.mxu0 %v10028_v20  ;;  %6782 = vmatpush1.bf16.msra.mxu1 %v10030_v21  ;;  %v10086_v20 = vcombine.low %v615_v8, %v619_v9  ;;  %v10093_v21 = vcombine.high %v622_v15, %v626_v16  ;;  %v670_v9 = vld [vmem:[#allocation5 + $0x10c0] sm:$0xff] }
 0x149   :  { %6455 = vmatprep.subr.bf16.mxu0 %v10037_v22  ;;  %6783 = vmatprep.subr.bf16.mxu1 %v10039_v23  ;;  %v10095_v22 = vcombine.high %v623_v17, %v627_v18  ;;  %v630_v23 = vld [vmem:[#allocation5 + $0xf80] sm:$0xff] }
 0x14a   :  { %v10100_v38 = vcombine.low %v630_v23, %v634_v25 }
 0x14c   :  { %6456 = vmatpush1.bf16.msra.mxu0 %v10036_v30  ;;  %6784 = vmatpush1.bf16.msra.mxu1 %v10038_v31  ;;  %v10094_v30 = vcombine.low %v623_v17, %v627_v18  ;;  %v10101_v31 = vcombine.high %v630_v23, %v634_v25  ;;  %v678_v18 = vld [vmem:[#allocation5 + $0x1100] sm:$0xff] }
 0x14d   :  { %6457 = vmatprep.subr.bf16.mxu0 %v10045_v32  ;;  %6785 = vmatprep.subr.bf16.mxu1 %v10047_v33  ;;  %v10103_v32 = vcombine.high %v631_v27, %v635_v28  ;;  %v638_v33 = vld [vmem:[#allocation5 + $0xfc0] sm:$0xff] }
 0x14e   :  { %v10108_v47 = vcombine.low %v638_v33, %v642_v34 }
 0x150   :  { %6458 = vmatpush1.bf16.msra.mxu0 %v10044_v39  ;;  %6786 = vmatpush1.bf16.msra.mxu1 %v10046_v41  ;;  %v10102_v39 = vcombine.low %v631_v27, %v635_v28  ;;  %v10109_v41 = vcombine.high %v638_v33, %v642_v34  ;;  %v686_v28 = vld [vmem:[#allocation5 + $0x1140] sm:$0xff] }
 0x151   :  { %6459 = vmatprep.subr.bf16.mxu0 %v10053_v42  ;;  %6787 = vmatprep.subr.bf16.mxu1 %v10055_v43  ;;  %v10111_v42 = vcombine.high %v639_v36, %v643_v37  ;;  %v646_v43 = vld [vmem:[#allocation5 + $0x1000] sm:$0xff] }
 0x154   :  { %6460 = vmatpush1.bf16.msra.mxu0 %v10052_v48  ;;  %6788 = vmatpush1.bf16.msra.mxu1 %v10054_v50  ;;  %v108_v48 = vld [vmem:[#allocation3 + $0x30] sm:$0xff]  ;;  %v10110_v50 = vcombine.low %v639_v36, %v643_v37  ;;  %v694_v37 = vld [vmem:[#allocation5 + $0x1180] sm:$0xff] }
 0x155   :  { %6461 = vmatprep.subr.bf16.mxu0 %v10061_v51  ;;  %6789 = vmatprep.subr.bf16.mxu1 %v10063_v52  ;;  %v10117_v51 = vcombine.high %v646_v43, %v650_v44  ;;  %v10119_v52 = vcombine.high %v647_v45, %v651_v46  ;;  %v11721_v55 = vpack.c.bf16 %v108_v48, %v108_v48  ;;  %v703_v48 = vld [vmem:[#allocation5 + $0x11c8] sm:$0xff] }
 0x158   :  { %6462 = vmatpush1.bf16.msra.mxu0 %v10060_v57  ;;  %6790 = vmatpush1.bf16.msra.mxu1 %v10062_v59  ;;  %v659_v57 = vld [vmem:[#allocation5 + $0x1068] sm:$0xff] }
 0x159   :  { %6463 = vmatprep.subr.bf16.mxu0 %v10069_v60  ;;  %6791 = vmatprep.subr.bf16.mxu1 %v10071_v61  ;;  %v111_v59 = vld [vmem:[#allocation3 + $0x48] sm:$0xff]  ;;  %v10116_v60 = vcombine.low %v646_v43, %v650_v44  ;;  %v10118_v61 = vcombine.low %v647_v45, %v651_v46  ;;  %v10127_v63 = vcombine.high %v655_v56, %v659_v57  ;;  %v702_v46 = vld [vmem:[#allocation5 + $0x11c0] sm:$0xff] }
 0x15a   :  { %v10126_v6 = vcombine.low %v655_v56, %v659_v57  ;;  %v710_v56 = vld [vmem:[#allocation5 + $0x1200] sm:$0xff] }
 0x15b   :  { %v714_v57 = vld [vmem:[#allocation5 + $0x1220] sm:$0xff] }
 0x15c   :  { %6464 = vmatpush1.bf16.msra.mxu0 %v10068_v2  ;;  %6792 = vmatpush1.bf16.msra.mxu1 %v10070_v3  ;;  %v11723_v2 = vpack.c.bf16 %v111_v59, %v111_v59  ;;  %v663_v3 = vld [vmem:[#allocation5 + $0x1088] sm:$0xff] }
 0x15d   :  { %6465 = vmatprep.subr.bf16.mxu0 %v10077_v4  ;;  %6793 = vmatprep.subr.bf16.mxu1 %v10079_v5  ;;  %v667_v4 = vld [vmem:[#allocation5 + $0x10a8] sm:$0xff]  ;;  %v10124_v5 = vcombine.low %v654_v53, %v658_v54 }
 0x15e   :  { %v10135_v8 = vcombine.high %v663_v3, %v667_v4  ;;  %v10134_v15 = vcombine.low %v663_v3, %v667_v4  ;;  %v711_v59 = vld [vmem:[#allocation5 + $0x1208] sm:$0xff]  ;;  %v722_v3 = vld [vmem:[#allocation5 + $0x1260] sm:$0xff] }
 0x15f   :  { %v719_v4 = vld [vmem:[#allocation5 + $0x1248] sm:$0xff] }
 0x160   :  { %6466 = vmatpush1.bf16.msra.mxu0 %v10076_v10  ;;  %6794 = vmatpush1.bf16.msra.mxu1 %v10078_v11  ;;  %v674_v10 = vld [vmem:[#allocation5 + $0x10e0] sm:$0xff]  ;;  %v671_v11 = vld [vmem:[#allocation5 + $0x10c8] sm:$0xff] }
 0x161   :  { %6467 = vmatprep.subr.bf16.mxu0 %v10085_v12  ;;  %6795 = vmatprep.subr.bf16.mxu1 %v10087_v14  ;;  %v675_v12 = vld [vmem:[#allocation5 + $0x10e8] sm:$0xff]  ;;  %v10132_v14 = vcombine.low %v662_v0, %v666_v1  ;;  %v10141_v16 = vcombine.high %v670_v9, %v674_v10  ;;  %v718_v1 = vld [vmem:[#allocation5 + $0x1240] sm:$0xff] }
 0x162   :  { %v10143_v17 = vcombine.high %v671_v11, %v675_v12  ;;  %v10142_v23 = vcombine.low %v671_v11, %v675_v12  ;;  %v730_v11 = vld [vmem:[#allocation5 + $0x12a0] sm:$0xff]  ;;  %v727_v12 = vld [vmem:[#allocation5 + $0x1288] sm:$0xff] }
 0x164   :  { %6468 = vmatpush1.bf16.msra.mxu0 %v10084_v19  ;;  %6796 = vmatpush1.bf16.msra.mxu1 %v10086_v20  ;;  %v682_v19 = vld [vmem:[#allocation5 + $0x1120] sm:$0xff]  ;;  %v679_v20 = vld [vmem:[#allocation5 + $0x1108] sm:$0xff] }
 0x165   :  { %6469 = vmatprep.subr.bf16.mxu0 %v10093_v21  ;;  %6797 = vmatprep.subr.bf16.mxu1 %v10095_v22  ;;  %v683_v21 = vld [vmem:[#allocation5 + $0x1128] sm:$0xff]  ;;  %v10140_v22 = vcombine.low %v670_v9, %v674_v10  ;;  %v10149_v25 = vcombine.high %v678_v18, %v682_v19  ;;  %v726_v10 = vld [vmem:[#allocation5 + $0x1280] sm:$0xff] }
 0x166   :  { %v10151_v27 = vcombine.high %v679_v20, %v683_v21  ;;  %v10150_v33 = vcombine.low %v679_v20, %v683_v21  ;;  %v738_v20 = vld [vmem:[#allocation5 + $0x12e0] sm:$0xff]  ;;  %v735_v21 = vld [vmem:[#allocation5 + $0x12c8] sm:$0xff] }
 0x168   :  { %6470 = vmatpush1.bf16.msra.mxu0 %v10092_v29  ;;  %6798 = vmatpush1.bf16.msra.mxu1 %v10094_v30  ;;  %v690_v29 = vld [vmem:[#allocation5 + $0x1160] sm:$0xff]  ;;  %v687_v30 = vld [vmem:[#allocation5 + $0x1148] sm:$0xff] }
 0x169   :  { %6471 = vmatprep.subr.bf16.mxu0 %v10101_v31  ;;  %6799 = vmatprep.subr.bf16.mxu1 %v10103_v32  ;;  %v691_v31 = vld [vmem:[#allocation5 + $0x1168] sm:$0xff]  ;;  %v10148_v32 = vcombine.low %v678_v18, %v682_v19  ;;  %v10157_v34 = vcombine.high %v686_v28, %v690_v29  ;;  %v734_v19 = vld [vmem:[#allocation5 + $0x12c0] sm:$0xff] }
 0x16a   :  { %v10159_v36 = vcombine.high %v687_v30, %v691_v31  ;;  %v10158_v43 = vcombine.low %v687_v30, %v691_v31  ;;  %v746_v30 = vld [vmem:[#allocation5 + $0x1320] sm:$0xff]  ;;  %v743_v31 = vld [vmem:[#allocation5 + $0x1308] sm:$0xff] }
 0x16c   :  { %6472 = vmatpush1.bf16.msra.mxu0 %v10100_v38  ;;  %6800 = vmatpush1.bf16.msra.mxu1 %v10102_v39  ;;  %v698_v38 = vld [vmem:[#allocation5 + $0x11a0] sm:$0xff]  ;;  %v695_v39 = vld [vmem:[#allocation5 + $0x1188] sm:$0xff] }
 0x16d   :  { %6473 = vmatprep.subr.bf16.mxu0 %v10109_v41  ;;  %6801 = vmatprep.subr.bf16.mxu1 %v10111_v42  ;;  %v699_v41 = vld [vmem:[#allocation5 + $0x11a8] sm:$0xff]  ;;  %v10156_v42 = vcombine.low %v686_v28, %v690_v29  ;;  %v10165_v44 = vcombine.high %v694_v37, %v698_v38  ;;  %v742_v29 = vld [vmem:[#allocation5 + $0x1300] sm:$0xff] }
 0x16e   :  { %v10167_v45 = vcombine.high %v695_v39, %v699_v41 }
 0x170   :  { %6474 = vmatpush1.bf16.msra.mxu0 %v10108_v47  ;;  %6802 = vmatpush1.bf16.msra.mxu1 %v10110_v50  ;;  %v706_v47 = vld [vmem:[#allocation5 + $0x11e0] sm:$0xff]  ;;  %v707_v50 = vld [vmem:[#allocation5 + $0x11e8] sm:$0xff] }
 0x171   :  { %6484 = vmatprep.subr.bf16.mxu0 %v10117_v51  ;;  %6812 = vmatprep.subr.bf16.mxu1 %v10119_v52  ;;  %v10164_v51 = vcombine.low %v694_v37, %v698_v38  ;;  %v10166_v52 = vcombine.low %v695_v39, %v699_v41  ;;  %v10173_v53 = vcombine.high %v702_v46, %v706_v47  ;;  %v750_v38 = vld [vmem:[#allocation5 + $0x1340] sm:$0xff]  ;;  %v751_v41 = vld [vmem:[#allocation5 + $0x1348] sm:$0xff] }
 0x172   :  { %v10175_v54 = vcombine.high %v703_v48, %v707_v50  ;;  %v754_v39 = vld [vmem:[#allocation5 + $0x1360] sm:$0xff] }
 0x173   :  { %6476 = vmatmul.mubr.bf16.vlgmr.msra.gmra.mrb[0].mxu0 %v11721_v55  ;;  %6804 = vmatmul.mubr.bf16.vlgmr.msra.gmra.mrb[0].mxu1 %v11721_v55 }
 0x174   :  { %6485 = vmatpush1.bf16.msra.mxu0 %v10116_v60  ;;  %6813 = vmatpush1.bf16.msra.mxu1 %v10118_v61  ;;  %v715_v60 = vld [vmem:[#allocation5 + $0x1228] sm:$0xff]  ;;  %v10172_v61 = vcombine.low %v702_v46, %v706_v47  ;;  %v758_v47 = vld [vmem:[#allocation5 + $0x1380] sm:$0xff] }
 0x175   :  { %6486 = vmatprep.subr.bf16.mxu0 %v10125_v62  ;;  %6814 = vmatprep.subr.bf16.mxu1 %v10127_v63  ;;  %v10174_v62 = vcombine.low %v703_v48, %v707_v50  ;;  %v10181_v63 = vcombine.high %v710_v56, %v714_v57  ;;  %v10183_v0 = vcombine.high %v711_v59, %v715_v60  ;;  %v762_v48 = vld [vmem:[#allocation5 + $0x13a0] sm:$0xff]  ;;  %v759_v50 = vld [vmem:[#allocation5 + $0x1388] sm:$0xff] }
 0x176   :  { %6516 = vmatprep.mubr.bf16.mxu0 %v11723_v2  ;;  %6844 = vmatprep.mubr.bf16.mxu1 %v11723_v2 }
 0x178   :  { %6487 = vmatpush1.bf16.msra.mxu0 %v10124_v5  ;;  %6815 = vmatpush1.bf16.msra.mxu1 %v10126_v6  ;;  %v723_v5 = vld [vmem:[#allocation5 + $0x1268] sm:$0xff]  ;;  %v10180_v6 = vcombine.low %v710_v56, %v714_v57  ;;  %v766_v57 = vld [vmem:[#allocation5 + $0x13c0] sm:$0xff] }
 0x179   :  { %6488 = vmatprep.subr.bf16.mxu0 %v10133_v7  ;;  %6816 = vmatprep.subr.bf16.mxu1 %v10135_v8  ;;  %v10182_v7 = vcombine.low %v711_v59, %v715_v60  ;;  %v10189_v8 = vcombine.high %v718_v1, %v722_v3  ;;  %v10191_v9 = vcombine.high %v719_v4, %v723_v5  ;;  %v770_v59 = vld [vmem:[#allocation5 + $0x13e0] sm:$0xff]  ;;  %v767_v60 = vld [vmem:[#allocation5 + $0x13c8] sm:$0xff] }
 0x17c   :  { %6489 = vmatpush1.bf16.msra.mxu0 %v10132_v14  ;;  %6817 = vmatpush1.bf16.msra.mxu1 %v10134_v15  ;;  %v731_v14 = vld [vmem:[#allocation5 + $0x12a8] sm:$0xff]  ;;  %v10188_v15 = vcombine.low %v718_v1, %v722_v3  ;;  %v774_v3 = vld [vmem:[#allocation5 + $0x1400] sm:$0xff] }
 0x17d   :  { %6490 = vmatprep.subr.bf16.mxu0 %v10141_v16  ;;  %6818 = vmatprep.subr.bf16.mxu1 %v10143_v17  ;;  %v10190_v16 = vcombine.low %v719_v4, %v723_v5  ;;  %v10197_v17 = vcombine.high %v726_v10, %v730_v11  ;;  %v10199_v18 = vcombine.high %v727_v12, %v731_v14  ;;  %v778_v4 = vld [vmem:[#allocation5 + $0x1420] sm:$0xff]  ;;  %v775_v5 = vld [vmem:[#allocation5 + $0x1408] sm:$0xff] }
 0x180   :  { %6491 = vmatpush1.bf16.msra.mxu0 %v10140_v22  ;;  %6819 = vmatpush1.bf16.msra.mxu1 %v10142_v23  ;;  %v739_v22 = vld [vmem:[#allocation5 + $0x12e8] sm:$0xff]  ;;  %v10196_v23 = vcombine.low %v726_v10, %v730_v11  ;;  %v10245_v10 = vcombine.high %v774_v3, %v778_v4 }
 0x181   :  { %6492 = vmatprep.subr.bf16.mxu0 %v10149_v25  ;;  %6820 = vmatprep.subr.bf16.mxu1 %v10151_v27  ;;  %v10198_v25 = vcombine.low %v727_v12, %v731_v14  ;;  %v10205_v27 = vcombine.high %v734_v19, %v738_v20  ;;  %v10207_v28 = vcombine.high %v735_v21, %v739_v22  ;;  %v782_v12 = vld [vmem:[#allocation5 + $0x1440] sm:$0xff] }
 0x182   :  { %v786_v14 = vld [vmem:[#allocation5 + $0x1460] sm:$0xff] }
 0x184   :  { %6493 = vmatpush1.bf16.msra.mxu0 %v10148_v32  ;;  %6821 = vmatpush1.bf16.msra.mxu1 %v10150_v33  ;;  %v747_v32 = vld [vmem:[#allocation5 + $0x1328] sm:$0xff]  ;;  %v10204_v33 = vcombine.low %v734_v19, %v738_v20  ;;  %v10244_v19 = vcombine.low %v774_v3, %v778_v4 }
 0x185   :  { %6494 = vmatprep.subr.bf16.mxu0 %v10157_v34  ;;  %6822 = vmatprep.subr.bf16.mxu1 %v10159_v36  ;;  %v10206_v34 = vcombine.low %v735_v21, %v739_v22  ;;  %v10213_v36 = vcombine.high %v742_v29, %v746_v30  ;;  %v10215_v37 = vcombine.high %v743_v31, %v747_v32  ;;  %v827_v3 = vld [vmem:[#allocation5 + $0x15a8] sm:$0xff] }
 0x186   :  { %v10253_v21 = vcombine.high %v782_v12, %v786_v14 }
 0x188   :  { %6495 = vmatpush1.bf16.msra.mxu0 %v10156_v42  ;;  %6823 = vmatpush1.bf16.msra.mxu1 %v10158_v43  ;;  %v755_v42 = vld [vmem:[#allocation5 + $0x1368] sm:$0xff]  ;;  %v10212_v43 = vcombine.low %v742_v29, %v746_v30  ;;  %v10252_v30 = vcombine.low %v782_v12, %v786_v14 }
 0x189   :  { %6496 = vmatprep.subr.bf16.mxu0 %v10165_v44  ;;  %6824 = vmatprep.subr.bf16.mxu1 %v10167_v45  ;;  %v10214_v44 = vcombine.low %v743_v31, %v747_v32  ;;  %v10221_v45 = vcombine.high %v750_v38, %v754_v39  ;;  %v10223_v46 = vcombine.high %v751_v41, %v755_v42  ;;  %v795_v29 = vld [vmem:[#allocation5 + $0x14a8] sm:$0xff] }
 0x18c   :  { %6497 = vmatpush1.bf16.msra.mxu0 %v10164_v51  ;;  %6825 = vmatpush1.bf16.msra.mxu1 %v10166_v52  ;;  %v763_v51 = vld [vmem:[#allocation5 + $0x13a8] sm:$0xff]  ;;  %v10220_v52 = vcombine.low %v750_v38, %v754_v39 }
 0x18d   :  { %6498 = vmatprep.subr.bf16.mxu0 %v10173_v53  ;;  %6826 = vmatprep.subr.bf16.mxu1 %v10175_v54  ;;  %v10222_v53 = vcombine.low %v751_v41, %v755_v42  ;;  %v10229_v54 = vcombine.high %v758_v47, %v762_v48  ;;  %v10231_v56 = vcombine.high %v759_v50, %v763_v51  ;;  %v803_v38 = vld [vmem:[#allocation5 + $0x14e8] sm:$0xff] }
 0x190   :  { %6499 = vmatpush1.bf16.msra.mxu0 %v10172_v61  ;;  %6827 = vmatpush1.bf16.msra.mxu1 %v10174_v62  ;;  %v771_v61 = vld [vmem:[#allocation5 + $0x13e8] sm:$0xff]  ;;  %v10228_v62 = vcombine.low %v758_v47, %v762_v48 }
 0x191   :  { %6500 = vmatprep.subr.bf16.mxu0 %v10181_v63  ;;  %6828 = vmatprep.subr.bf16.mxu1 %v10183_v0  ;;  %v10230_v63 = vcombine.low %v759_v50, %v763_v51  ;;  %v10237_v0 = vcombine.high %v766_v57, %v770_v59  ;;  %v10239_v1 = vcombine.high %v767_v60, %v771_v61  ;;  %v811_v47 = vld [vmem:[#allocation5 + $0x1528] sm:$0xff] }
 0x194   :  { %6501 = vmatpush1.bf16.msra.mxu0 %v10180_v6  ;;  %6829 = vmatpush1.bf16.msra.mxu1 %v10182_v7  ;;  %v779_v6 = vld [vmem:[#allocation5 + $0x1428] sm:$0xff]  ;;  %v10236_v7 = vcombine.low %v766_v57, %v770_v59 }
 0x195   :  { %6502 = vmatprep.subr.bf16.mxu0 %v10189_v8  ;;  %6830 = vmatprep.subr.bf16.mxu1 %v10191_v9  ;;  %v110_v8 = vld [vmem:[#allocation3 + $0x40] sm:$0xff]  ;;  %v10238_v9 = vcombine.low %v767_v60, %v771_v61  ;;  %v10247_v11 = vcombine.high %v775_v5, %v779_v6  ;;  %v10246_v20 = vcombine.low %v775_v5, %v779_v6  ;;  %v819_v57 = vld [vmem:[#allocation5 + $0x1568] sm:$0xff] }
 0x198   :  { %6503 = vmatpush1.bf16.msra.mxu0 %v10188_v15  ;;  %6831 = vmatpush1.bf16.msra.mxu1 %v10190_v16  ;;  %v11729_v15 = vpack.c.bf16 %v110_v8, %v110_v8  ;;  %v783_v16 = vld [vmem:[#allocation5 + $0x1448] sm:$0xff]  ;;  %v830_v8 = vld [vmem:[#allocation5 + $0x15c0] sm:$0xff] }
 0x199   :  { %6504 = vmatprep.subr.bf16.mxu0 %v10197_v17  ;;  %6832 = vmatprep.subr.bf16.mxu1 %v10199_v18  ;;  %v787_v17 = vld [vmem:[#allocation5 + $0x1468] sm:$0xff]  ;;  %v113_v18 = vld [vmem:[#allocation3 + $0x58] sm:$0xff] }
 0x19a   :  { %v10255_v22 = vcombine.high %v783_v16, %v787_v17  ;;  %v10254_v31 = vcombine.low %v783_v16, %v787_v17 }
 0x19c   :  { %6505 = vmatpush1.bf16.msra.mxu0 %v10196_v23  ;;  %6833 = vmatpush1.bf16.msra.mxu1 %v10198_v25  ;;  %v790_v23 = vld [vmem:[#allocation5 + $0x1480] sm:$0xff] }
 0x19d   :  { %6506 = vmatprep.subr.bf16.mxu0 %v10205_v27  ;;  %6834 = vmatprep.subr.bf16.mxu1 %v10207_v28  ;;  %v794_v25 = vld [vmem:[#allocation5 + $0x14a0] sm:$0xff]  ;;  %v11731_v27 = vpack.c.bf16 %v113_v18, %v113_v18  ;;  %v791_v28 = vld [vmem:[#allocation5 + $0x1488] sm:$0xff] }
 0x19e   :  { %v10261_v32 = vcombine.high %v790_v23, %v794_v25  ;;  %v10260_v39 = vcombine.low %v790_v23, %v794_v25  ;;  %v10262_v41 = vcombine.low %v791_v28, %v795_v29  ;;  %v838_v18 = vld [vmem:[#allocation5 + $0x1600] sm:$0xff] }
 0x1a0   :  { %6507 = vmatpush1.bf16.msra.mxu0 %v10204_v33  ;;  %6835 = vmatpush1.bf16.msra.mxu1 %v10206_v34  ;;  %v10263_v33 = vcombine.high %v791_v28, %v795_v29  ;;  %v798_v34 = vld [vmem:[#allocation5 + $0x14c0] sm:$0xff] }
 0x1a1   :  { %6508 = vmatprep.subr.bf16.mxu0 %v10213_v36  ;;  %6836 = vmatprep.subr.bf16.mxu1 %v10215_v37  ;;  %v802_v36 = vld [vmem:[#allocation5 + $0x14e0] sm:$0xff]  ;;  %v799_v37 = vld [vmem:[#allocation5 + $0x14c8] sm:$0xff] }
 0x1a2   :  { %v10269_v42 = vcombine.high %v798_v34, %v802_v36  ;;  %v10268_v48 = vcombine.low %v798_v34, %v802_v36  ;;  %v10270_v50 = vcombine.low %v799_v37, %v803_v38  ;;  %v846_v29 = vld [vmem:[#allocation5 + $0x1640] sm:$0xff] }
 0x1a4   :  { %6509 = vmatpush1.bf16.msra.mxu0 %v10212_v43  ;;  %6837 = vmatpush1.bf16.msra.mxu1 %v10214_v44  ;;  %v10271_v43 = vcombine.high %v799_v37, %v803_v38  ;;  %v806_v44 = vld [vmem:[#allocation5 + $0x1500] sm:$0xff] }
 0x1a5   :  { %6510 = vmatprep.subr.bf16.mxu0 %v10221_v45  ;;  %6838 = vmatprep.subr.bf16.mxu1 %v10223_v46  ;;  %v810_v45 = vld [vmem:[#allocation5 + $0x1520] sm:$0xff]  ;;  %v807_v46 = vld [vmem:[#allocation5 + $0x1508] sm:$0xff] }
 0x1a6   :  { %v10277_v51 = vcombine.high %v806_v44, %v810_v45  ;;  %v10276_v59 = vcombine.low %v806_v44, %v810_v45  ;;  %v10278_v60 = vcombine.low %v807_v46, %v811_v47  ;;  %v854_v38 = vld [vmem:[#allocation5 + $0x1680] sm:$0xff] }
 0x1a8   :  { %6511 = vmatpush1.bf16.msra.mxu0 %v10220_v52  ;;  %6839 = vmatpush1.bf16.msra.mxu1 %v10222_v53  ;;  %v10279_v52 = vcombine.high %v807_v46, %v811_v47  ;;  %v814_v53 = vld [vmem:[#allocation5 + $0x1540] sm:$0xff] }
 0x1a9   :  { %6512 = vmatprep.subr.bf16.mxu0 %v10229_v54  ;;  %6840 = vmatprep.subr.bf16.mxu1 %v10231_v56  ;;  %v818_v54 = vld [vmem:[#allocation5 + $0x1560] sm:$0xff]  ;;  %v815_v56 = vld [vmem:[#allocation5 + $0x1548] sm:$0xff] }
 0x1aa   :  { %v10285_v61 = vcombine.high %v814_v53, %v818_v54  ;;  %v10284_v4 = vcombine.low %v814_v53, %v818_v54  ;;  %v10286_v5 = vcombine.low %v815_v56, %v819_v57  ;;  %v862_v47 = vld [vmem:[#allocation5 + $0x16c0] sm:$0xff] }
 0x1ac   :  { %6513 = vmatpush1.bf16.msra.mxu0 %v10228_v62  ;;  %6841 = vmatpush1.bf16.msra.mxu1 %v10230_v63  ;;  %v10287_v62 = vcombine.high %v815_v56, %v819_v57  ;;  %v822_v63 = vld [vmem:[#allocation5 + $0x1580] sm:$0xff] }
 0x1ad   :  { %6514 = vmatprep.subr.bf16.mxu0 %v10237_v0  ;;  %6842 = vmatprep.subr.bf16.mxu1 %v10239_v1  ;;  %v826_v0 = vld [vmem:[#allocation5 + $0x15a0] sm:$0xff]  ;;  %v823_v1 = vld [vmem:[#allocation5 + $0x1588] sm:$0xff] }
 0x1ae   :  { %v10293_v6 = vcombine.high %v822_v63, %v826_v0  ;;  %v10292_v12 = vcombine.low %v822_v63, %v826_v0  ;;  %v10294_v14 = vcombine.low %v823_v1, %v827_v3  ;;  %v870_v57 = vld [vmem:[#allocation5 + $0x1700] sm:$0xff] }
 0x1b0   :  { %6515 = vmatpush1.bf16.msra.mxu0 %v10236_v7  ;;  %6843 = vmatpush1.bf16.msra.mxu1 %v10238_v9  ;;  %v10295_v7 = vcombine.high %v823_v1, %v827_v3  ;;  %v834_v9 = vld [vmem:[#allocation5 + $0x15e0] sm:$0xff] }
 0x1b1   :  { %6525 = vmatprep.subr.bf16.mxu0 %v10245_v10  ;;  %6853 = vmatprep.subr.bf16.mxu1 %v10247_v11  ;;  %v831_v10 = vld [vmem:[#allocation5 + $0x15c8] sm:$0xff]  ;;  %v10301_v16 = vcombine.high %v830_v8, %v834_v9  ;;  %v878_v3 = vld [vmem:[#allocation5 + $0x1740] sm:$0xff] }
 0x1b2   :  { %v835_v11 = vld [vmem:[#allocation5 + $0x15e8] sm:$0xff] }
 0x1b3   :  { %6517 = vmatmul.mubr.bf16.vlgmr.msra.gmra.mrb[0].mxu0 %v11729_v15  ;;  %6845 = vmatmul.mubr.bf16.vlgmr.msra.gmra.mrb[0].mxu1 %v11729_v15  ;;  %v10303_v17 = vcombine.high %v831_v10, %v835_v11  ;;  %v10302_v23 = vcombine.low %v831_v10, %v835_v11  ;;  %v886_v11 = vld [vmem:[#allocation5 + $0x1780] sm:$0xff] }
 0x1b4   :  { %6526 = vmatpush1.bf16.msra.mxu0 %v10244_v19  ;;  %6854 = vmatpush1.bf16.msra.mxu1 %v10246_v20  ;;  %v842_v19 = vld [vmem:[#allocation5 + $0x1620] sm:$0xff]  ;;  %v839_v20 = vld [vmem:[#allocation5 + $0x1608] sm:$0xff] }
 0x1b5   :  { %6527 = vmatprep.subr.bf16.mxu0 %v10253_v21  ;;  %6855 = vmatprep.subr.bf16.mxu1 %v10255_v22  ;;  %v843_v21 = vld [vmem:[#allocation5 + $0x1628] sm:$0xff]  ;;  %v10300_v22 = vcombine.low %v830_v8, %v834_v9  ;;  %v10309_v25 = vcombine.high %v838_v18, %v842_v19 }
 0x1b6   :  { %6557 = vmatprep.mubr.bf16.mxu0 %v11731_v27  ;;  %6885 = vmatprep.mubr.bf16.mxu1 %v11731_v27  ;;  %v10311_v28 = vcombine.high %v839_v20, %v843_v21  ;;  %v10310_v34 = vcombine.low %v839_v20, %v843_v21  ;;  %v894_v21 = vld [vmem:[#allocation5 + $0x17c0] sm:$0xff] }
 0x1b8   :  { %6528 = vmatpush1.bf16.msra.mxu0 %v10252_v30  ;;  %6856 = vmatpush1.bf16.msra.mxu1 %v10254_v31  ;;  %v850_v30 = vld [vmem:[#allocation5 + $0x1660] sm:$0xff]  ;;  %v847_v31 = vld [vmem:[#allocation5 + $0x1648] sm:$0xff] }
 0x1b9   :  { %6529 = vmatprep.subr.bf16.mxu0 %v10261_v32  ;;  %6857 = vmatprep.subr.bf16.mxu1 %v10263_v33  ;;  %v851_v32 = vld [vmem:[#allocation5 + $0x1668] sm:$0xff]  ;;  %v10308_v33 = vcombine.low %v838_v18, %v842_v19  ;;  %v10317_v36 = vcombine.high %v846_v29, %v850_v30 }
 0x1ba   :  { %v10319_v37 = vcombine.high %v847_v31, %v851_v32  ;;  %v10318_v44 = vcombine.low %v847_v31, %v851_v32  ;;  %v902_v32 = vld [vmem:[#allocation5 + $0x1800] sm:$0xff] }
 0x1bc   :  { %6530 = vmatpush1.bf16.msra.mxu0 %v10260_v39  ;;  %6858 = vmatpush1.bf16.msra.mxu1 %v10262_v41  ;;  %v858_v39 = vld [vmem:[#allocation5 + $0x16a0] sm:$0xff]  ;;  %v855_v41 = vld [vmem:[#allocation5 + $0x1688] sm:$0xff] }
 0x1bd   :  { %6531 = vmatprep.subr.bf16.mxu0 %v10269_v42  ;;  %6859 = vmatprep.subr.bf16.mxu1 %v10271_v43  ;;  %v859_v42 = vld [vmem:[#allocation5 + $0x16a8] sm:$0xff]  ;;  %v10316_v43 = vcombine.low %v846_v29, %v850_v30  ;;  %v10325_v45 = vcombine.high %v854_v38, %v858_v39 }
 0x1be   :  { %v10327_v46 = vcombine.high %v855_v41, %v859_v42  ;;  %v10326_v53 = vcombine.low %v855_v41, %v859_v42 }
 0x1c0   :  { %6532 = vmatpush1.bf16.msra.mxu0 %v10268_v48  ;;  %6860 = vmatpush1.bf16.msra.mxu1 %v10270_v50  ;;  %v866_v48 = vld [vmem:[#allocation5 + $0x16e0] sm:$0xff]  ;;  %v863_v50 = vld [vmem:[#allocation5 + $0x16c8] sm:$0xff] }
 0x1c1   :  { %6533 = vmatprep.subr.bf16.mxu0 %v10277_v51  ;;  %6861 = vmatprep.subr.bf16.mxu1 %v10279_v52  ;;  %v867_v51 = vld [vmem:[#allocation5 + $0x16e8] sm:$0xff]  ;;  %v10324_v52 = vcombine.low %v854_v38, %v858_v39  ;;  %v10333_v54 = vcombine.high %v862_v47, %v866_v48  ;;  %v112_v38 = vld [vmem:[#allocation3 + $0x50] sm:$0xff] }
 0x1c2   :  { %v10335_v56 = vcombine.high %v863_v50, %v867_v51  ;;  %v10334_v63 = vcombine.low %v863_v50, %v867_v51 }
 0x1c4   :  { %6534 = vmatpush1.bf16.msra.mxu0 %v10276_v59  ;;  %6862 = vmatpush1.bf16.msra.mxu1 %v10278_v60  ;;  %v874_v59 = vld [vmem:[#allocation5 + $0x1720] sm:$0xff]  ;;  %v871_v60 = vld [vmem:[#allocation5 + $0x1708] sm:$0xff] }
 0x1c5   :  { %6535 = vmatprep.subr.bf16.mxu0 %v10285_v61  ;;  %6863 = vmatprep.subr.bf16.mxu1 %v10287_v62  ;;  %v875_v61 = vld [vmem:[#allocation5 + $0x1728] sm:$0xff]  ;;  %v10332_v62 = vcombine.low %v862_v47, %v866_v48  ;;  %v10341_v0 = vcombine.high %v870_v57, %v874_v59 }
 0x1c6   :  { %v10343_v1 = vcombine.high %v871_v60, %v875_v61  ;;  %v10342_v8 = vcombine.low %v871_v60, %v875_v61  ;;  %v915_v47 = vld [vmem:[#allocation5 + $0x1868] sm:$0xff] }
 0x1c7   :  { %v115_v48 = vld [vmem:[#allocation3 + $0x68] sm:$0xff] }
 0x1c8   :  { %6536 = vmatpush1.bf16.msra.mxu0 %v10284_v4  ;;  %6864 = vmatpush1.bf16.msra.mxu1 %v10286_v5  ;;  %v882_v4 = vld [vmem:[#allocation5 + $0x1760] sm:$0xff]  ;;  %v879_v5 = vld [vmem:[#allocation5 + $0x1748] sm:$0xff] }
 0x1c9   :  { %6537 = vmatprep.subr.bf16.mxu0 %v10293_v6  ;;  %6865 = vmatprep.subr.bf16.mxu1 %v10295_v7  ;;  %v883_v6 = vld [vmem:[#allocation5 + $0x1768] sm:$0xff]  ;;  %v10340_v7 = vcombine.low %v870_v57, %v874_v59  ;;  %v10349_v9 = vcombine.high %v878_v3, %v882_v4  ;;  %v11739_v57 = vpack.c.bf16 %v115_v48, %v115_v48 }
 0x1ca   :  { %v10351_v10 = vcombine.high %v879_v5, %v883_v6  ;;  %v10350_v18 = vcombine.low %v879_v5, %v883_v6  ;;  %v919_v59 = vld [vmem:[#allocation5 + $0x1888] sm:$0xff] }
 0x1cb   :  { %v923_v60 = vld [vmem:[#allocation5 + $0x18a8] sm:$0xff] }
 0x1cc   :  { %6538 = vmatpush1.bf16.msra.mxu0 %v10292_v12  ;;  %6866 = vmatpush1.bf16.msra.mxu1 %v10294_v14  ;;  %v890_v12 = vld [vmem:[#allocation5 + $0x17a0] sm:$0xff]  ;;  %v887_v14 = vld [vmem:[#allocation5 + $0x1788] sm:$0xff] }
 0x1cd   :  { %6539 = vmatprep.subr.bf16.mxu0 %v10301_v16  ;;  %6867 = vmatprep.subr.bf16.mxu1 %v10303_v17  ;;  %v891_v16 = vld [vmem:[#allocation5 + $0x17a8] sm:$0xff]  ;;  %v10348_v17 = vcombine.low %v878_v3, %v882_v4  ;;  %v10357_v19 = vcombine.high %v886_v11, %v890_v12  ;;  %v930_v3 = vld [vmem:[#allocation5 + $0x18e0] sm:$0xff] }
 0x1ce   :  { %v10359_v20 = vcombine.high %v887_v14, %v891_v16  ;;  %v10358_v29 = vcombine.low %v887_v14, %v891_v16  ;;  %v927_v4 = vld [vmem:[#allocation5 + $0x18c8] sm:$0xff] }
 0x1cf   :  { %v931_v5 = vld [vmem:[#allocation5 + $0x18e8] sm:$0xff] }
 0x1d0   :  { %6540 = vmatpush1.bf16.msra.mxu0 %v10300_v22  ;;  %6868 = vmatpush1.bf16.msra.mxu1 %v10302_v23  ;;  %v898_v22 = vld [vmem:[#allocation5 + $0x17e0] sm:$0xff]  ;;  %v895_v23 = vld [vmem:[#allocation5 + $0x17c8] sm:$0xff] }
 0x1d1   :  { %6541 = vmatprep.subr.bf16.mxu0 %v10309_v25  ;;  %6869 = vmatprep.subr.bf16.mxu1 %v10311_v28  ;;  %v899_v25 = vld [vmem:[#allocation5 + $0x17e8] sm:$0xff]  ;;  %v10356_v28 = vcombine.low %v886_v11, %v890_v12  ;;  %v10365_v30 = vcombine.high %v894_v21, %v898_v22  ;;  %v938_v11 = vld [vmem:[#allocation5 + $0x1920] sm:$0xff] }
 0x1d2   :  { %v10367_v31 = vcombine.high %v895_v23, %v899_v25  ;;  %v10366_v39 = vcombine.low %v895_v23, %v899_v25  ;;  %v935_v12 = vld [vmem:[#allocation5 + $0x1908] sm:$0xff] }
 0x1d3   :  { %v939_v14 = vld [vmem:[#allocation5 + $0x1928] sm:$0xff] }
 0x1d4   :  { %6542 = vmatpush1.bf16.msra.mxu0 %v10308_v33  ;;  %6870 = vmatpush1.bf16.msra.mxu1 %v10310_v34  ;;  %v906_v33 = vld [vmem:[#allocation5 + $0x1820] sm:$0xff]  ;;  %v903_v34 = vld [vmem:[#allocation5 + $0x1808] sm:$0xff] }
 0x1d5   :  { %6543 = vmatprep.subr.bf16.mxu0 %v10317_v36  ;;  %6871 = vmatprep.subr.bf16.mxu1 %v10319_v37  ;;  %v907_v36 = vld [vmem:[#allocation5 + $0x1828] sm:$0xff]  ;;  %v10364_v37 = vcombine.low %v894_v21, %v898_v22  ;;  %v10373_v41 = vcombine.high %v902_v32, %v906_v33  ;;  %v10372_v50 = vcombine.low %v902_v32, %v906_v33  ;;  %v946_v21 = vld [vmem:[#allocation5 + $0x1960] sm:$0xff] }
 0x1d6   :  { %v10375_v42 = vcombine.high %v903_v34, %v907_v36  ;;  %v10374_v51 = vcombine.low %v903_v34, %v907_v36  ;;  %v943_v22 = vld [vmem:[#allocation5 + $0x1948] sm:$0xff]  ;;  %v954_v32 = vld [vmem:[#allocation5 + $0x19a0] sm:$0xff] }
 0x1d7   :  { %v947_v23 = vld [vmem:[#allocation5 + $0x1968] sm:$0xff] }
 0x1d8   :  { %6544 = vmatpush1.bf16.msra.mxu0 %v10316_v43  ;;  %6872 = vmatpush1.bf16.msra.mxu1 %v10318_v44  ;;  %v910_v43 = vld [vmem:[#allocation5 + $0x1840] sm:$0xff]  ;;  %v951_v33 = vld [vmem:[#allocation5 + $0x1988] sm:$0xff] }
 0x1d9   :  { %6545 = vmatprep.subr.bf16.mxu0 %v10325_v45  ;;  %6873 = vmatprep.subr.bf16.mxu1 %v10327_v46  ;;  %v914_v44 = vld [vmem:[#allocation5 + $0x1860] sm:$0xff]  ;;  %v11737_v45 = vpack.c.bf16 %v112_v38, %v112_v38  ;;  %v911_v46 = vld [vmem:[#allocation5 + $0x1848] sm:$0xff] }
 0x1da   :  { %v10380_v61 = vcombine.low %v910_v43, %v914_v44  ;;  %v955_v34 = vld [vmem:[#allocation5 + $0x19a8] sm:$0xff] }
 0x1dc   :  { %6546 = vmatpush1.bf16.msra.mxu0 %v10324_v52  ;;  %6874 = vmatpush1.bf16.msra.mxu1 %v10326_v53  ;;  %v10381_v52 = vcombine.high %v910_v43, %v914_v44  ;;  %v10383_v53 = vcombine.high %v911_v46, %v915_v47  ;;  %v959_v43 = vld [vmem:[#allocation5 + $0x19c8] sm:$0xff] }
 0x1dd   :  { %6547 = vmatprep.subr.bf16.mxu0 %v10333_v54  ;;  %6875 = vmatprep.subr.bf16.mxu1 %v10335_v56  ;;  %v918_v54 = vld [vmem:[#allocation5 + $0x1880] sm:$0xff]  ;;  %v963_v44 = vld [vmem:[#allocation5 + $0x19e8] sm:$0xff] }
 0x1de   :  { %v922_v56 = vld [vmem:[#allocation5 + $0x18a0] sm:$0xff] }
 0x1df   :  { %v10388_v6 = vcombine.low %v918_v54, %v922_v56 }
 0x1e0   :  { %6548 = vmatpush1.bf16.msra.mxu0 %v10332_v62  ;;  %6876 = vmatpush1.bf16.msra.mxu1 %v10334_v63  ;;  %v10382_v62 = vcombine.low %v911_v46, %v915_v47  ;;  %v10389_v63 = vcombine.high %v918_v54, %v922_v56  ;;  %v10422_v47 = vcombine.low %v951_v33, %v955_v34  ;;  %v971_v54 = vld [vmem:[#allocation5 + $0x1a28] sm:$0xff] }
 0x1e1   :  { %6549 = vmatprep.subr.bf16.mxu0 %v10341_v0  ;;  %6877 = vmatprep.subr.bf16.mxu1 %v10343_v1  ;;  %v10391_v0 = vcombine.high %v919_v59, %v923_v60  ;;  %v926_v1 = vld [vmem:[#allocation5 + $0x18c0] sm:$0xff] }
 0x1e2   :  { %v10396_v16 = vcombine.low %v926_v1, %v930_v3 }
 0x1e4   :  { %6550 = vmatpush1.bf16.msra.mxu0 %v10340_v7  ;;  %6878 = vmatpush1.bf16.msra.mxu1 %v10342_v8  ;;  %v10390_v7 = vcombine.low %v919_v59, %v923_v60  ;;  %v10397_v8 = vcombine.high %v926_v1, %v930_v3  ;;  %v10430_v59 = vcombine.low %v959_v43, %v963_v44  ;;  %v979_v1 = vld [vmem:[#allocation5 + $0x1a68] sm:$0xff] }
 0x1e5   :  { %6551 = vmatprep.subr.bf16.mxu0 %v10349_v9  ;;  %6879 = vmatprep.subr.bf16.mxu1 %v10351_v10  ;;  %v10399_v9 = vcombine.high %v927_v4, %v931_v5  ;;  %v934_v10 = vld [vmem:[#allocation5 + $0x1900] sm:$0xff] }
 0x1e6   :  { %v10404_v25 = vcombine.low %v934_v10, %v938_v11 }
 0x1e8   :  { %6552 = vmatpush1.bf16.msra.mxu0 %v10348_v17  ;;  %6880 = vmatpush1.bf16.msra.mxu1 %v10350_v18  ;;  %v10398_v17 = vcombine.low %v927_v4, %v931_v5  ;;  %v10405_v18 = vcombine.high %v934_v10, %v938_v11  ;;  %v987_v10 = vld [vmem:[#allocation5 + $0x1aa8] sm:$0xff] }
 0x1e9   :  { %6553 = vmatprep.subr.bf16.mxu0 %v10357_v19  ;;  %6881 = vmatprep.subr.bf16.mxu1 %v10359_v20  ;;  %v10407_v19 = vcombine.high %v935_v12, %v939_v14  ;;  %v942_v20 = vld [vmem:[#allocation5 + $0x1940] sm:$0xff] }
 0x1ea   :  { %v10412_v36 = vcombine.low %v942_v20, %v946_v21 }
 0x1ec   :  { %6554 = vmatpush1.bf16.msra.mxu0 %v10356_v28  ;;  %6882 = vmatpush1.bf16.msra.mxu1 %v10358_v29  ;;  %v10406_v28 = vcombine.low %v935_v12, %v939_v14  ;;  %v10413_v29 = vcombine.high %v942_v20, %v946_v21  ;;  %v995_v20 = vld [vmem:[#allocation5 + $0x1ae8] sm:$0xff] }
 0x1ed   :  { %6555 = vmatprep.subr.bf16.mxu0 %v10365_v30  ;;  %6883 = vmatprep.subr.bf16.mxu1 %v10367_v31  ;;  %v10415_v30 = vcombine.high %v943_v22, %v947_v23  ;;  %v950_v31 = vld [vmem:[#allocation5 + $0x1980] sm:$0xff] }
 0x1ee   :  { %v10421_v38 = vcombine.high %v950_v31, %v954_v32  ;;  %v10420_v46 = vcombine.low %v950_v31, %v954_v32  ;;  %v1003_v31 = vld [vmem:[#allocation5 + $0x1b28] sm:$0xff] }
 0x1f0   :  { %6556 = vmatpush1.bf16.msra.mxu0 %v10364_v37  ;;  %6884 = vmatpush1.bf16.msra.mxu1 %v10366_v39  ;;  %v10414_v37 = vcombine.low %v943_v22, %v947_v23  ;;  %v10423_v39 = vcombine.high %v951_v33, %v955_v34 }
 0x1f1   :  { %6566 = vmatprep.subr.bf16.mxu0 %v10373_v41  ;;  %6894 = vmatprep.subr.bf16.mxu1 %v10375_v42  ;;  %v958_v41 = vld [vmem:[#allocation5 + $0x19c0] sm:$0xff] }
 0x1f2   :  { %v962_v42 = vld [vmem:[#allocation5 + $0x19e0] sm:$0xff] }
 0x1f3   :  { %6558 = vmatmul.mubr.bf16.vlgmr.msra.gmra.mrb[0].mxu0 %v11737_v45  ;;  %6886 = vmatmul.mubr.bf16.vlgmr.msra.gmra.mrb[0].mxu1 %v11737_v45  ;;  %v10429_v48 = vcombine.high %v958_v41, %v962_v42  ;;  %v10428_v56 = vcombine.low %v958_v41, %v962_v42  ;;  %v1011_v41 = vld [vmem:[#allocation5 + $0x1b68] sm:$0xff] }
 0x1f4   :  { %6567 = vmatpush1.bf16.msra.mxu0 %v10372_v50  ;;  %6895 = vmatpush1.bf16.msra.mxu1 %v10374_v51  ;;  %v10431_v50 = vcombine.high %v959_v43, %v963_v44  ;;  %v966_v51 = vld [vmem:[#allocation5 + $0x1a00] sm:$0xff] }
 0x1f5   :  { %6568 = vmatprep.subr.bf16.mxu0 %v10381_v52  ;;  %6896 = vmatprep.subr.bf16.mxu1 %v10383_v53  ;;  %v970_v52 = vld [vmem:[#allocation5 + $0x1a20] sm:$0xff]  ;;  %v967_v53 = vld [vmem:[#allocation5 + $0x1a08] sm:$0xff] }
 0x1f6   :  { %6598 = vmatprep.mubr.bf16.mxu0 %v11739_v57  ;;  %6926 = vmatprep.mubr.bf16.mxu1 %v11739_v57  ;;  %v10437_v60 = vcombine.high %v966_v51, %v970_v52  ;;  %v10436_v3 = vcombine.low %v966_v51, %v970_v52  ;;  %v10438_v4 = vcombine.low %v967_v53, %v971_v54  ;;  %v1019_v51 = vld [vmem:[#allocation5 + $0x1ba8] sm:$0xff] }
 0x1f8   :  { %6569 = vmatpush1.bf16.msra.mxu0 %v10380_v61  ;;  %6897 = vmatpush1.bf16.msra.mxu1 %v10382_v62  ;;  %v10439_v61 = vcombine.high %v967_v53, %v971_v54  ;;  %v974_v62 = vld [vmem:[#allocation5 + $0x1a40] sm:$0xff] }
 0x1f9   :  { %6570 = vmatprep.subr.bf16.mxu0 %v10389_v63  ;;  %6898 = vmatprep.subr.bf16.mxu1 %v10391_v0  ;;  %v978_v63 = vld [vmem:[#allocation5 + $0x1a60] sm:$0xff]  ;;  %v975_v0 = vld [vmem:[#allocation5 + $0x1a48] sm:$0xff] }
 0x1fa   :  { %v10445_v5 = vcombine.high %v974_v62, %v978_v63  ;;  %v10444_v11 = vcombine.low %v974_v62, %v978_v63  ;;  %v10446_v12 = vcombine.low %v975_v0, %v979_v1  ;;  %v1027_v62 = vld [vmem:[#allocation5 + $0x1be8] sm:$0xff] }
 0x1fc   :  { %6571 = vmatpush1.bf16.msra.mxu0 %v10388_v6  ;;  %6899 = vmatpush1.bf16.msra.mxu1 %v10390_v7  ;;  %v10447_v6 = vcombine.high %v975_v0, %v979_v1  ;;  %v982_v7 = vld [vmem:[#allocation5 + $0x1a80] sm:$0xff] }
 0x1fd   :  { %6572 = vmatprep.subr.bf16.mxu0 %v10397_v8  ;;  %6900 = vmatprep.subr.bf16.mxu1 %v10399_v9  ;;  %v986_v8 = vld [vmem:[#allocation5 + $0x1aa0] sm:$0xff]  ;;  %v983_v9 = vld [vmem:[#allocation5 + $0x1a88] sm:$0xff] }
 0x1fe   :  { %v10453_v14 = vcombine.high %v982_v7, %v986_v8  ;;  %v10452_v21 = vcombine.low %v982_v7, %v986_v8  ;;  %v10454_v22 = vcombine.low %v983_v9, %v987_v10  ;;  %v1035_v7 = vld [vmem:[#allocation5 + $0x1c28] sm:$0xff] }
 0x200   :  { %6573 = vmatpush1.bf16.msra.mxu0 %v10396_v16  ;;  %6901 = vmatpush1.bf16.msra.mxu1 %v10398_v17  ;;  %v10455_v16 = vcombine.high %v983_v9, %v987_v10  ;;  %v990_v17 = vld [vmem:[#allocation5 + $0x1ac0] sm:$0xff] }
 0x201   :  { %6574 = vmatprep.subr.bf16.mxu0 %v10405_v18  ;;  %6902 = vmatprep.subr.bf16.mxu1 %v10407_v19  ;;  %v994_v18 = vld [vmem:[#allocation5 + $0x1ae0] sm:$0xff]  ;;  %v991_v19 = vld [vmem:[#allocation5 + $0x1ac8] sm:$0xff] }
 0x202   :  { %v10461_v23 = vcombine.high %v990_v17, %v994_v18  ;;  %v10460_v32 = vcombine.low %v990_v17, %v994_v18  ;;  %v10462_v33 = vcombine.low %v991_v19, %v995_v20  ;;  %v114_v9 = vld [vmem:[#allocation3 + $0x60] sm:$0xff]  ;;  %v1039_v18 = vld [vmem:[#allocation5 + $0x1c48] sm:$0xff] }
 0x203   :  { %v11745_v17 = vpack.c.bf16 %v114_v9, %v114_v9 }
 0x204   :  { %6575 = vmatpush1.bf16.msra.mxu0 %v10404_v25  ;;  %6903 = vmatpush1.bf16.msra.mxu1 %v10406_v28  ;;  %v10463_v25 = vcombine.high %v991_v19, %v995_v20  ;;  %v998_v28 = vld [vmem:[#allocation5 + $0x1b00] sm:$0xff]  ;;  %v1043_v19 = vld [vmem:[#allocation5 + $0x1c68] sm:$0xff]  ;;  %v117_v20 = vld [vmem:[#allocation3 + $0x78] sm:$0xff] }
 0x205   :  { %6576 = vmatprep.subr.bf16.mxu0 %v10413_v29  ;;  %6904 = vmatprep.subr.bf16.mxu1 %v10415_v30  ;;  %v1002_v29 = vld [vmem:[#allocation5 + $0x1b20] sm:$0xff]  ;;  %v999_v30 = vld [vmem:[#allocation5 + $0x1b08] sm:$0xff] }
 0x206   :  { %v10469_v34 = vcombine.high %v998_v28, %v1002_v29  ;;  %v10468_v42 = vcombine.low %v998_v28, %v1002_v29  ;;  %v10470_v43 = vcombine.low %v999_v30, %v1003_v31  ;;  %v1046_v28 = vld [vmem:[#allocation5 + $0x1c80] sm:$0xff] }
 0x207   :  { %v1050_v29 = vld [vmem:[#allocation5 + $0x1ca0] sm:$0xff] }
 0x208   :  { %6577 = vmatpush1.bf16.msra.mxu0 %v10412_v36  ;;  %6905 = vmatpush1.bf16.msra.mxu1 %v10414_v37  ;;  %v10471_v36 = vcombine.high %v999_v30, %v1003_v31  ;;  %v1006_v37 = vld [vmem:[#allocation5 + $0x1b40] sm:$0xff]  ;;  %v11747_v30 = vpack.c.bf16 %v117_v20, %v117_v20  ;;  %v1047_v31 = vld [vmem:[#allocation5 + $0x1c88] sm:$0xff] }
 0x209   :  { %6578 = vmatprep.subr.bf16.mxu0 %v10421_v38  ;;  %6906 = vmatprep.subr.bf16.mxu1 %v10423_v39  ;;  %v1010_v38 = vld [vmem:[#allocation5 + $0x1b60] sm:$0xff]  ;;  %v1007_v39 = vld [vmem:[#allocation5 + $0x1b48] sm:$0xff] }
 0x20a   :  { %v10477_v44 = vcombine.high %v1006_v37, %v1010_v38  ;;  %v10476_v52 = vcombine.low %v1006_v37, %v1010_v38  ;;  %v10478_v53 = vcombine.low %v1007_v39, %v1011_v41  ;;  %v1054_v38 = vld [vmem:[#allocation5 + $0x1cc0] sm:$0xff] }
 0x20c   :  { %6579 = vmatpush1.bf16.msra.mxu0 %v10420_v46  ;;  %6907 = vmatpush1.bf16.msra.mxu1 %v10422_v47  ;;  %v10479_v46 = vcombine.high %v1007_v39, %v1011_v41  ;;  %v1014_v47 = vld [vmem:[#allocation5 + $0x1b80] sm:$0xff]  ;;  %v1055_v41 = vld [vmem:[#allocation5 + $0x1cc8] sm:$0xff] }
 0x20d   :  { %6580 = vmatprep.subr.bf16.mxu0 %v10429_v48  ;;  %6908 = vmatprep.subr.bf16.mxu1 %v10431_v50  ;;  %v1018_v48 = vld [vmem:[#allocation5 + $0x1ba0] sm:$0xff]  ;;  %v1015_v50 = vld [vmem:[#allocation5 + $0x1b88] sm:$0xff] }
 0x20e   :  { %v10485_v54 = vcombine.high %v1014_v47, %v1018_v48  ;;  %v10484_v63 = vcombine.low %v1014_v47, %v1018_v48  ;;  %v10486_v0 = vcombine.low %v1015_v50, %v1019_v51  ;;  %v1058_v39 = vld [vmem:[#allocation5 + $0x1ce0] sm:$0xff] }
 0x20f   :  { %v1062_v48 = vld [vmem:[#allocation5 + $0x1d00] sm:$0xff] }
 0x210   :  { %6581 = vmatpush1.bf16.msra.mxu0 %v10428_v56  ;;  %6909 = vmatpush1.bf16.msra.mxu1 %v10430_v59  ;;  %v10487_v56 = vcombine.high %v1015_v50, %v1019_v51  ;;  %v1022_v59 = vld [vmem:[#allocation5 + $0x1bc0] sm:$0xff]  ;;  %v1063_v51 = vld [vmem:[#allocation5 + $0x1d08] sm:$0xff] }
 0x211   :  { %6582 = vmatprep.subr.bf16.mxu0 %v10437_v60  ;;  %6910 = vmatprep.subr.bf16.mxu1 %v10439_v61  ;;  %v1026_v60 = vld [vmem:[#allocation5 + $0x1be0] sm:$0xff]  ;;  %v1023_v61 = vld [vmem:[#allocation5 + $0x1bc8] sm:$0xff] }
 0x212   :  { %v10493_v1 = vcombine.high %v1022_v59, %v1026_v60  ;;  %v10492_v8 = vcombine.low %v1022_v59, %v1026_v60  ;;  %v10494_v10 = vcombine.low %v1023_v61, %v1027_v62  ;;  %v1066_v50 = vld [vmem:[#allocation5 + $0x1d20] sm:$0xff] }
 0x213   :  { %v1070_v60 = vld [vmem:[#allocation5 + $0x1d40] sm:$0xff] }
 0x214   :  { %6583 = vmatpush1.bf16.msra.mxu0 %v10436_v3  ;;  %6911 = vmatpush1.bf16.msra.mxu1 %v10438_v4  ;;  %v10495_v3 = vcombine.high %v1023_v61, %v1027_v62  ;;  %v1030_v4 = vld [vmem:[#allocation5 + $0x1c00] sm:$0xff]  ;;  %v1071_v62 = vld [vmem:[#allocation5 + $0x1d48] sm:$0xff] }
 0x215   :  { %6584 = vmatprep.subr.bf16.mxu0 %v10445_v5  ;;  %6912 = vmatprep.subr.bf16.mxu1 %v10447_v6  ;;  %v1034_v5 = vld [vmem:[#allocation5 + $0x1c20] sm:$0xff]  ;;  %v1031_v6 = vld [vmem:[#allocation5 + $0x1c08] sm:$0xff] }
 0x216   :  { %v1074_v61 = vld [vmem:[#allocation5 + $0x1d60] sm:$0xff] }
 0x217   :  { %v10540_v9 = vcombine.low %v1070_v60, %v1074_v61 }
 0x218   :  { %6585 = vmatpush1.bf16.msra.mxu0 %v10444_v11  ;;  %6913 = vmatpush1.bf16.msra.mxu1 %v10446_v12  ;;  %v10501_v11 = vcombine.high %v1030_v4, %v1034_v5  ;;  %v10503_v12 = vcombine.high %v1031_v6, %v1035_v7 }
 0x219   :  { %6586 = vmatprep.subr.bf16.mxu0 %v10453_v14  ;;  %6914 = vmatprep.subr.bf16.mxu1 %v10455_v16  ;;  %v1038_v14 = vld [vmem:[#allocation5 + $0x1c40] sm:$0xff] }
 0x21a   :  { %v1042_v16 = vld [vmem:[#allocation5 + $0x1c60] sm:$0xff] }
 0x21c   :  { %6587 = vmatpush1.bf16.msra.mxu0 %v10452_v21  ;;  %6915 = vmatpush1.bf16.msra.mxu1 %v10454_v22  ;;  %v10500_v21 = vcombine.low %v1030_v4, %v1034_v5  ;;  %v10502_v22 = vcombine.low %v1031_v6, %v1035_v7  ;;  %v1078_v5 = vld [vmem:[#allocation5 + $0x1d80] sm:$0xff]  ;;  %v1079_v7 = vld [vmem:[#allocation5 + $0x1d88] sm:$0xff] }
 0x21d   :  { %6588 = vmatprep.subr.bf16.mxu0 %v10461_v23  ;;  %6916 = vmatprep.subr.bf16.mxu1 %v10463_v25  ;;  %v10509_v23 = vcombine.high %v1038_v14, %v1042_v16  ;;  %v10511_v25 = vcombine.high %v1039_v18, %v1043_v19  ;;  %v1082_v6 = vld [vmem:[#allocation5 + $0x1da0] sm:$0xff] }
 0x21e   :  { %v10548_v20 = vcombine.low %v1078_v5, %v1082_v6 }
 0x220   :  { %6589 = vmatpush1.bf16.msra.mxu0 %v10460_v32  ;;  %6917 = vmatpush1.bf16.msra.mxu1 %v10462_v33  ;;  %v1051_v32 = vld [vmem:[#allocation5 + $0x1ca8] sm:$0xff]  ;;  %v10508_v33 = vcombine.low %v1038_v14, %v1042_v16  ;;  %v1086_v14 = vld [vmem:[#allocation5 + $0x1dc0] sm:$0xff] }
 0x221   :  { %6590 = vmatprep.subr.bf16.mxu0 %v10469_v34  ;;  %6918 = vmatprep.subr.bf16.mxu1 %v10471_v36  ;;  %v10510_v34 = vcombine.low %v1039_v18, %v1043_v19  ;;  %v10517_v36 = vcombine.high %v1046_v28, %v1050_v29  ;;  %v10519_v37 = vcombine.high %v1047_v31, %v1051_v32  ;;  %v1090_v16 = vld [vmem:[#allocation5 + $0x1de0] sm:$0xff]  ;;  %v1087_v18 = vld [vmem:[#allocation5 + $0x1dc8] sm:$0xff] }
 0x222   :  { %v1091_v19 = vld [vmem:[#allocation5 + $0x1de8] sm:$0xff] }
 0x224   :  { %6591 = vmatpush1.bf16.msra.mxu0 %v10468_v42  ;;  %6919 = vmatpush1.bf16.msra.mxu1 %v10470_v43  ;;  %v1059_v42 = vld [vmem:[#allocation5 + $0x1ce8] sm:$0xff]  ;;  %v10516_v43 = vcombine.low %v1046_v28, %v1050_v29  ;;  %v1098_v28 = vld [vmem:[#allocation5 + $0x1e20] sm:$0xff] }
 0x225   :  { %6592 = vmatprep.subr.bf16.mxu0 %v10477_v44  ;;  %6920 = vmatprep.subr.bf16.mxu1 %v10479_v46  ;;  %v10518_v44 = vcombine.low %v1047_v31, %v1051_v32  ;;  %v10525_v46 = vcombine.high %v1054_v38, %v1058_v39  ;;  %v10527_v47 = vcombine.high %v1055_v41, %v1059_v42  ;;  %v1095_v29 = vld [vmem:[#allocation5 + $0x1e08] sm:$0xff] }
 0x226   :  { %v1099_v31 = vld [vmem:[#allocation5 + $0x1e28] sm:$0xff]  ;;  %v10556_v32 = vcombine.low %v1086_v14, %v1090_v16 }
 0x228   :  { %6593 = vmatpush1.bf16.msra.mxu0 %v10476_v52  ;;  %6921 = vmatpush1.bf16.msra.mxu1 %v10478_v53  ;;  %v1067_v52 = vld [vmem:[#allocation5 + $0x1d28] sm:$0xff]  ;;  %v10524_v53 = vcombine.low %v1054_v38, %v1058_v39  ;;  %v1106_v38 = vld [vmem:[#allocation5 + $0x1e60] sm:$0xff] }
 0x229   :  { %6594 = vmatprep.subr.bf16.mxu0 %v10485_v54  ;;  %6922 = vmatprep.subr.bf16.mxu1 %v10487_v56  ;;  %v10526_v54 = vcombine.low %v1055_v41, %v1059_v42  ;;  %v10533_v56 = vcombine.high %v1062_v48, %v1066_v50  ;;  %v10535_v59 = vcombine.high %v1063_v51, %v1067_v52  ;;  %v1103_v39 = vld [vmem:[#allocation5 + $0x1e48] sm:$0xff] }
 0x22a   :  { %v1107_v41 = vld [vmem:[#allocation5 + $0x1e68] sm:$0xff] }
 0x22c   :  { %6595 = vmatpush1.bf16.msra.mxu0 %v10484_v63  ;;  %6923 = vmatpush1.bf16.msra.mxu1 %v10486_v0  ;;  %v1075_v63 = vld [vmem:[#allocation5 + $0x1d68] sm:$0xff]  ;;  %v10532_v0 = vcombine.low %v1062_v48, %v1066_v50  ;;  %v1114_v48 = vld [vmem:[#allocation5 + $0x1ea0] sm:$0xff] }
 0x22d   :  { %6596 = vmatprep.subr.bf16.mxu0 %v10493_v1  ;;  %6924 = vmatprep.subr.bf16.mxu1 %v10495_v3  ;;  %v10534_v1 = vcombine.low %v1063_v51, %v1067_v52  ;;  %v10541_v3 = vcombine.high %v1070_v60, %v1074_v61  ;;  %v10543_v4 = vcombine.high %v1071_v62, %v1075_v63  ;;  %v1111_v50 = vld [vmem:[#allocation5 + $0x1e88] sm:$0xff]  ;;  %v1122_v60 = vld [vmem:[#allocation5 + $0x1ee0] sm:$0xff] }
 0x22e   :  { %v1115_v51 = vld [vmem:[#allocation5 + $0x1ea8] sm:$0xff] }
 0x22f   :  { %v1119_v61 = vld [vmem:[#allocation5 + $0x1ec8] sm:$0xff] }
 0x230   :  { %6597 = vmatpush1.bf16.msra.mxu0 %v10492_v8  ;;  %6925 = vmatpush1.bf16.msra.mxu1 %v10494_v10  ;;  %v1083_v8 = vld [vmem:[#allocation5 + $0x1da8] sm:$0xff]  ;;  %v10542_v10 = vcombine.low %v1071_v62, %v1075_v63 }
 0x231   :  { %6607 = vmatprep.subr.bf16.mxu0 %v10501_v11  ;;  %6935 = vmatprep.subr.bf16.mxu1 %v10503_v12  ;;  %v10549_v11 = vcombine.high %v1078_v5, %v1082_v6  ;;  %v10551_v12 = vcombine.high %v1079_v7, %v1083_v8  ;;  %v1123_v62 = vld [vmem:[#allocation5 + $0x1ee8] sm:$0xff]  ;;  %v1130_v5 = vld [vmem:[#allocation5 + $0x1f20] sm:$0xff] }
 0x232   :  { %v1127_v6 = vld [vmem:[#allocation5 + $0x1f08] sm:$0xff] }
 0x233   :  { %6599 = vmatmul.mubr.bf16.vlgmr.msra.gmra.mrb[0].mxu0 %v11745_v17  ;;  %6927 = vmatmul.mubr.bf16.vlgmr.msra.gmra.mrb[0].mxu1 %v11745_v17 }
 0x234   :  { %6608 = vmatpush1.bf16.msra.mxu0 %v10500_v21  ;;  %6936 = vmatpush1.bf16.msra.mxu1 %v10502_v22  ;;  %v10550_v21 = vcombine.low %v1079_v7, %v1083_v8  ;;  %v10557_v22 = vcombine.high %v1086_v14, %v1090_v16  ;;  %v1131_v7 = vld [vmem:[#allocation5 + $0x1f28] sm:$0xff]  ;;  %v1138_v14 = vld [vmem:[#allocation5 + $0x1f60] sm:$0xff] }
 0x235   :  { %6609 = vmatprep.subr.bf16.mxu0 %v10509_v23  ;;  %6937 = vmatprep.subr.bf16.mxu1 %v10511_v25  ;;  %v10559_v23 = vcombine.high %v1087_v18, %v1091_v19  ;;  %v1094_v25 = vld [vmem:[#allocation5 + $0x1e00] sm:$0xff]  ;;  %v1135_v16 = vld [vmem:[#allocation5 + $0x1f48] sm:$0xff] }
 0x236   :  { %6639 = vmatprep.mubr.bf16.mxu0 %v11747_v30  ;;  %6967 = vmatprep.mubr.bf16.mxu1 %v11747_v30  ;;  %v10564_v42 = vcombine.low %v1094_v25, %v1098_v28 }
 0x238   :  { %6610 = vmatpush1.bf16.msra.mxu0 %v10508_v33  ;;  %6938 = vmatpush1.bf16.msra.mxu1 %v10510_v34  ;;  %v10558_v33 = vcombine.low %v1087_v18, %v1091_v19  ;;  %v10565_v34 = vcombine.high %v1094_v25, %v1098_v28  ;;  %v1139_v18 = vld [vmem:[#allocation5 + $0x1f68] sm:$0xff]  ;;  %v1146_v25 = vld [vmem:[#allocation5 + $0x1fa0] sm:$0xff] }
 0x239   :  { %6611 = vmatprep.subr.bf16.mxu0 %v10517_v36  ;;  %6939 = vmatprep.subr.bf16.mxu1 %v10519_v37  ;;  %v10567_v36 = vcombine.high %v1095_v29, %v1099_v31  ;;  %v1102_v37 = vld [vmem:[#allocation5 + $0x1e40] sm:$0xff]  ;;  %v1143_v28 = vld [vmem:[#allocation5 + $0x1f88] sm:$0xff] }
 0x23a   :  { %v10572_v52 = vcombine.low %v1102_v37, %v1106_v38 }
 0x23c   :  { %6612 = vmatpush1.bf16.msra.mxu0 %v10516_v43  ;;  %6940 = vmatpush1.bf16.msra.mxu1 %v10518_v44  ;;  %v10566_v43 = vcombine.low %v1095_v29, %v1099_v31  ;;  %v10573_v44 = vcombine.high %v1102_v37, %v1106_v38  ;;  %v1147_v29 = vld [vmem:[#allocation5 + $0x1fa8] sm:$0xff]  ;;  %v1154_v37 = vld [vmem:[#allocation5 + $0x1fe0] sm:$0xff] }
 0x23d   :  { %6613 = vmatprep.subr.bf16.mxu0 %v10525_v46  ;;  %6941 = vmatprep.subr.bf16.mxu1 %v10527_v47  ;;  %v10575_v46 = vcombine.high %v1103_v39, %v1107_v41  ;;  %v1110_v47 = vld [vmem:[#allocation5 + $0x1e80] sm:$0xff]  ;;  %v1151_v38 = vld [vmem:[#allocation5 + $0x1fc8] sm:$0xff] }
 0x23e   :  { %v10580_v63 = vcombine.low %v1110_v47, %v1114_v48 }
 0x240   :  { %6614 = vmatpush1.bf16.msra.mxu0 %v10524_v53  ;;  %6942 = vmatpush1.bf16.msra.mxu1 %v10526_v54  ;;  %v10574_v53 = vcombine.low %v1103_v39, %v1107_v41  ;;  %v10581_v54 = vcombine.high %v1110_v47, %v1114_v48  ;;  %v1155_v39 = vld [vmem:[#allocation5 + $0x1fe8] sm:$0xff]  ;;  %v140_v47 = vld [vmem:[#allocation5 + $0x30] sm:$0xff]  ;;  %v137_v48 = vld [vmem:[#allocation5 + $0x18] sm:$0xff] }
 0x241   :  { %6615 = vmatprep.subr.bf16.mxu0 %v10533_v56  ;;  %6943 = vmatprep.subr.bf16.mxu1 %v10535_v59  ;;  %v10583_v56 = vcombine.high %v1111_v50, %v1115_v51  ;;  %v1118_v59 = vld [vmem:[#allocation5 + $0x1ec0] sm:$0xff] }
 0x242   :  { %v10588_v8 = vcombine.low %v1118_v59, %v1122_v60 }
 0x244   :  { %6616 = vmatpush1.bf16.msra.mxu0 %v10532_v0  ;;  %6944 = vmatpush1.bf16.msra.mxu1 %v10534_v1  ;;  %v10582_v0 = vcombine.low %v1111_v50, %v1115_v51  ;;  %v10589_v1 = vcombine.high %v1118_v59, %v1122_v60  ;;  %v141_v50 = vld [vmem:[#allocation5 + $0x38] sm:$0xff]  ;;  %v144_v59 = vld [vmem:[#allocation5 + $0x50] sm:$0xff] }
 0x245   :  { %6617 = vmatprep.subr.bf16.mxu0 %v10541_v3  ;;  %6945 = vmatprep.subr.bf16.mxu1 %v10543_v4  ;;  %v10591_v3 = vcombine.high %v1119_v61, %v1123_v62  ;;  %v1126_v4 = vld [vmem:[#allocation5 + $0x1f00] sm:$0xff]  ;;  %v148_v60 = vld [vmem:[#allocation5 + $0x70] sm:$0xff] }
 0x246   :  { %v10596_v19 = vcombine.low %v1126_v4, %v1130_v5 }
 0x248   :  { %6618 = vmatpush1.bf16.msra.mxu0 %v10540_v9  ;;  %6946 = vmatpush1.bf16.msra.mxu1 %v10542_v10  ;;  %v10590_v9 = vcombine.low %v1119_v61, %v1123_v62  ;;  %v10597_v10 = vcombine.high %v1126_v4, %v1130_v5  ;;  %v145_v62 = vld [vmem:[#allocation5 + $0x58] sm:$0xff]  ;;  %v152_v5 = vld [vmem:[#allocation5 + $0x90] sm:$0xff] }
 0x249   :  { %6619 = vmatprep.subr.bf16.mxu0 %v10549_v11  ;;  %6947 = vmatprep.subr.bf16.mxu1 %v10551_v12  ;;  %v10599_v11 = vcombine.high %v1127_v6, %v1131_v7  ;;  %v1134_v12 = vld [vmem:[#allocation5 + $0x1f40] sm:$0xff] }
 0x24a   :  { %v10604_v31 = vcombine.low %v1134_v12, %v1138_v14 }
 0x24c   :  { %6620 = vmatpush1.bf16.msra.mxu0 %v10548_v20  ;;  %6948 = vmatpush1.bf16.msra.mxu1 %v10550_v21  ;;  %v10598_v20 = vcombine.low %v1127_v6, %v1131_v7  ;;  %v10605_v21 = vcombine.high %v1134_v12, %v1138_v14  ;;  %v156_v6 = vld [vmem:[#allocation5 + $0xb0] sm:$0xff]  ;;  %v153_v7 = vld [vmem:[#allocation5 + $0x98] sm:$0xff] }
 0x24d   :  { %6621 = vmatprep.subr.bf16.mxu0 %v10557_v22  ;;  %6949 = vmatprep.subr.bf16.mxu1 %v10559_v23  ;;  %v10607_v22 = vcombine.high %v1135_v16, %v1139_v18  ;;  %v1142_v23 = vld [vmem:[#allocation5 + $0x1f80] sm:$0xff]  ;;  %v160_v14 = vld [vmem:[#allocation5 + $0xd0] sm:$0xff] }
 0x24e   :  { %v10612_v41 = vcombine.low %v1142_v23, %v1146_v25 }
 0x250   :  { %6622 = vmatpush1.bf16.msra.mxu0 %v10556_v32  ;;  %6950 = vmatpush1.bf16.msra.mxu1 %v10558_v33  ;;  %v10606_v32 = vcombine.low %v1135_v16, %v1139_v18  ;;  %v10613_v33 = vcombine.high %v1142_v23, %v1146_v25  ;;  %v164_v16 = vld [vmem:[#allocation5 + $0xf0] sm:$0xff]  ;;  %v161_v18 = vld [vmem:[#allocation5 + $0xd8] sm:$0xff] }
 0x251   :  { %6623 = vmatprep.subr.bf16.mxu0 %v10565_v34  ;;  %6951 = vmatprep.subr.bf16.mxu1 %v10567_v36  ;;  %v10615_v34 = vcombine.high %v1143_v28, %v1147_v29  ;;  %v1150_v36 = vld [vmem:[#allocation5 + $0x1fc0] sm:$0xff]  ;;  %v168_v25 = vld [vmem:[#allocation5 + $0x110] sm:$0xff] }
 0x252   :  { %v10620_v51 = vcombine.low %v1150_v36, %v1154_v37 }
 0x254   :  { %6624 = vmatpush1.bf16.msra.mxu0 %v10564_v42  ;;  %6952 = vmatpush1.bf16.msra.mxu1 %v10566_v43  ;;  %v10614_v42 = vcombine.low %v1143_v28, %v1147_v29  ;;  %v10621_v43 = vcombine.high %v1150_v36, %v1154_v37  ;;  %v172_v28 = vld [vmem:[#allocation5 + $0x130] sm:$0xff]  ;;  %v169_v29 = vld [vmem:[#allocation5 + $0x118] sm:$0xff] }
 0x255   :  { %6625 = vmatprep.subr.bf16.mxu0 %v10573_v44  ;;  %6953 = vmatprep.subr.bf16.mxu1 %v10575_v46  ;;  %v10623_v44 = vcombine.high %v1151_v38, %v1155_v39  ;;  %v136_v46 = vld [vmem:[#allocation5 + $0x10] sm:$0xff] }
 0x256   :  { %v176_v36 = vld [vmem:[#allocation5 + $0x150] sm:$0xff] }
 0x257   :  { %v180_v37 = vld [vmem:[#allocation5 + $0x170] sm:$0xff] }
 0x258   :  { %6626 = vmatpush1.bf16.msra.mxu0 %v10572_v52  ;;  %6954 = vmatpush1.bf16.msra.mxu1 %v10574_v53  ;;  %v116_v52 = vld [vmem:[#allocation3 + $0x70] sm:$0xff]  ;;  %v10622_v53 = vcombine.low %v1151_v38, %v1155_v39  ;;  %v177_v38 = vld [vmem:[#allocation5 + $0x158] sm:$0xff] }
 0x259   :  { %6627 = vmatprep.subr.bf16.mxu0 %v10581_v54  ;;  %6955 = vmatprep.subr.bf16.mxu1 %v10583_v56  ;;  %v9609_v54 = vcombine.high %v136_v46, %v140_v47  ;;  %v9611_v56 = vcombine.high %v137_v48, %v141_v50  ;;  %v11753_v61 = vpack.c.bf16 %v116_v52, %v116_v52  ;;  %v181_v39 = vld [vmem:[#allocation5 + $0x178] sm:$0xff] }
 0x25a   :  { %v9650_v52 = vcombine.low %v177_v38, %v181_v39 }
 0x25c   :  { %6628 = vmatpush1.bf16.msra.mxu0 %v10580_v63  ;;  %6956 = vmatpush1.bf16.msra.mxu1 %v10582_v0  ;;  %v149_v63 = vld [vmem:[#allocation5 + $0x78] sm:$0xff]  ;;  %v9608_v0 = vcombine.low %v136_v46, %v140_v47  ;;  %v184_v46 = vld [vmem:[#allocation5 + $0x190] sm:$0xff] }
 0x25d   :  { %6629 = vmatprep.subr.bf16.mxu0 %v10589_v1  ;;  %6957 = vmatprep.subr.bf16.mxu1 %v10591_v3  ;;  %v9610_v1 = vcombine.low %v137_v48, %v141_v50  ;;  %v9617_v3 = vcombine.high %v144_v59, %v148_v60  ;;  %v9619_v4 = vcombine.high %v145_v62, %v149_v63  ;;  %v188_v47 = vld [vmem:[#allocation5 + $0x1b0] sm:$0xff]  ;;  %v185_v48 = vld [vmem:[#allocation5 + $0x198] sm:$0xff] }
 0x25e   :  { %v189_v50 = vld [vmem:[#allocation5 + $0x1b8] sm:$0xff] }
 0x260   :  { %6630 = vmatpush1.bf16.msra.mxu0 %v10588_v8  ;;  %6958 = vmatpush1.bf16.msra.mxu1 %v10590_v9  ;;  %v157_v8 = vld [vmem:[#allocation5 + $0xb8] sm:$0xff]  ;;  %v9616_v9 = vcombine.low %v144_v59, %v148_v60  ;;  %v196_v59 = vld [vmem:[#allocation5 + $0x1f0] sm:$0xff] }
 0x261   :  { %6631 = vmatprep.subr.bf16.mxu0 %v10597_v10  ;;  %6959 = vmatprep.subr.bf16.mxu1 %v10599_v11  ;;  %v9618_v10 = vcombine.low %v145_v62, %v149_v63  ;;  %v9625_v11 = vcombine.high %v152_v5, %v156_v6  ;;  %v9627_v12 = vcombine.high %v153_v7, %v157_v8  ;;  %v193_v60 = vld [vmem:[#allocation5 + $0x1d8] sm:$0xff] }
 0x262   :  { %v197_v62 = vld [vmem:[#allocation5 + $0x1f8] sm:$0xff]  ;;  %v9656_v63 = vcombine.low %v184_v46, %v188_v47 }
 0x264   :  { %6632 = vmatpush1.bf16.msra.mxu0 %v10596_v19  ;;  %6960 = vmatpush1.bf16.msra.mxu1 %v10598_v20  ;;  %v165_v19 = vld [vmem:[#allocation5 + $0xf8] sm:$0xff]  ;;  %v9624_v20 = vcombine.low %v152_v5, %v156_v6  ;;  %v204_v5 = vld [vmem:[#allocation5 + $0x230] sm:$0xff] }
 0x265   :  { %6633 = vmatprep.subr.bf16.mxu0 %v10605_v21  ;;  %6961 = vmatprep.subr.bf16.mxu1 %v10607_v22  ;;  %v9626_v21 = vcombine.low %v153_v7, %v157_v8  ;;  %v9633_v22 = vcombine.high %v160_v14, %v164_v16  ;;  %v9635_v23 = vcombine.high %v161_v18, %v165_v19  ;;  %v201_v6 = vld [vmem:[#allocation5 + $0x218] sm:$0xff] }
 0x266   :  { %v205_v7 = vld [vmem:[#allocation5 + $0x238] sm:$0xff] }
 0x268   :  { %6634 = vmatpush1.bf16.msra.mxu0 %v10604_v31  ;;  %6962 = vmatpush1.bf16.msra.mxu1 %v10606_v32  ;;  %v173_v31 = vld [vmem:[#allocation5 + $0x138] sm:$0xff]  ;;  %v9632_v32 = vcombine.low %v160_v14, %v164_v16  ;;  %v212_v14 = vld [vmem:[#allocation5 + $0x270] sm:$0xff] }
 0x269   :  { %6635 = vmatprep.subr.bf16.mxu0 %v10613_v33  ;;  %6963 = vmatprep.subr.bf16.mxu1 %v10615_v34  ;;  %v9634_v33 = vcombine.low %v161_v18, %v165_v19  ;;  %v9641_v34 = vcombine.high %v168_v25, %v172_v28  ;;  %v209_v16 = vld [vmem:[#allocation5 + $0x258] sm:$0xff] }
 0x26a   :  { %v213_v18 = vld [vmem:[#allocation5 + $0x278] sm:$0xff] }
 0x26c   :  { %6636 = vmatpush1.bf16.msra.mxu0 %v10612_v41  ;;  %6964 = vmatpush1.bf16.msra.mxu1 %v10614_v42  ;;  %v9640_v41 = vcombine.low %v168_v25, %v172_v28  ;;  %v9642_v42 = vcombine.low %v169_v29, %v173_v31  ;;  %v220_v25 = vld [vmem:[#allocation5 + $0x2b0] sm:$0xff]  ;;  %v217_v28 = vld [vmem:[#allocation5 + $0x298] sm:$0xff] }
 0x26d   :  { %6637 = vmatprep.subr.bf16.mxu0 %v10621_v43  ;;  %6965 = vmatprep.subr.bf16.mxu1 %v10623_v44  ;;  %v9649_v43 = vcombine.high %v176_v36, %v180_v37  ;;  %v9651_v44 = vcombine.high %v177_v38, %v181_v39  ;;  %v229_v38 = vld [vmem:[#allocation5 + $0x2f8] sm:$0xff] }
 0x270   :  { %6638 = vmatpush1.bf16.msra.mxu0 %v10620_v51  ;;  %6966 = vmatpush1.bf16.msra.mxu1 %v10622_v53  ;;  %v9648_v51 = vcombine.low %v176_v36, %v180_v37  ;;  %v9657_v53 = vcombine.high %v184_v46, %v188_v47  ;;  %v228_v36 = vld [vmem:[#allocation5 + $0x2f0] sm:$0xff]  ;;  %v225_v37 = vld [vmem:[#allocation5 + $0x2d8] sm:$0xff] }
 0x271   :  { %6976 = vmatprep.subr.bf16.mxu0 %v9609_v54  ;;  %7304 = vmatprep.subr.bf16.mxu1 %v9611_v56  ;;  %v9659_v54 = vcombine.high %v185_v48, %v189_v50  ;;  %v192_v56 = vld [vmem:[#allocation5 + $0x1d0] sm:$0xff]  ;;  %v233_v47 = vld [vmem:[#allocation5 + $0x318] sm:$0xff] }
 0x272   :  { %v9664_v8 = vcombine.low %v192_v56, %v196_v59  ;;  %v236_v46 = vld [vmem:[#allocation5 + $0x330] sm:$0xff] }
 0x273   :  { %6640 = vmatmul.mubr.bf16.vlgmr.msra.gmra.mrb[0].mxu0 %v11753_v61  ;;  %6968 = vmatmul.mubr.bf16.vlgmr.msra.gmra.mrb[0].mxu1 %v11753_v61 }
 0x274   :  { %6977 = vmatpush1.bf16.msra.mxu0 %v9608_v0  ;;  %7305 = vmatpush1.bf16.msra.mxu1 %v9610_v1  ;;  %v9658_v0 = vcombine.low %v185_v48, %v189_v50  ;;  %v9665_v1 = vcombine.high %v192_v56, %v196_v59  ;;  %v237_v48 = vld [vmem:[#allocation5 + $0x338] sm:$0xff]  ;;  %v244_v56 = vld [vmem:[#allocation5 + $0x370] sm:$0xff] }
 0x275   :  { %6978 = vmatprep.subr.bf16.mxu0 %v9617_v3  ;;  %7306 = vmatprep.subr.bf16.mxu1 %v9619_v4  ;;  %v9667_v3 = vcombine.high %v193_v60, %v197_v62  ;;  %v200_v4 = vld [vmem:[#allocation5 + $0x210] sm:$0xff]  ;;  %v241_v59 = vld [vmem:[#allocation5 + $0x358] sm:$0xff] }
 0x276   :  { %7008 = vmatprep.mubr.bf16.mxu0 %v11693_v58  ;;  %7336 = vmatprep.mubr.bf16.mxu1 %v11693_v58  ;;  %v9643_v58 = vcombine.high %v169_v29, %v173_v31  ;;  %v9672_v19 = vcombine.low %v200_v4, %v204_v5  ;;  %v221_v29 = vld [vmem:[#allocation5 + $0x2b8] sm:$0xff] }
 0x278   :  { %6979 = vmatpush1.bf16.msra.mxu0 %v9616_v9  ;;  %7307 = vmatpush1.bf16.msra.mxu1 %v9618_v10  ;;  %v9666_v9 = vcombine.low %v193_v60, %v197_v62  ;;  %v9673_v10 = vcombine.high %v200_v4, %v204_v5  ;;  %v245_v60 = vld [vmem:[#allocation5 + $0x378] sm:$0xff]  ;;  %v252_v4 = vld [vmem:[#allocation5 + $0x3b0] sm:$0xff] }
 0x279   :  { %6980 = vmatprep.subr.bf16.mxu0 %v9625_v11  ;;  %7308 = vmatprep.subr.bf16.mxu1 %v9627_v12  ;;  %v9675_v11 = vcombine.high %v201_v6, %v205_v7  ;;  %v208_v12 = vld [vmem:[#allocation5 + $0x250] sm:$0xff]  ;;  %v249_v5 = vld [vmem:[#allocation5 + $0x398] sm:$0xff] }
 0x27a   :  { %v9680_v31 = vcombine.low %v208_v12, %v212_v14 }
 0x27c   :  { %6981 = vmatpush1.bf16.msra.mxu0 %v9624_v20  ;;  %7309 = vmatpush1.bf16.msra.mxu1 %v9626_v21  ;;  %v9674_v20 = vcombine.low %v201_v6, %v205_v7  ;;  %v9681_v21 = vcombine.high %v208_v12, %v212_v14  ;;  %v253_v6 = vld [vmem:[#allocation5 + $0x3b8] sm:$0xff]  ;;  %v260_v12 = vld [vmem:[#allocation5 + $0x3f0] sm:$0xff] }
 0x27d   :  { %6982 = vmatprep.subr.bf16.mxu0 %v9633_v22  ;;  %7310 = vmatprep.subr.bf16.mxu1 %v9635_v23  ;;  %v9683_v22 = vcombine.high %v209_v16, %v213_v18  ;;  %v216_v23 = vld [vmem:[#allocation5 + $0x290] sm:$0xff]  ;;  %v257_v14 = vld [vmem:[#allocation5 + $0x3d8] sm:$0xff] }
 0x27e   :  { %v9688_v39 = vcombine.low %v216_v23, %v220_v25 }
 0x280   :  { %6983 = vmatpush1.bf16.msra.mxu0 %v9632_v32  ;;  %7311 = vmatpush1.bf16.msra.mxu1 %v9634_v33  ;;  %v9682_v32 = vcombine.low %v209_v16, %v213_v18  ;;  %v9689_v33 = vcombine.high %v216_v23, %v220_v25  ;;  %v261_v16 = vld [vmem:[#allocation5 + $0x3f8] sm:$0xff]  ;;  %v268_v23 = vld [vmem:[#allocation5 + $0x430] sm:$0xff] }
 0x281   :  { %6984 = vmatprep.subr.bf16.mxu0 %v9641_v34  ;;  %7312 = vmatprep.subr.bf16.mxu1 %v9643_v58  ;;  %v9691_v34 = vcombine.high %v217_v28, %v221_v29  ;;  %v224_v58 = vld [vmem:[#allocation5 + $0x2d0] sm:$0xff]  ;;  %v265_v25 = vld [vmem:[#allocation5 + $0x418] sm:$0xff] }
 0x282   :  { %v9696_v50 = vcombine.low %v224_v58, %v228_v36 }
 0x284   :  { %6985 = vmatpush1.bf16.msra.mxu0 %v9640_v41  ;;  %7313 = vmatpush1.bf16.msra.mxu1 %v9642_v42  ;;  %v9690_v41 = vcombine.low %v217_v28, %v221_v29  ;;  %v9697_v42 = vcombine.high %v224_v58, %v228_v36  ;;  %v269_v28 = vld [vmem:[#allocation5 + $0x438] sm:$0xff]  ;;  %v276_v58 = vld [vmem:[#allocation5 + $0x470] sm:$0xff] }
 0x285   :  { %6986 = vmatprep.subr.bf16.mxu0 %v9649_v43  ;;  %7314 = vmatprep.subr.bf16.mxu1 %v9651_v44  ;;  %v9699_v43 = vcombine.high %v225_v37, %v229_v38  ;;  %v232_v44 = vld [vmem:[#allocation5 + $0x310] sm:$0xff]  ;;  %v273_v36 = vld [vmem:[#allocation5 + $0x458] sm:$0xff] }
 0x286   :  { %v9704_v62 = vcombine.low %v232_v44, %v236_v46 }
 0x288   :  { %6987 = vmatpush1.bf16.msra.mxu0 %v9648_v51  ;;  %7315 = vmatpush1.bf16.msra.mxu1 %v9650_v52  ;;  %v9698_v51 = vcombine.low %v225_v37, %v229_v38  ;;  %v9705_v52 = vcombine.high %v232_v44, %v236_v46  ;;  %v277_v37 = vld [vmem:[#allocation5 + $0x478] sm:$0xff]  ;;  %v284_v44 = vld [vmem:[#allocation5 + $0x4b0] sm:$0xff] }
 0x289   :  { %6988 = vmatprep.subr.bf16.mxu0 %v9657_v53  ;;  %7316 = vmatprep.subr.bf16.mxu1 %v9659_v54  ;;  %v9707_v53 = vcombine.high %v233_v47, %v237_v48  ;;  %v240_v54 = vld [vmem:[#allocation5 + $0x350] sm:$0xff]  ;;  %v281_v46 = vld [vmem:[#allocation5 + $0x498] sm:$0xff] }
 0x28a   :  { %v9712_v7 = vcombine.low %v240_v54, %v244_v56 }
 0x28c   :  { %6989 = vmatpush1.bf16.msra.mxu0 %v9656_v63  ;;  %7317 = vmatpush1.bf16.msra.mxu1 %v9658_v0  ;;  %v9706_v63 = vcombine.low %v233_v47, %v237_v48  ;;  %v9713_v0 = vcombine.high %v240_v54, %v244_v56  ;;  %v285_v47 = vld [vmem:[#allocation5 + $0x4b8] sm:$0xff]  ;;  %v292_v54 = vld [vmem:[#allocation5 + $0x4f0] sm:$0xff] }
 0x28d   :  { %6990 = vmatprep.subr.bf16.mxu0 %v9665_v1  ;;  %7318 = vmatprep.subr.bf16.mxu1 %v9667_v3  ;;  %v9715_v1 = vcombine.high %v241_v59, %v245_v60  ;;  %v248_v3 = vld [vmem:[#allocation5 + $0x390] sm:$0xff]  ;;  %v289_v56 = vld [vmem:[#allocation5 + $0x4d8] sm:$0xff] }
 0x28e   :  { %v9720_v18 = vcombine.low %v248_v3, %v252_v4 }
 0x290   :  { %6991 = vmatpush1.bf16.msra.mxu0 %v9664_v8  ;;  %7319 = vmatpush1.bf16.msra.mxu1 %v9666_v9  ;;  %v9714_v8 = vcombine.low %v241_v59, %v245_v60  ;;  %v9721_v9 = vcombine.high %v248_v3, %v252_v4  ;;  %v293_v59 = vld [vmem:[#allocation5 + $0x4f8] sm:$0xff] }
 0x291   :  { %6992 = vmatprep.subr.bf16.mxu0 %v9673_v10  ;;  %7320 = vmatprep.subr.bf16.mxu1 %v9675_v11  ;;  %v9723_v10 = vcombine.high %v249_v5, %v253_v6  ;;  %v256_v11 = vld [vmem:[#allocation5 + $0x3d0] sm:$0xff]  ;;  %v297_v3 = vld [vmem:[#allocation5 + $0x518] sm:$0xff] }
 0x292   :  { %v9728_v29 = vcombine.low %v256_v11, %v260_v12  ;;  %v301_v4 = vld [vmem:[#allocation5 + $0x538] sm:$0xff] }
 0x294   :  { %6993 = vmatpush1.bf16.msra.mxu0 %v9672_v19  ;;  %7321 = vmatpush1.bf16.msra.mxu1 %v9674_v20  ;;  %v9722_v19 = vcombine.low %v249_v5, %v253_v6  ;;  %v9729_v20 = vcombine.high %v256_v11, %v260_v12  ;;  %v9762_v6 = vcombine.low %v289_v56, %v293_v59  ;;  %v309_v11 = vld [vmem:[#allocation5 + $0x578] sm:$0xff] }
 0x295   :  { %6994 = vmatprep.subr.bf16.mxu0 %v9681_v21  ;;  %7322 = vmatprep.subr.bf16.mxu1 %v9683_v22  ;;  %v9731_v21 = vcombine.high %v257_v14, %v261_v16  ;;  %v264_v22 = vld [vmem:[#allocation5 + $0x410] sm:$0xff] }
 0x296   :  { %v9736_v38 = vcombine.low %v264_v22, %v268_v23 }
 0x298   :  { %6995 = vmatpush1.bf16.msra.mxu0 %v9680_v31  ;;  %7323 = vmatpush1.bf16.msra.mxu1 %v9682_v32  ;;  %v9730_v31 = vcombine.low %v257_v14, %v261_v16  ;;  %v9737_v32 = vcombine.high %v264_v22, %v268_v23  ;;  %v9770_v14 = vcombine.low %v297_v3, %v301_v4  ;;  %v317_v22 = vld [vmem:[#allocation5 + $0x5b8] sm:$0xff] }
 0x299   :  { %6996 = vmatprep.subr.bf16.mxu0 %v9689_v33  ;;  %7324 = vmatprep.subr.bf16.mxu1 %v9691_v34  ;;  %v9739_v33 = vcombine.high %v265_v25, %v269_v28  ;;  %v272_v34 = vld [vmem:[#allocation5 + $0x450] sm:$0xff] }
 0x29a   :  { %v9744_v48 = vcombine.low %v272_v34, %v276_v58 }
 0x29c   :  { %6997 = vmatpush1.bf16.msra.mxu0 %v9688_v39  ;;  %7325 = vmatpush1.bf16.msra.mxu1 %v9690_v41  ;;  %v9738_v39 = vcombine.low %v265_v25, %v269_v28  ;;  %v9745_v41 = vcombine.high %v272_v34, %v276_v58  ;;  %v325_v34 = vld [vmem:[#allocation5 + $0x5f8] sm:$0xff] }
 0x29d   :  { %6998 = vmatprep.subr.bf16.mxu0 %v9697_v42  ;;  %7326 = vmatprep.subr.bf16.mxu1 %v9699_v43  ;;  %v9747_v42 = vcombine.high %v273_v36, %v277_v37  ;;  %v280_v43 = vld [vmem:[#allocation5 + $0x490] sm:$0xff] }
 0x29e   :  { %v9752_v60 = vcombine.low %v280_v43, %v284_v44 }
 0x2a0   :  { %6999 = vmatpush1.bf16.msra.mxu0 %v9696_v50  ;;  %7327 = vmatpush1.bf16.msra.mxu1 %v9698_v51  ;;  %v9746_v50 = vcombine.low %v273_v36, %v277_v37  ;;  %v9753_v51 = vcombine.high %v280_v43, %v284_v44  ;;  %v333_v43 = vld [vmem:[#allocation5 + $0x638] sm:$0xff] }
 0x2a1   :  { %7000 = vmatprep.subr.bf16.mxu0 %v9705_v52  ;;  %7328 = vmatprep.subr.bf16.mxu1 %v9707_v53  ;;  %v9755_v52 = vcombine.high %v281_v46, %v285_v47  ;;  %v288_v53 = vld [vmem:[#allocation5 + $0x4d0] sm:$0xff] }
 0x2a2   :  { %v9760_v5 = vcombine.low %v288_v53, %v292_v54 }
 0x2a4   :  { %7001 = vmatpush1.bf16.msra.mxu0 %v9704_v62  ;;  %7329 = vmatpush1.bf16.msra.mxu1 %v9706_v63  ;;  %v9761_v62 = vcombine.high %v288_v53, %v292_v54  ;;  %v9763_v63 = vcombine.high %v289_v56, %v293_v59  ;;  %v341_v53 = vld [vmem:[#allocation5 + $0x678] sm:$0xff] }
 0x2a5   :  { %7002 = vmatprep.subr.bf16.mxu0 %v9713_v0  ;;  %7330 = vmatprep.subr.bf16.mxu1 %v9715_v1  ;;  %v296_v0 = vld [vmem:[#allocation5 + $0x510] sm:$0xff] }
 0x2a6   :  { %v300_v1 = vld [vmem:[#allocation5 + $0x530] sm:$0xff] }
 0x2a7   :  { %v9768_v12 = vcombine.low %v296_v0, %v300_v1 }
 0x2a8   :  { %7003 = vmatpush1.bf16.msra.mxu0 %v9712_v7  ;;  %7331 = vmatpush1.bf16.msra.mxu1 %v9714_v8  ;;  %v9769_v7 = vcombine.high %v296_v0, %v300_v1  ;;  %v304_v8 = vld [vmem:[#allocation5 + $0x550] sm:$0xff]  ;;  %v349_v0 = vld [vmem:[#allocation5 + $0x6b8] sm:$0xff] }
 0x2a9   :  { %7004 = vmatprep.subr.bf16.mxu0 %v9721_v9  ;;  %7332 = vmatprep.subr.bf16.mxu1 %v9723_v10  ;;  %v308_v9 = vld [vmem:[#allocation5 + $0x570] sm:$0xff]  ;;  %v305_v10 = vld [vmem:[#allocation5 + $0x558] sm:$0xff] }
 0x2aa   :  { %v9777_v16 = vcombine.high %v304_v8, %v308_v9  ;;  %v9776_v23 = vcombine.low %v304_v8, %v308_v9  ;;  %v9778_v25 = vcombine.low %v305_v10, %v309_v11  ;;  %v357_v8 = vld [vmem:[#allocation5 + $0x6f8] sm:$0xff] }
 0x2ac   :  { %7005 = vmatpush1.bf16.msra.mxu0 %v9720_v18  ;;  %7333 = vmatpush1.bf16.msra.mxu1 %v9722_v19  ;;  %v9779_v18 = vcombine.high %v305_v10, %v309_v11  ;;  %v312_v19 = vld [vmem:[#allocation5 + $0x590] sm:$0xff] }
 0x2ad   :  { %7006 = vmatprep.subr.bf16.mxu0 %v9729_v20  ;;  %7334 = vmatprep.subr.bf16.mxu1 %v9731_v21  ;;  %v316_v20 = vld [vmem:[#allocation5 + $0x5b0] sm:$0xff]  ;;  %v313_v21 = vld [vmem:[#allocation5 + $0x598] sm:$0xff] }
 0x2ae   :  { %v9785_v28 = vcombine.high %v312_v19, %v316_v20  ;;  %v9784_v58 = vcombine.low %v312_v19, %v316_v20  ;;  %v9786_v36 = vcombine.low %v313_v21, %v317_v22  ;;  %v365_v19 = vld [vmem:[#allocation5 + $0x738] sm:$0xff] }
 0x2b0   :  { %7007 = vmatpush1.bf16.msra.mxu0 %v9728_v29  ;;  %7335 = vmatpush1.bf16.msra.mxu1 %v9730_v31  ;;  %v9787_v29 = vcombine.high %v313_v21, %v317_v22  ;;  %v320_v31 = vld [vmem:[#allocation5 + $0x5d0] sm:$0xff] }
 0x2b1   :  { %7017 = vmatprep.subr.bf16.mxu0 %v9737_v32  ;;  %7345 = vmatprep.subr.bf16.mxu1 %v9739_v33  ;;  %v324_v32 = vld [vmem:[#allocation5 + $0x5f0] sm:$0xff]  ;;  %v321_v33 = vld [vmem:[#allocation5 + $0x5d8] sm:$0xff] }
 0x2b2   :  { %v9793_v37 = vcombine.high %v320_v31, %v324_v32  ;;  %v9792_v44 = vcombine.low %v320_v31, %v324_v32  ;;  %v373_v31 = vld [vmem:[#allocation5 + $0x778] sm:$0xff] }
 0x2b3   :  { %7009 = vmatmul.mubr.bf16.vlgmr.msra.gmra.mrb[4].mxu0 %v11697_v13  ;;  %7337 = vmatmul.mubr.bf16.vlgmr.msra.gmra.mrb[4].mxu1 %v11697_v13  ;;  %v9754_v13 = vcombine.low %v281_v46, %v285_v47  ;;  %v9794_v46 = vcombine.low %v321_v33, %v325_v34 }
 0x2b4   :  { %7018 = vmatpush1.bf16.msra.mxu0 %v9736_v38  ;;  %7346 = vmatpush1.bf16.msra.mxu1 %v9738_v39  ;;  %v9795_v38 = vcombine.high %v321_v33, %v325_v34  ;;  %v328_v39 = vld [vmem:[#allocation5 + $0x610] sm:$0xff] }
 0x2b5   :  { %7019 = vmatprep.subr.bf16.mxu0 %v9745_v41  ;;  %7347 = vmatprep.subr.bf16.mxu1 %v9747_v42  ;;  %v332_v41 = vld [vmem:[#allocation5 + $0x630] sm:$0xff]  ;;  %v329_v42 = vld [vmem:[#allocation5 + $0x618] sm:$0xff] }
 0x2b6   :  { %7049 = vmatprep.mubr.bf16.mxu0 %v11699_v24  ;;  %7377 = vmatprep.mubr.bf16.mxu1 %v11699_v24  ;;  %v9771_v24 = vcombine.high %v297_v3, %v301_v4  ;;  %v9801_v47 = vcombine.high %v328_v39, %v332_v41  ;;  %v9800_v54 = vcombine.low %v328_v39, %v332_v41  ;;  %v381_v39 = vld [vmem:[#allocation5 + $0x7b8] sm:$0xff] }
 0x2b7   :  { %v9802_v56 = vcombine.low %v329_v42, %v333_v43 }
 0x2b8   :  { %7020 = vmatpush1.bf16.msra.mxu0 %v9744_v48  ;;  %7348 = vmatpush1.bf16.msra.mxu1 %v9746_v50  ;;  %v9803_v48 = vcombine.high %v329_v42, %v333_v43  ;;  %v336_v50 = vld [vmem:[#allocation5 + $0x650] sm:$0xff] }
 0x2b9   :  { %7021 = vmatprep.subr.bf16.mxu0 %v9753_v51  ;;  %7349 = vmatprep.subr.bf16.mxu1 %v9755_v52  ;;  %v340_v51 = vld [vmem:[#allocation5 + $0x670] sm:$0xff]  ;;  %v337_v52 = vld [vmem:[#allocation5 + $0x658] sm:$0xff] }
 0x2ba   :  { %v9809_v59 = vcombine.high %v336_v50, %v340_v51  ;;  %v9808_v1 = vcombine.low %v336_v50, %v340_v51  ;;  %v9810_v3 = vcombine.low %v337_v52, %v341_v53  ;;  %v389_v50 = vld [vmem:[#allocation5 + $0x7f8] sm:$0xff] }
 0x2bc   :  { %7022 = vmatpush1.bf16.msra.mxu0 %v9752_v60  ;;  %7350 = vmatpush1.bf16.msra.mxu1 %v9754_v13  ;;  %v9811_v60 = vcombine.high %v337_v52, %v341_v53  ;;  %v344_v13 = vld [vmem:[#allocation5 + $0x690] sm:$0xff] }
 0x2bd   :  { %7023 = vmatprep.subr.bf16.mxu0 %v9761_v62  ;;  %7351 = vmatprep.subr.bf16.mxu1 %v9763_v63  ;;  %v348_v62 = vld [vmem:[#allocation5 + $0x6b0] sm:$0xff]  ;;  %v345_v63 = vld [vmem:[#allocation5 + $0x698] sm:$0xff] }
 0x2be   :  { %v9817_v4 = vcombine.high %v344_v13, %v348_v62  ;;  %v9816_v9 = vcombine.low %v344_v13, %v348_v62  ;;  %v9818_v10 = vcombine.low %v345_v63, %v349_v0  ;;  %v397_v13 = vld [vmem:[#allocation5 + $0x838] sm:$0xff] }
 0x2c0   :  { %7024 = vmatpush1.bf16.msra.mxu0 %v9760_v5  ;;  %7352 = vmatpush1.bf16.msra.mxu1 %v9762_v6  ;;  %v9819_v5 = vcombine.high %v345_v63, %v349_v0  ;;  %v352_v6 = vld [vmem:[#allocation5 + $0x6d0] sm:$0xff] }
 0x2c1   :  { %7025 = vmatprep.subr.bf16.mxu0 %v9769_v7  ;;  %7353 = vmatprep.subr.bf16.mxu1 %v9771_v24  ;;  %v356_v7 = vld [vmem:[#allocation5 + $0x6f0] sm:$0xff]  ;;  %v353_v24 = vld [vmem:[#allocation5 + $0x6d8] sm:$0xff] }
 0x2c2   :  { %v9825_v11 = vcombine.high %v352_v6, %v356_v7  ;;  %v9824_v20 = vcombine.low %v352_v6, %v356_v7  ;;  %v9826_v21 = vcombine.low %v353_v24, %v357_v8  ;;  %v405_v6 = vld [vmem:[#allocation5 + $0x878] sm:$0xff] }
 0x2c4   :  { %7026 = vmatpush1.bf16.msra.mxu0 %v9768_v12  ;;  %7354 = vmatpush1.bf16.msra.mxu1 %v9770_v14  ;;  %v9827_v12 = vcombine.high %v353_v24, %v357_v8  ;;  %v360_v14 = vld [vmem:[#allocation5 + $0x710] sm:$0xff] }
 0x2c5   :  { %7027 = vmatprep.subr.bf16.mxu0 %v9777_v16  ;;  %7355 = vmatprep.subr.bf16.mxu1 %v9779_v18  ;;  %v364_v16 = vld [vmem:[#allocation5 + $0x730] sm:$0xff]  ;;  %v361_v18 = vld [vmem:[#allocation5 + $0x718] sm:$0xff] }
 0x2c6   :  { %v9833_v22 = vcombine.high %v360_v14, %v364_v16  ;;  %v9832_v32 = vcombine.low %v360_v14, %v364_v16  ;;  %v9834_v33 = vcombine.low %v361_v18, %v365_v19  ;;  %v413_v14 = vld [vmem:[#allocation5 + $0x8b8] sm:$0xff] }
 0x2c8   :  { %7028 = vmatpush1.bf16.msra.mxu0 %v9776_v23  ;;  %7356 = vmatpush1.bf16.msra.mxu1 %v9778_v25  ;;  %v9835_v23 = vcombine.high %v361_v18, %v365_v19  ;;  %v368_v25 = vld [vmem:[#allocation5 + $0x750] sm:$0xff] }
 0x2c9   :  { %7029 = vmatprep.subr.bf16.mxu0 %v9785_v28  ;;  %7357 = vmatprep.subr.bf16.mxu1 %v9787_v29  ;;  %v372_v28 = vld [vmem:[#allocation5 + $0x770] sm:$0xff]  ;;  %v369_v29 = vld [vmem:[#allocation5 + $0x758] sm:$0xff] }
 0x2ca   :  { %v9841_v34 = vcombine.high %v368_v25, %v372_v28  ;;  %v9840_v41 = vcombine.low %v368_v25, %v372_v28  ;;  %v9842_v42 = vcombine.low %v369_v29, %v373_v31  ;;  %v421_v25 = vld [vmem:[#allocation5 + $0x8f8] sm:$0xff] }
 0x2cc   :  { %7030 = vmatpush1.bf16.msra.mxu0 %v9784_v58  ;;  %7358 = vmatpush1.bf16.msra.mxu1 %v9786_v36  ;;  %v9843_v58 = vcombine.high %v369_v29, %v373_v31  ;;  %v376_v36 = vld [vmem:[#allocation5 + $0x790] sm:$0xff] }
 0x2cd   :  { %7031 = vmatprep.subr.bf16.mxu0 %v9793_v37  ;;  %7359 = vmatprep.subr.bf16.mxu1 %v9795_v38  ;;  %v380_v37 = vld [vmem:[#allocation5 + $0x7b0] sm:$0xff]  ;;  %v377_v38 = vld [vmem:[#allocation5 + $0x798] sm:$0xff] }
 0x2ce   :  { %v9849_v43 = vcombine.high %v376_v36, %v380_v37  ;;  %v9848_v51 = vcombine.low %v376_v36, %v380_v37  ;;  %v9850_v52 = vcombine.low %v377_v38, %v381_v39 }
 0x2d0   :  { %7032 = vmatpush1.bf16.msra.mxu0 %v9792_v44  ;;  %7360 = vmatpush1.bf16.msra.mxu1 %v9794_v46  ;;  %v9851_v44 = vcombine.high %v377_v38, %v381_v39  ;;  %v384_v46 = vld [vmem:[#allocation5 + $0x7d0] sm:$0xff] }
 0x2d1   :  { %7033 = vmatprep.subr.bf16.mxu0 %v9801_v47  ;;  %7361 = vmatprep.subr.bf16.mxu1 %v9803_v48  ;;  %v388_v47 = vld [vmem:[#allocation5 + $0x7f0] sm:$0xff]  ;;  %v385_v48 = vld [vmem:[#allocation5 + $0x7d8] sm:$0xff] }
 0x2d2   :  { %v9857_v53 = vcombine.high %v384_v46, %v388_v47  ;;  %v9856_v62 = vcombine.low %v384_v46, %v388_v47  ;;  %v9858_v63 = vcombine.low %v385_v48, %v389_v50  ;;  %v432_v39 = vld [vmem:[#allocation5 + $0x950] sm:$0xff] }
 0x2d4   :  { %7034 = vmatpush1.bf16.msra.mxu0 %v9800_v54  ;;  %7362 = vmatpush1.bf16.msra.mxu1 %v9802_v56  ;;  %v9859_v54 = vcombine.high %v385_v48, %v389_v50  ;;  %v392_v56 = vld [vmem:[#allocation5 + $0x810] sm:$0xff] }
 0x2d5   :  { %7035 = vmatprep.subr.bf16.mxu0 %v9809_v59  ;;  %7363 = vmatprep.subr.bf16.mxu1 %v9811_v60  ;;  %v396_v59 = vld [vmem:[#allocation5 + $0x830] sm:$0xff]  ;;  %v393_v60 = vld [vmem:[#allocation5 + $0x818] sm:$0xff] }
 0x2d6   :  { %v9865_v0 = vcombine.high %v392_v56, %v396_v59  ;;  %v9864_v7 = vcombine.low %v392_v56, %v396_v59  ;;  %v9866_v24 = vcombine.low %v393_v60, %v397_v13  ;;  %v440_v50 = vld [vmem:[#allocation5 + $0x990] sm:$0xff] }
 0x2d8   :  { %7036 = vmatpush1.bf16.msra.mxu0 %v9808_v1  ;;  %7364 = vmatpush1.bf16.msra.mxu1 %v9810_v3  ;;  %v9867_v1 = vcombine.high %v393_v60, %v397_v13  ;;  %v400_v3 = vld [vmem:[#allocation5 + $0x850] sm:$0xff] }
 0x2d9   :  { %7037 = vmatprep.subr.bf16.mxu0 %v9817_v4  ;;  %7365 = vmatprep.subr.bf16.mxu1 %v9819_v5  ;;  %v404_v4 = vld [vmem:[#allocation5 + $0x870] sm:$0xff]  ;;  %v401_v5 = vld [vmem:[#allocation5 + $0x858] sm:$0xff] }
 0x2da   :  { %v9873_v8 = vcombine.high %v400_v3, %v404_v4  ;;  %v9872_v16 = vcombine.low %v400_v3, %v404_v4  ;;  %v9874_v18 = vcombine.low %v401_v5, %v405_v6  ;;  %v448_v13 = vld [vmem:[#allocation5 + $0x9d0] sm:$0xff] }
 0x2dc   :  { %7038 = vmatpush1.bf16.msra.mxu0 %v9816_v9  ;;  %7366 = vmatpush1.bf16.msra.mxu1 %v9818_v10  ;;  %v9875_v9 = vcombine.high %v401_v5, %v405_v6  ;;  %v408_v10 = vld [vmem:[#allocation5 + $0x890] sm:$0xff] }
 0x2dd   :  { %7039 = vmatprep.subr.bf16.mxu0 %v9825_v11  ;;  %7367 = vmatprep.subr.bf16.mxu1 %v9827_v12  ;;  %v412_v11 = vld [vmem:[#allocation5 + $0x8b0] sm:$0xff]  ;;  %v409_v12 = vld [vmem:[#allocation5 + $0x898] sm:$0xff] }
 0x2de   :  { %v9881_v19 = vcombine.high %v408_v10, %v412_v11  ;;  %v9880_v28 = vcombine.low %v408_v10, %v412_v11  ;;  %v456_v6 = vld [vmem:[#allocation5 + $0xa10] sm:$0xff] }
 0x2e0   :  { %7040 = vmatpush1.bf16.msra.mxu0 %v9824_v20  ;;  %7368 = vmatpush1.bf16.msra.mxu1 %v9826_v21  ;;  %v9883_v20 = vcombine.high %v409_v12, %v413_v14  ;;  %v416_v21 = vld [vmem:[#allocation5 + $0x8d0] sm:$0xff] }
 0x2e1   :  { %7041 = vmatprep.subr.bf16.mxu0 %v9833_v22  ;;  %7369 = vmatprep.subr.bf16.mxu1 %v9835_v23  ;;  %v420_v22 = vld [vmem:[#allocation5 + $0x8f0] sm:$0xff]  ;;  %v417_v23 = vld [vmem:[#allocation5 + $0x8d8] sm:$0xff] }
 0x2e2   :  { %v9889_v29 = vcombine.high %v416_v21, %v420_v22  ;;  %v9891_v31 = vcombine.high %v417_v23, %v421_v25  ;;  %v9888_v36 = vcombine.low %v416_v21, %v420_v22  ;;  %v9890_v37 = vcombine.low %v417_v23, %v421_v25  ;;  %v472_v25 = vld [vmem:[#allocation5 + $0xa90] sm:$0xff] }
 0x2e4   :  { %7042 = vmatpush1.bf16.msra.mxu0 %v9832_v32  ;;  %7370 = vmatpush1.bf16.msra.mxu1 %v9834_v33  ;;  %v424_v32 = vld [vmem:[#allocation5 + $0x910] sm:$0xff] }
 0x2e5   :  { %7043 = vmatprep.subr.bf16.mxu0 %v9841_v34  ;;  %7371 = vmatprep.subr.bf16.mxu1 %v9843_v58  ;;  %v428_v33 = vld [vmem:[#allocation5 + $0x930] sm:$0xff]  ;;  %v425_v34 = vld [vmem:[#allocation5 + $0x918] sm:$0xff] }
 0x2e6   :  { %v429_v58 = vld [vmem:[#allocation5 + $0x938] sm:$0xff]  ;;  %v9897_v38 = vcombine.high %v424_v32, %v428_v33 }
 0x2e7   :  { %v9898_v46 = vcombine.low %v425_v34, %v429_v58 }
 0x2e8   :  { %7044 = vmatpush1.bf16.msra.mxu0 %v9840_v41  ;;  %7372 = vmatpush1.bf16.msra.mxu1 %v9842_v42  ;;  %v436_v41 = vld [vmem:[#allocation5 + $0x970] sm:$0xff]  ;;  %v433_v42 = vld [vmem:[#allocation5 + $0x958] sm:$0xff] }
 0x2e9   :  { %7045 = vmatprep.subr.bf16.mxu0 %v9849_v43  ;;  %7373 = vmatprep.subr.bf16.mxu1 %v9851_v44  ;;  %v437_v43 = vld [vmem:[#allocation5 + $0x978] sm:$0xff]  ;;  %v9896_v44 = vcombine.low %v424_v32, %v428_v33  ;;  %v9905_v47 = vcombine.high %v432_v39, %v436_v41 }
 0x2ea   :  { %v9907_v48 = vcombine.high %v433_v42, %v437_v43  ;;  %v9906_v56 = vcombine.low %v433_v42, %v437_v43  ;;  %v488_v43 = vld [vmem:[#allocation5 + $0xb10] sm:$0xff] }
 0x2ec   :  { %7046 = vmatpush1.bf16.msra.mxu0 %v9848_v51  ;;  %7374 = vmatpush1.bf16.msra.mxu1 %v9850_v52  ;;  %v444_v51 = vld [vmem:[#allocation5 + $0x9b0] sm:$0xff]  ;;  %v441_v52 = vld [vmem:[#allocation5 + $0x998] sm:$0xff] }
 0x2ed   :  { %7047 = vmatprep.subr.bf16.mxu0 %v9857_v53  ;;  %7375 = vmatprep.subr.bf16.mxu1 %v9859_v54  ;;  %v445_v53 = vld [vmem:[#allocation5 + $0x9b8] sm:$0xff]  ;;  %v9904_v54 = vcombine.low %v432_v39, %v436_v41  ;;  %v9913_v59 = vcombine.high %v440_v50, %v444_v51 }
 0x2ee   :  { %v9915_v60 = vcombine.high %v441_v52, %v445_v53  ;;  %v9914_v3 = vcombine.low %v441_v52, %v445_v53  ;;  %v496_v53 = vld [vmem:[#allocation5 + $0xb50] sm:$0xff] }
 0x2f0   :  { %7048 = vmatpush1.bf16.msra.mxu0 %v9856_v62  ;;  %7376 = vmatpush1.bf16.msra.mxu1 %v9858_v63  ;;  %v452_v62 = vld [vmem:[#allocation5 + $0x9f0] sm:$0xff]  ;;  %v449_v63 = vld [vmem:[#allocation5 + $0x9d8] sm:$0xff] }
 0x2f1   :  { %7058 = vmatprep.subr.bf16.mxu0 %v9865_v0  ;;  %7386 = vmatprep.subr.bf16.mxu1 %v9867_v1  ;;  %v453_v0 = vld [vmem:[#allocation5 + $0x9f8] sm:$0xff]  ;;  %v9912_v1 = vcombine.low %v440_v50, %v444_v51  ;;  %v9921_v4 = vcombine.high %v448_v13, %v452_v62 }
 0x2f2   :  { %v9923_v5 = vcombine.high %v449_v63, %v453_v0  ;;  %v9922_v10 = vcombine.low %v449_v63, %v453_v0  ;;  %v504_v0 = vld [vmem:[#allocation5 + $0xb90] sm:$0xff] }
 0x2f3   :  { %7050 = vmatmul.mubr.bf16.vlgmr.msra.gmra.mrb[4].mxu0 %v11705_v26  ;;  %7378 = vmatmul.mubr.bf16.vlgmr.msra.gmra.mrb[4].mxu1 %v11705_v26  ;;  %v9882_v26 = vcombine.low %v409_v12, %v413_v14  ;;  %v464_v14 = vld [vmem:[#allocation5 + $0xa50] sm:$0xff] }
 0x2f4   :  { %7059 = vmatpush1.bf16.msra.mxu0 %v9864_v7  ;;  %7387 = vmatpush1.bf16.msra.mxu1 %v9866_v24  ;;  %v460_v7 = vld [vmem:[#allocation5 + $0xa30] sm:$0xff]  ;;  %v457_v24 = vld [vmem:[#allocation5 + $0xa18] sm:$0xff] }
 0x2f5   :  { %7060 = vmatprep.subr.bf16.mxu0 %v9873_v8  ;;  %7388 = vmatprep.subr.bf16.mxu1 %v9875_v9  ;;  %v461_v8 = vld [vmem:[#allocation5 + $0xa38] sm:$0xff]  ;;  %v9920_v9 = vcombine.low %v448_v13, %v452_v62  ;;  %v9929_v11 = vcombine.high %v456_v6, %v460_v7 }
 0x2f6   :  { %7090 = vmatprep.mubr.bf16.mxu0 %v11707_v35  ;;  %7418 = vmatprep.mubr.bf16.mxu1 %v11707_v35  ;;  %v9899_v35 = vcombine.high %v425_v34, %v429_v58  ;;  %v9931_v12 = vcombine.high %v457_v24, %v461_v8  ;;  %v9930_v21 = vcombine.low %v457_v24, %v461_v8  ;;  %v480_v58 = vld [vmem:[#allocation5 + $0xad0] sm:$0xff] }
 0x2f7   :  { %v512_v8 = vld [vmem:[#allocation5 + $0xbd0] sm:$0xff] }
 0x2f8   :  { %7061 = vmatpush1.bf16.msra.mxu0 %v9872_v16  ;;  %7389 = vmatpush1.bf16.msra.mxu1 %v9874_v18  ;;  %v468_v16 = vld [vmem:[#allocation5 + $0xa70] sm:$0xff]  ;;  %v465_v18 = vld [vmem:[#allocation5 + $0xa58] sm:$0xff] }
 0x2f9   :  { %7062 = vmatprep.subr.bf16.mxu0 %v9881_v19  ;;  %7390 = vmatprep.subr.bf16.mxu1 %v9883_v20  ;;  %v469_v19 = vld [vmem:[#allocation5 + $0xa78] sm:$0xff]  ;;  %v9928_v20 = vcombine.low %v456_v6, %v460_v7  ;;  %v9937_v22 = vcombine.high %v464_v14, %v468_v16 }
 0x2fa   :  { %v9939_v23 = vcombine.high %v465_v18, %v469_v19  ;;  %v9938_v32 = vcombine.low %v465_v18, %v469_v19  ;;  %v520_v19 = vld [vmem:[#allocation5 + $0xc10] sm:$0xff] }
 0x2fc   :  { %7063 = vmatpush1.bf16.msra.mxu0 %v9880_v28  ;;  %7391 = vmatpush1.bf16.msra.mxu1 %v9882_v26  ;;  %v476_v28 = vld [vmem:[#allocation5 + $0xab0] sm:$0xff]  ;;  %v473_v26 = vld [vmem:[#allocation5 + $0xa98] sm:$0xff] }
 0x2fd   :  { %7064 = vmatprep.subr.bf16.mxu0 %v9889_v29  ;;  %7392 = vmatprep.subr.bf16.mxu1 %v9891_v31  ;;  %v477_v29 = vld [vmem:[#allocation5 + $0xab8] sm:$0xff]  ;;  %v9936_v31 = vcombine.low %v464_v14, %v468_v16  ;;  %v9945_v33 = vcombine.high %v472_v25, %v476_v28 }
 0x2fe   :  { %v9947_v34 = vcombine.high %v473_v26, %v477_v29  ;;  %v9946_v39 = vcombine.low %v473_v26, %v477_v29  ;;  %v528_v29 = vld [vmem:[#allocation5 + $0xc50] sm:$0xff] }
 0x300   :  { %7065 = vmatpush1.bf16.msra.mxu0 %v9888_v36  ;;  %7393 = vmatpush1.bf16.msra.mxu1 %v9890_v37  ;;  %v484_v36 = vld [vmem:[#allocation5 + $0xaf0] sm:$0xff]  ;;  %v481_v37 = vld [vmem:[#allocation5 + $0xad8] sm:$0xff] }
 0x301   :  { %7066 = vmatprep.subr.bf16.mxu0 %v9897_v38  ;;  %7394 = vmatprep.subr.bf16.mxu1 %v9899_v35  ;;  %v485_v38 = vld [vmem:[#allocation5 + $0xaf8] sm:$0xff]  ;;  %v9944_v35 = vcombine.low %v472_v25, %v476_v28  ;;  %v9953_v41 = vcombine.high %v480_v58, %v484_v36 }
 0x302   :  { %v9955_v42 = vcombine.high %v481_v37, %v485_v38  ;;  %v9954_v50 = vcombine.low %v481_v37, %v485_v38  ;;  %v536_v38 = vld [vmem:[#allocation5 + $0xc90] sm:$0xff] }
 0x304   :  { %7067 = vmatpush1.bf16.msra.mxu0 %v9896_v44  ;;  %7395 = vmatpush1.bf16.msra.mxu1 %v9898_v46  ;;  %v492_v44 = vld [vmem:[#allocation5 + $0xb30] sm:$0xff]  ;;  %v489_v46 = vld [vmem:[#allocation5 + $0xb18] sm:$0xff] }
 0x305   :  { %7068 = vmatprep.subr.bf16.mxu0 %v9905_v47  ;;  %7396 = vmatprep.subr.bf16.mxu1 %v9907_v48  ;;  %v493_v47 = vld [vmem:[#allocation5 + $0xb38] sm:$0xff]  ;;  %v9952_v48 = vcombine.low %v480_v58, %v484_v36  ;;  %v9961_v51 = vcombine.high %v488_v43, %v492_v44 }
 0x306   :  { %v9963_v52 = vcombine.high %v489_v46, %v493_v47  ;;  %v9962_v13 = vcombine.low %v489_v46, %v493_v47  ;;  %v544_v47 = vld [vmem:[#allocation5 + $0xcd0] sm:$0xff] }
 0x308   :  { %7069 = vmatpush1.bf16.msra.mxu0 %v9904_v54  ;;  %7397 = vmatpush1.bf16.msra.mxu1 %v9906_v56  ;;  %v500_v54 = vld [vmem:[#allocation5 + $0xb70] sm:$0xff]  ;;  %v497_v56 = vld [vmem:[#allocation5 + $0xb58] sm:$0xff] }
 0x309   :  { %7070 = vmatprep.subr.bf16.mxu0 %v9913_v59  ;;  %7398 = vmatprep.subr.bf16.mxu1 %v9915_v60  ;;  %v501_v59 = vld [vmem:[#allocation5 + $0xb78] sm:$0xff]  ;;  %v9960_v60 = vcombine.low %v488_v43, %v492_v44  ;;  %v9969_v62 = vcombine.high %v496_v53, %v500_v54 }
 0x30a   :  { %v9971_v63 = vcombine.high %v497_v56, %v501_v59  ;;  %v9970_v6 = vcombine.low %v497_v56, %v501_v59  ;;  %v552_v56 = vld [vmem:[#allocation5 + $0xd10] sm:$0xff] }
 0x30b   :  { %v556_v59 = vld [vmem:[#allocation5 + $0xd30] sm:$0xff] }
 0x30c   :  { %7071 = vmatpush1.bf16.msra.mxu0 %v9912_v1  ;;  %7399 = vmatpush1.bf16.msra.mxu1 %v9914_v3  ;;  %v508_v1 = vld [vmem:[#allocation5 + $0xbb0] sm:$0xff]  ;;  %v505_v3 = vld [vmem:[#allocation5 + $0xb98] sm:$0xff] }
 0x30d   :  { %7072 = vmatprep.subr.bf16.mxu0 %v9921_v4  ;;  %7400 = vmatprep.subr.bf16.mxu1 %v9923_v5  ;;  %v509_v4 = vld [vmem:[#allocation5 + $0xbb8] sm:$0xff]  ;;  %v9968_v5 = vcombine.low %v496_v53, %v500_v54  ;;  %v9977_v7 = vcombine.high %v504_v0, %v508_v1 }
 0x30e   :  { %v9979_v24 = vcombine.high %v505_v3, %v509_v4  ;;  %v9978_v14 = vcombine.low %v505_v3, %v509_v4  ;;  %v564_v3 = vld [vmem:[#allocation5 + $0xd70] sm:$0xff]  ;;  %v561_v4 = vld [vmem:[#allocation5 + $0xd58] sm:$0xff] }
 0x310   :  { %7073 = vmatpush1.bf16.msra.mxu0 %v9920_v9  ;;  %7401 = vmatpush1.bf16.msra.mxu1 %v9922_v10  ;;  %v516_v9 = vld [vmem:[#allocation5 + $0xbf0] sm:$0xff]  ;;  %v513_v10 = vld [vmem:[#allocation5 + $0xbd8] sm:$0xff] }
 0x311   :  { %7074 = vmatprep.subr.bf16.mxu0 %v9929_v11  ;;  %7402 = vmatprep.subr.bf16.mxu1 %v9931_v12  ;;  %v517_v11 = vld [vmem:[#allocation5 + $0xbf8] sm:$0xff]  ;;  %v9976_v12 = vcombine.low %v504_v0, %v508_v1  ;;  %v9985_v16 = vcombine.high %v512_v8, %v516_v9  ;;  %v10025_v0 = vcombine.high %v552_v56, %v556_v59  ;;  %v560_v1 = vld [vmem:[#allocation5 + $0xd50] sm:$0xff] }
 0x312   :  { %v9987_v18 = vcombine.high %v513_v10, %v517_v11  ;;  %v9986_v25 = vcombine.low %v513_v10, %v517_v11  ;;  %v572_v10 = vld [vmem:[#allocation5 + $0xdb0] sm:$0xff]  ;;  %v569_v11 = vld [vmem:[#allocation5 + $0xd98] sm:$0xff] }
 0x314   :  { %7075 = vmatpush1.bf16.msra.mxu0 %v9928_v20  ;;  %7403 = vmatpush1.bf16.msra.mxu1 %v9930_v21  ;;  %v524_v20 = vld [vmem:[#allocation5 + $0xc30] sm:$0xff]  ;;  %v521_v21 = vld [vmem:[#allocation5 + $0xc18] sm:$0xff] }
 0x315   :  { %7076 = vmatprep.subr.bf16.mxu0 %v9937_v22  ;;  %7404 = vmatprep.subr.bf16.mxu1 %v9939_v23  ;;  %v525_v22 = vld [vmem:[#allocation5 + $0xc38] sm:$0xff]  ;;  %v9984_v23 = vcombine.low %v512_v8, %v516_v9  ;;  %v9993_v28 = vcombine.high %v520_v19, %v524_v20  ;;  %v568_v9 = vld [vmem:[#allocation5 + $0xd90] sm:$0xff] }
 0x316   :  { %v9995_v26 = vcombine.high %v521_v21, %v525_v22  ;;  %v9994_v58 = vcombine.low %v521_v21, %v525_v22  ;;  %v576_v21 = vld [vmem:[#allocation5 + $0xdd0] sm:$0xff] }
 0x317   :  { %v580_v22 = vld [vmem:[#allocation5 + $0xdf0] sm:$0xff] }
 0x318   :  { %7077 = vmatpush1.bf16.msra.mxu0 %v9936_v31  ;;  %7405 = vmatpush1.bf16.msra.mxu1 %v9938_v32  ;;  %v532_v31 = vld [vmem:[#allocation5 + $0xc70] sm:$0xff]  ;;  %v529_v32 = vld [vmem:[#allocation5 + $0xc58] sm:$0xff] }
 0x319   :  { %7078 = vmatprep.subr.bf16.mxu0 %v9945_v33  ;;  %7406 = vmatprep.subr.bf16.mxu1 %v9947_v34  ;;  %v533_v33 = vld [vmem:[#allocation5 + $0xc78] sm:$0xff]  ;;  %v9992_v34 = vcombine.low %v520_v19, %v524_v20  ;;  %v10001_v36 = vcombine.high %v528_v29, %v532_v31 }
 0x31a   :  { %v10003_v37 = vcombine.high %v529_v32, %v533_v33  ;;  %v10002_v43 = vcombine.low %v529_v32, %v533_v33  ;;  %v10040_v32 = vcombine.low %v568_v9, %v572_v10 }
 0x31c   :  { %7079 = vmatpush1.bf16.msra.mxu0 %v9944_v35  ;;  %7407 = vmatpush1.bf16.msra.mxu1 %v9946_v39  ;;  %v540_v35 = vld [vmem:[#allocation5 + $0xcb0] sm:$0xff]  ;;  %v537_v39 = vld [vmem:[#allocation5 + $0xc98] sm:$0xff] }
 0x31d   :  { %7080 = vmatprep.subr.bf16.mxu0 %v9953_v41  ;;  %7408 = vmatprep.subr.bf16.mxu1 %v9955_v42  ;;  %v541_v41 = vld [vmem:[#allocation5 + $0xcb8] sm:$0xff]  ;;  %v10000_v42 = vcombine.low %v528_v29, %v532_v31  ;;  %v10009_v44 = vcombine.high %v536_v38, %v540_v35 }
 0x31e   :  { %v10011_v46 = vcombine.high %v537_v39, %v541_v41 }
 0x320   :  { %7081 = vmatpush1.bf16.msra.mxu0 %v9952_v48  ;;  %7409 = vmatpush1.bf16.msra.mxu1 %v9954_v50  ;;  %v548_v48 = vld [vmem:[#allocation5 + $0xcf0] sm:$0xff]  ;;  %v545_v50 = vld [vmem:[#allocation5 + $0xcd8] sm:$0xff] }
 0x321   :  { %7082 = vmatprep.subr.bf16.mxu0 %v9961_v51  ;;  %7410 = vmatprep.subr.bf16.mxu1 %v9963_v52  ;;  %v549_v51 = vld [vmem:[#allocation5 + $0xcf8] sm:$0xff]  ;;  %v10008_v52 = vcombine.low %v536_v38, %v540_v35  ;;  %v10017_v53 = vcombine.high %v544_v47, %v548_v48  ;;  %v584_v35 = vld [vmem:[#allocation5 + $0xe10] sm:$0xff] }
 0x322   :  { %v10019_v54 = vcombine.high %v545_v50, %v549_v51 }
 0x324   :  { %7083 = vmatpush1.bf16.msra.mxu0 %v9960_v60  ;;  %7411 = vmatpush1.bf16.msra.mxu1 %v9962_v13  ;;  %v553_v60 = vld [vmem:[#allocation5 + $0xd18] sm:$0xff] }
 0x325   :  { %7084 = vmatprep.subr.bf16.mxu0 %v9969_v62  ;;  %7412 = vmatprep.subr.bf16.mxu1 %v9971_v63  ;;  %v557_v13 = vld [vmem:[#allocation5 + $0xd38] sm:$0xff]  ;;  %v10016_v62 = vcombine.low %v544_v47, %v548_v48  ;;  %v10018_v63 = vcombine.low %v545_v50, %v549_v51  ;;  %v592_v48 = vld [vmem:[#allocation5 + $0xe50] sm:$0xff] }
 0x326   :  { %v596_v50 = vld [vmem:[#allocation5 + $0xe70] sm:$0xff]  ;;  %v593_v51 = vld [vmem:[#allocation5 + $0xe58] sm:$0xff] }
 0x328   :  { %7085 = vmatpush1.bf16.msra.mxu0 %v9968_v5  ;;  %7413 = vmatpush1.bf16.msra.mxu1 %v9970_v6  ;;  %v565_v5 = vld [vmem:[#allocation5 + $0xd78] sm:$0xff]  ;;  %v10024_v6 = vcombine.low %v552_v56, %v556_v59  ;;  %v600_v59 = vld [vmem:[#allocation5 + $0xe90] sm:$0xff] }
 0x329   :  { %7086 = vmatprep.subr.bf16.mxu0 %v9977_v7  ;;  %7414 = vmatprep.subr.bf16.mxu1 %v9979_v24  ;;  %v10026_v7 = vcombine.low %v553_v60, %v557_v13  ;;  %v10033_v24 = vcombine.high %v560_v1, %v564_v3  ;;  %v10035_v8 = vcombine.high %v561_v4, %v565_v5 }
 0x32c   :  { %7087 = vmatpush1.bf16.msra.mxu0 %v9976_v12  ;;  %7415 = vmatpush1.bf16.msra.mxu1 %v9978_v14  ;;  %v573_v12 = vld [vmem:[#allocation5 + $0xdb8] sm:$0xff]  ;;  %v10032_v14 = vcombine.low %v560_v1, %v564_v3  ;;  %v608_v3 = vld [vmem:[#allocation5 + $0xed0] sm:$0xff] }
 0x32d   :  { %7088 = vmatprep.subr.bf16.mxu0 %v9985_v16  ;;  %7416 = vmatprep.subr.bf16.mxu1 %v9987_v18  ;;  %v10034_v16 = vcombine.low %v561_v4, %v565_v5  ;;  %v10041_v18 = vcombine.high %v568_v9, %v572_v10  ;;  %v10043_v20 = vcombine.high %v569_v11, %v573_v12  ;;  %v612_v4 = vld [vmem:[#allocation5 + $0xef0] sm:$0xff]  ;;  %v609_v5 = vld [vmem:[#allocation5 + $0xed8] sm:$0xff] }
 0x32e   :  { %v616_v10 = vld [vmem:[#allocation5 + $0xf10] sm:$0xff] }
 0x330   :  { %7089 = vmatpush1.bf16.msra.mxu0 %v9984_v23  ;;  %7417 = vmatpush1.bf16.msra.mxu1 %v9986_v25 }
 0x331   :  { %7099 = vmatprep.subr.bf16.mxu0 %v9993_v28  ;;  %7427 = vmatprep.subr.bf16.mxu1 %v9995_v26  ;;  %v577_v28 = vld [vmem:[#allocation5 + $0xdd8] sm:$0xff] }
 0x332   :  { %v581_v26 = vld [vmem:[#allocation5 + $0xdf8] sm:$0xff] }
 0x333   :  { %7091 = vmatmul.mubr.bf16.vlgmr.msra.gmra.mrb[4].mxu0 %v11713_v40  ;;  %7419 = vmatmul.mubr.bf16.vlgmr.msra.gmra.mrb[4].mxu1 %v11713_v40  ;;  %v10010_v40 = vcombine.low %v537_v39, %v541_v41  ;;  %v10051_v38 = vcombine.high %v577_v28, %v581_v26  ;;  %v588_v39 = vld [vmem:[#allocation5 + $0xe30] sm:$0xff]  ;;  %v585_v41 = vld [vmem:[#allocation5 + $0xe18] sm:$0xff] }
 0x334   :  { %7100 = vmatpush1.bf16.msra.mxu0 %v9992_v34  ;;  %7428 = vmatpush1.bf16.msra.mxu1 %v9994_v58  ;;  %v10042_v58 = vcombine.low %v569_v11, %v573_v12  ;;  %v620_v11 = vld [vmem:[#allocation5 + $0xf30] sm:$0xff]  ;;  %v617_v12 = vld [vmem:[#allocation5 + $0xf18] sm:$0xff] }
 0x335   :  { %7101 = vmatprep.subr.bf16.mxu0 %v10001_v36  ;;  %7429 = vmatprep.subr.bf16.mxu1 %v10003_v37  ;;  %v10049_v36 = vcombine.high %v576_v21, %v580_v22 }
 0x336   :  { %7131 = vmatprep.mubr.bf16.mxu0 %v11715_v49  ;;  %7459 = vmatprep.mubr.bf16.mxu1 %v11715_v49  ;;  %v10027_v49 = vcombine.high %v553_v60, %v557_v13  ;;  %v604_v60 = vld [vmem:[#allocation5 + $0xeb0] sm:$0xff]  ;;  %v601_v13 = vld [vmem:[#allocation5 + $0xe98] sm:$0xff] }
 0x338   :  { %7102 = vmatpush1.bf16.msra.mxu0 %v10000_v42  ;;  %7430 = vmatpush1.bf16.msra.mxu1 %v10002_v43  ;;  %v589_v42 = vld [vmem:[#allocation5 + $0xe38] sm:$0xff]  ;;  %v10048_v43 = vcombine.low %v576_v21, %v580_v22  ;;  %v624_v22 = vld [vmem:[#allocation5 + $0xf50] sm:$0xff] }
 0x339   :  { %7103 = vmatprep.subr.bf16.mxu0 %v10009_v44  ;;  %7431 = vmatprep.subr.bf16.mxu1 %v10011_v46  ;;  %v10050_v44 = vcombine.low %v577_v28, %v581_v26  ;;  %v10057_v46 = vcombine.high %v584_v35, %v588_v39  ;;  %v10059_v47 = vcombine.high %v585_v41, %v589_v42  ;;  %v628_v28 = vld [vmem:[#allocation5 + $0xf70] sm:$0xff]  ;;  %v625_v26 = vld [vmem:[#allocation5 + $0xf58] sm:$0xff] }
 0x33c   :  { %7104 = vmatpush1.bf16.msra.mxu0 %v10008_v52  ;;  %7432 = vmatpush1.bf16.msra.mxu1 %v10010_v40  ;;  %v597_v52 = vld [vmem:[#allocation5 + $0xe78] sm:$0xff]  ;;  %v10056_v40 = vcombine.low %v584_v35, %v588_v39  ;;  %v10096_v39 = vcombine.low %v624_v22, %v628_v28 }
 0x33d   :  { %7105 = vmatprep.subr.bf16.mxu0 %v10017_v53  ;;  %7433 = vmatprep.subr.bf16.mxu1 %v10019_v54  ;;  %v10058_v53 = vcombine.low %v585_v41, %v589_v42  ;;  %v10065_v54 = vcombine.high %v592_v48, %v596_v50  ;;  %v10067_v56 = vcombine.high %v593_v51, %v597_v52  ;;  %v637_v35 = vld [vmem:[#allocation5 + $0xfb8] sm:$0xff] }
 0x340   :  { %7106 = vmatpush1.bf16.msra.mxu0 %v10016_v62  ;;  %7434 = vmatpush1.bf16.msra.mxu1 %v10018_v63  ;;  %v605_v62 = vld [vmem:[#allocation5 + $0xeb8] sm:$0xff]  ;;  %v10064_v63 = vcombine.low %v592_v48, %v596_v50 }
 0x341   :  { %7107 = vmatprep.subr.bf16.mxu0 %v10025_v0  ;;  %7435 = vmatprep.subr.bf16.mxu1 %v10027_v49  ;;  %v10066_v0 = vcombine.low %v593_v51, %v597_v52  ;;  %v10073_v49 = vcombine.high %v600_v59, %v604_v60  ;;  %v10075_v1 = vcombine.high %v601_v13, %v605_v62  ;;  %v645_v48 = vld [vmem:[#allocation5 + $0xff8] sm:$0xff] }
 0x344   :  { %7108 = vmatpush1.bf16.msra.mxu0 %v10024_v6  ;;  %7436 = vmatpush1.bf16.msra.mxu1 %v10026_v7  ;;  %v613_v6 = vld [vmem:[#allocation5 + $0xef8] sm:$0xff]  ;;  %v10072_v7 = vcombine.low %v600_v59, %v604_v60 }
 0x345   :  { %7109 = vmatprep.subr.bf16.mxu0 %v10033_v24  ;;  %7437 = vmatprep.subr.bf16.mxu1 %v10035_v8  ;;  %v10074_v24 = vcombine.low %v601_v13, %v605_v62  ;;  %v10081_v8 = vcombine.high %v608_v3, %v612_v4  ;;  %v10083_v9 = vcombine.high %v609_v5, %v613_v6  ;;  %v653_v59 = vld [vmem:[#allocation5 + $0x1038] sm:$0xff] }
 0x346   :  { %v11771_v19 = vpop.f32.mrb[0].mxu0  ;;  %v11773_v23 = vpop.f32.mrb[0].mxu1 }
 0x347   :  { %v11775_v25 = vpop.f32.mrb[1].mxu0  ;;  %v11777_v29 = vpop.f32.mrb[1].mxu1 }
 0x348   :  { %v6645_v31 = vpop.f32.mrb[2].mxu0  ;;  %7110 = vmatpush1.bf16.msra.mxu0 %v10032_v14  ;;  %v6973_v33 = vpop.f32.mrb[2].mxu1  ;;  %7438 = vmatpush1.bf16.msra.mxu1 %v10034_v16  ;;  %v621_v14 = vld [vmem:[#allocation5 + $0xf38] sm:$0xff]  ;;  %v10080_v16 = vcombine.low %v608_v3, %v612_v4 }
 0x349   :  { %v6646_v34 = vpop.f32.mrb[3].mxu0  ;;  %7111 = vmatprep.subr.bf16.mxu0 %v10041_v18  ;;  %v6974_v37 = vpop.f32.mrb[3].mxu1  ;;  %7439 = vmatprep.subr.bf16.mxu1 %v10043_v20  ;;  %v10082_v18 = vcombine.low %v609_v5, %v613_v6  ;;  %v10089_v20 = vcombine.high %v616_v10, %v620_v11  ;;  %v10091_v21 = vcombine.high %v617_v12, %v621_v14  ;;  %v629_v31 = vld [vmem:[#allocation5 + $0xf78] sm:$0xff] }
 0x34a   :  { %v10090_v33 = vcombine.low %v617_v12, %v621_v14  ;;  %v10097_v34 = vcombine.high %v624_v22, %v628_v28  ;;  %v636_v37 = vld [vmem:[#allocation5 + $0xfb0] sm:$0xff]  ;;  %v10098_v41 = vcombine.low %v625_v26, %v629_v31  ;;  %v661_v3 = vld [vmem:[#allocation5 + $0x1078] sm:$0xff] }
 0x34b   :  { %v677_v22 = vld [vmem:[#allocation5 + $0x10f8] sm:$0xff] }
 0x34c   :  { %7112 = vmatpush1.bf16.msra.mxu0 %v10040_v32  ;;  %7440 = vmatpush1.bf16.msra.mxu1 %v10042_v58  ;;  %v10088_v32 = vcombine.low %v616_v10, %v620_v11  ;;  %v10099_v58 = vcombine.high %v625_v26, %v629_v31  ;;  %v669_v10 = vld [vmem:[#allocation5 + $0x10b8] sm:$0xff] }
 0x34d   :  { %7113 = vmatprep.subr.bf16.mxu0 %v10049_v36  ;;  %7441 = vmatprep.subr.bf16.mxu1 %v10051_v38  ;;  %v632_v36 = vld [vmem:[#allocation5 + $0xf90] sm:$0xff]  ;;  %v633_v38 = vld [vmem:[#allocation5 + $0xf98] sm:$0xff] }
 0x34e   :  { %v10105_v42 = vcombine.high %v632_v36, %v636_v37  ;;  %v10104_v50 = vcombine.low %v632_v36, %v636_v37  ;;  %v10106_v51 = vcombine.low %v633_v38, %v637_v35 }
 0x350   :  { %7114 = vmatpush1.bf16.msra.mxu0 %v10048_v43  ;;  %7442 = vmatpush1.bf16.msra.mxu1 %v10050_v44  ;;  %v10107_v43 = vcombine.high %v633_v38, %v637_v35  ;;  %v640_v44 = vld [vmem:[#allocation5 + $0xfd0] sm:$0xff] }
 0x351   :  { %7115 = vmatprep.subr.bf16.mxu0 %v10057_v46  ;;  %7443 = vmatprep.subr.bf16.mxu1 %v10059_v47  ;;  %v644_v46 = vld [vmem:[#allocation5 + $0xff0] sm:$0xff]  ;;  %v641_v47 = vld [vmem:[#allocation5 + $0xfd8] sm:$0xff] }
 0x352   :  { %v10113_v52 = vcombine.high %v640_v44, %v644_v46  ;;  %v10112_v60 = vcombine.low %v640_v44, %v644_v46  ;;  %v10114_v13 = vcombine.low %v641_v47, %v645_v48  ;;  %v688_v35 = vld [vmem:[#allocation5 + $0x1150] sm:$0xff] }
 0x354   :  { %7116 = vmatpush1.bf16.msra.mxu0 %v10056_v40  ;;  %7444 = vmatpush1.bf16.msra.mxu1 %v10058_v53  ;;  %v10115_v40 = vcombine.high %v641_v47, %v645_v48  ;;  %v648_v53 = vld [vmem:[#allocation5 + $0x1010] sm:$0xff] }
 0x355   :  { %7117 = vmatprep.subr.bf16.mxu0 %v10065_v54  ;;  %7445 = vmatprep.subr.bf16.mxu1 %v10067_v56  ;;  %v652_v54 = vld [vmem:[#allocation5 + $0x1030] sm:$0xff]  ;;  %v649_v56 = vld [vmem:[#allocation5 + $0x1018] sm:$0xff] }
 0x356   :  { %v10121_v62 = vcombine.high %v648_v53, %v652_v54  ;;  %v10120_v4 = vcombine.low %v648_v53, %v652_v54  ;;  %v10122_v5 = vcombine.low %v649_v56, %v653_v59  ;;  %v696_v48 = vld [vmem:[#allocation5 + $0x1190] sm:$0xff] }
 0x358   :  { %7118 = vmatpush1.bf16.msra.mxu0 %v10064_v63  ;;  %7446 = vmatpush1.bf16.msra.mxu1 %v10066_v0  ;;  %v10123_v63 = vcombine.high %v649_v56, %v653_v59  ;;  %v656_v0 = vld [vmem:[#allocation5 + $0x1050] sm:$0xff] }
 0x359   :  { %7119 = vmatprep.subr.bf16.mxu0 %v10073_v49  ;;  %7447 = vmatprep.subr.bf16.mxu1 %v10075_v1  ;;  %v660_v49 = vld [vmem:[#allocation5 + $0x1070] sm:$0xff]  ;;  %v657_v1 = vld [vmem:[#allocation5 + $0x1058] sm:$0xff] }
 0x35a   :  { %v10129_v6 = vcombine.high %v656_v0, %v660_v49  ;;  %v10128_v11 = vcombine.low %v656_v0, %v660_v49  ;;  %v10130_v12 = vcombine.low %v657_v1, %v661_v3  ;;  %v704_v59 = vld [vmem:[#allocation5 + $0x11d0] sm:$0xff] }
 0x35c   :  { %7120 = vmatpush1.bf16.msra.mxu0 %v10072_v7  ;;  %7448 = vmatpush1.bf16.msra.mxu1 %v10074_v24  ;;  %v10131_v7 = vcombine.high %v657_v1, %v661_v3  ;;  %v664_v24 = vld [vmem:[#allocation5 + $0x1090] sm:$0xff] }
 0x35d   :  { %7121 = vmatprep.subr.bf16.mxu0 %v10081_v8  ;;  %7449 = vmatprep.subr.bf16.mxu1 %v10083_v9  ;;  %v668_v8 = vld [vmem:[#allocation5 + $0x10b0] sm:$0xff]  ;;  %v665_v9 = vld [vmem:[#allocation5 + $0x1098] sm:$0xff] }
 0x35e   :  { %v10137_v14 = vcombine.high %v664_v24, %v668_v8  ;;  %v10136_v28 = vcombine.low %v664_v24, %v668_v8  ;;  %v712_v3 = vld [vmem:[#allocation5 + $0x1210] sm:$0xff] }
 0x360   :  { %7122 = vmatpush1.bf16.msra.mxu0 %v10080_v16  ;;  %7450 = vmatpush1.bf16.msra.mxu1 %v10082_v18  ;;  %v10139_v16 = vcombine.high %v665_v9, %v669_v10  ;;  %v672_v18 = vld [vmem:[#allocation5 + $0x10d0] sm:$0xff] }
 0x361   :  { %7123 = vmatprep.subr.bf16.mxu0 %v10089_v20  ;;  %7451 = vmatprep.subr.bf16.mxu1 %v10091_v21  ;;  %v676_v20 = vld [vmem:[#allocation5 + $0x10f0] sm:$0xff]  ;;  %v673_v21 = vld [vmem:[#allocation5 + $0x10d8] sm:$0xff] }
 0x362   :  { %v10145_v26 = vcombine.high %v672_v18, %v676_v20  ;;  %v10147_v31 = vcombine.high %v673_v21, %v677_v22  ;;  %v10144_v36 = vcombine.low %v672_v18, %v676_v20  ;;  %v10146_v37 = vcombine.low %v673_v21, %v677_v22  ;;  %v728_v22 = vld [vmem:[#allocation5 + $0x1290] sm:$0xff] }
 0x364   :  { %7124 = vmatpush1.bf16.msra.mxu0 %v10088_v32  ;;  %7452 = vmatpush1.bf16.msra.mxu1 %v10090_v33  ;;  %v680_v32 = vld [vmem:[#allocation5 + $0x1110] sm:$0xff] }
 0x365   :  { %7125 = vmatprep.subr.bf16.mxu0 %v10097_v34  ;;  %7453 = vmatprep.subr.bf16.mxu1 %v10099_v58  ;;  %v684_v33 = vld [vmem:[#allocation5 + $0x1130] sm:$0xff]  ;;  %v681_v34 = vld [vmem:[#allocation5 + $0x1118] sm:$0xff] }
 0x366   :  { %v685_v58 = vld [vmem:[#allocation5 + $0x1138] sm:$0xff]  ;;  %v10153_v38 = vcombine.high %v680_v32, %v684_v33 }
 0x367   :  { %v10154_v44 = vcombine.low %v681_v34, %v685_v58 }
 0x368   :  { %7126 = vmatpush1.bf16.msra.mxu0 %v10096_v39  ;;  %7454 = vmatpush1.bf16.msra.mxu1 %v10098_v41  ;;  %v692_v39 = vld [vmem:[#allocation5 + $0x1170] sm:$0xff]  ;;  %v689_v41 = vld [vmem:[#allocation5 + $0x1158] sm:$0xff] }
 0x369   :  { %7127 = vmatprep.subr.bf16.mxu0 %v10105_v42  ;;  %7455 = vmatprep.subr.bf16.mxu1 %v10107_v43  ;;  %v693_v42 = vld [vmem:[#allocation5 + $0x1178] sm:$0xff]  ;;  %v10152_v43 = vcombine.low %v680_v32, %v684_v33  ;;  %v10161_v46 = vcombine.high %v688_v35, %v692_v39 }
 0x36a   :  { %v10163_v47 = vcombine.high %v689_v41, %v693_v42  ;;  %v10162_v53 = vcombine.low %v689_v41, %v693_v42  ;;  %v744_v42 = vld [vmem:[#allocation5 + $0x1310] sm:$0xff] }
 0x36c   :  { %7128 = vmatpush1.bf16.msra.mxu0 %v10104_v50  ;;  %7456 = vmatpush1.bf16.msra.mxu1 %v10106_v51  ;;  %v700_v50 = vld [vmem:[#allocation5 + $0x11b0] sm:$0xff]  ;;  %v697_v51 = vld [vmem:[#allocation5 + $0x1198] sm:$0xff] }
 0x36d   :  { %7129 = vmatprep.subr.bf16.mxu0 %v10113_v52  ;;  %7457 = vmatprep.subr.bf16.mxu1 %v10115_v40  ;;  %v701_v52 = vld [vmem:[#allocation5 + $0x11b8] sm:$0xff]  ;;  %v10160_v40 = vcombine.low %v688_v35, %v692_v39  ;;  %v10169_v54 = vcombine.high %v696_v48, %v700_v50 }
 0x36e   :  { %v10171_v56 = vcombine.high %v697_v51, %v701_v52  ;;  %v10170_v0 = vcombine.low %v697_v51, %v701_v52  ;;  %v752_v52 = vld [vmem:[#allocation5 + $0x1350] sm:$0xff] }
 0x370   :  { %7130 = vmatpush1.bf16.msra.mxu0 %v10112_v60  ;;  %7458 = vmatpush1.bf16.msra.mxu1 %v10114_v13  ;;  %v708_v60 = vld [vmem:[#allocation5 + $0x11f0] sm:$0xff]  ;;  %v705_v13 = vld [vmem:[#allocation5 + $0x11d8] sm:$0xff] }
 0x371   :  { %7140 = vmatprep.subr.bf16.mxu0 %v10121_v62  ;;  %7468 = vmatprep.subr.bf16.mxu1 %v10123_v63  ;;  %v709_v62 = vld [vmem:[#allocation5 + $0x11f8] sm:$0xff]  ;;  %v10168_v63 = vcombine.low %v696_v48, %v700_v50  ;;  %v10177_v49 = vcombine.high %v704_v59, %v708_v60 }
 0x372   :  { %v10179_v1 = vcombine.high %v705_v13, %v709_v62  ;;  %v10178_v24 = vcombine.low %v705_v13, %v709_v62  ;;  %v760_v62 = vld [vmem:[#allocation5 + $0x1390] sm:$0xff] }
 0x373   :  { %7132 = vmatmul.mubr.bf16.vlgmr.msra.gmra.mrb[4].mxu0 %v11721_v55  ;;  %7460 = vmatmul.mubr.bf16.vlgmr.msra.gmra.mrb[4].mxu1 %v11721_v55  ;;  %v10138_v55 = vcombine.low %v665_v9, %v669_v10  ;;  %v720_v10 = vld [vmem:[#allocation5 + $0x1250] sm:$0xff] }
 0x374   :  { %7141 = vmatpush1.bf16.msra.mxu0 %v10120_v4  ;;  %7469 = vmatpush1.bf16.msra.mxu1 %v10122_v5  ;;  %v716_v4 = vld [vmem:[#allocation5 + $0x1230] sm:$0xff]  ;;  %v713_v5 = vld [vmem:[#allocation5 + $0x1218] sm:$0xff] }
 0x375   :  { %7142 = vmatprep.subr.bf16.mxu0 %v10129_v6  ;;  %7470 = vmatprep.subr.bf16.mxu1 %v10131_v7  ;;  %v717_v6 = vld [vmem:[#allocation5 + $0x1238] sm:$0xff]  ;;  %v10176_v7 = vcombine.low %v704_v59, %v708_v60  ;;  %v10185_v8 = vcombine.high %v712_v3, %v716_v4 }
 0x376   :  { %7172 = vmatprep.mubr.bf16.mxu0 %v11723_v2  ;;  %7500 = vmatprep.mubr.bf16.mxu1 %v11723_v2  ;;  %v10155_v2 = vcombine.high %v681_v34, %v685_v58  ;;  %v10187_v9 = vcombine.high %v713_v5, %v717_v6  ;;  %v10186_v18 = vcombine.low %v713_v5, %v717_v6  ;;  %v736_v58 = vld [vmem:[#allocation5 + $0x12d0] sm:$0xff] }
 0x377   :  { %v768_v6 = vld [vmem:[#allocation5 + $0x13d0] sm:$0xff] }
 0x378   :  { %7143 = vmatpush1.bf16.msra.mxu0 %v10128_v11  ;;  %7471 = vmatpush1.bf16.msra.mxu1 %v10130_v12  ;;  %v724_v11 = vld [vmem:[#allocation5 + $0x1270] sm:$0xff]  ;;  %v721_v12 = vld [vmem:[#allocation5 + $0x1258] sm:$0xff] }
 0x379   :  { %7144 = vmatprep.subr.bf16.mxu0 %v10137_v14  ;;  %7472 = vmatprep.subr.bf16.mxu1 %v10139_v16  ;;  %v725_v14 = vld [vmem:[#allocation5 + $0x1278] sm:$0xff]  ;;  %v10184_v16 = vcombine.low %v712_v3, %v716_v4  ;;  %v10193_v20 = vcombine.high %v720_v10, %v724_v11 }
 0x37a   :  { %v10195_v21 = vcombine.high %v721_v12, %v725_v14  ;;  %v10194_v32 = vcombine.low %v721_v12, %v725_v14  ;;  %v776_v14 = vld [vmem:[#allocation5 + $0x1410] sm:$0xff] }
 0x37c   :  { %7145 = vmatpush1.bf16.msra.mxu0 %v10136_v28  ;;  %7473 = vmatpush1.bf16.msra.mxu1 %v10138_v55  ;;  %v732_v28 = vld [vmem:[#allocation5 + $0x12b0] sm:$0xff]  ;;  %v729_v55 = vld [vmem:[#allocation5 + $0x1298] sm:$0xff] }
 0x37d   :  { %7146 = vmatprep.subr.bf16.mxu0 %v10145_v26  ;;  %7474 = vmatprep.subr.bf16.mxu1 %v10147_v31  ;;  %v733_v26 = vld [vmem:[#allocation5 + $0x12b8] sm:$0xff]  ;;  %v10192_v31 = vcombine.low %v720_v10, %v724_v11  ;;  %v10201_v33 = vcombine.high %v728_v22, %v732_v28 }
 0x37e   :  { %v10203_v34 = vcombine.high %v729_v55, %v733_v26  ;;  %v10202_v35 = vcombine.low %v729_v55, %v733_v26  ;;  %v784_v26 = vld [vmem:[#allocation5 + $0x1450] sm:$0xff] }
 0x380   :  { %7147 = vmatpush1.bf16.msra.mxu0 %v10144_v36  ;;  %7475 = vmatpush1.bf16.msra.mxu1 %v10146_v37  ;;  %v740_v36 = vld [vmem:[#allocation5 + $0x12f0] sm:$0xff]  ;;  %v737_v37 = vld [vmem:[#allocation5 + $0x12d8] sm:$0xff] }
 0x381   :  { %7148 = vmatprep.subr.bf16.mxu0 %v10153_v38  ;;  %7476 = vmatprep.subr.bf16.mxu1 %v10155_v2  ;;  %v741_v38 = vld [vmem:[#allocation5 + $0x12f8] sm:$0xff]  ;;  %v10200_v2 = vcombine.low %v728_v22, %v732_v28  ;;  %v10209_v39 = vcombine.high %v736_v58, %v740_v36 }
 0x382   :  { %v10211_v41 = vcombine.high %v737_v37, %v741_v38  ;;  %v10210_v48 = vcombine.low %v737_v37, %v741_v38  ;;  %v792_v38 = vld [vmem:[#allocation5 + $0x1490] sm:$0xff] }
 0x384   :  { %7149 = vmatpush1.bf16.msra.mxu0 %v10152_v43  ;;  %7477 = vmatpush1.bf16.msra.mxu1 %v10154_v44  ;;  %v748_v43 = vld [vmem:[#allocation5 + $0x1330] sm:$0xff]  ;;  %v745_v44 = vld [vmem:[#allocation5 + $0x1318] sm:$0xff] }
 0x385   :  { %7150 = vmatprep.subr.bf16.mxu0 %v10161_v46  ;;  %7478 = vmatprep.subr.bf16.mxu1 %v10163_v47  ;;  %v749_v46 = vld [vmem:[#allocation5 + $0x1338] sm:$0xff]  ;;  %v10208_v47 = vcombine.low %v736_v58, %v740_v36  ;;  %v10217_v50 = vcombine.high %v744_v42, %v748_v43 }
 0x386   :  { %v10219_v51 = vcombine.high %v745_v44, %v749_v46  ;;  %v10218_v59 = vcombine.low %v745_v44, %v749_v46  ;;  %v800_v46 = vld [vmem:[#allocation5 + $0x14d0] sm:$0xff] }
 0x388   :  { %7151 = vmatpush1.bf16.msra.mxu0 %v10160_v40  ;;  %7479 = vmatpush1.bf16.msra.mxu1 %v10162_v53  ;;  %v756_v40 = vld [vmem:[#allocation5 + $0x1370] sm:$0xff]  ;;  %v753_v53 = vld [vmem:[#allocation5 + $0x1358] sm:$0xff] }
 0x389   :  { %7152 = vmatprep.subr.bf16.mxu0 %v10169_v54  ;;  %7480 = vmatprep.subr.bf16.mxu1 %v10171_v56  ;;  %v757_v54 = vld [vmem:[#allocation5 + $0x1378] sm:$0xff]  ;;  %v10216_v56 = vcombine.low %v744_v42, %v748_v43  ;;  %v10225_v60 = vcombine.high %v752_v52, %v756_v40 }
 0x38a   :  { %v10227_v13 = vcombine.high %v753_v53, %v757_v54  ;;  %v10226_v3 = vcombine.low %v753_v53, %v757_v54  ;;  %v808_v53 = vld [vmem:[#allocation5 + $0x1510] sm:$0xff] }
 0x38b   :  { %v812_v54 = vld [vmem:[#allocation5 + $0x1530] sm:$0xff] }
 0x38c   :  { %7153 = vmatpush1.bf16.msra.mxu0 %v10168_v63  ;;  %7481 = vmatpush1.bf16.msra.mxu1 %v10170_v0  ;;  %v764_v63 = vld [vmem:[#allocation5 + $0x13b0] sm:$0xff]  ;;  %v761_v0 = vld [vmem:[#allocation5 + $0x1398] sm:$0xff] }
 0x38d   :  { %7154 = vmatprep.subr.bf16.mxu0 %v10177_v49  ;;  %7482 = vmatprep.subr.bf16.mxu1 %v10179_v1  ;;  %v765_v49 = vld [vmem:[#allocation5 + $0x13b8] sm:$0xff]  ;;  %v10224_v1 = vcombine.low %v752_v52, %v756_v40  ;;  %v10233_v4 = vcombine.high %v760_v62, %v764_v63 }
 0x38e   :  { %v10235_v5 = vcombine.high %v761_v0, %v765_v49  ;;  %v10234_v10 = vcombine.low %v761_v0, %v765_v49  ;;  %v820_v0 = vld [vmem:[#allocation5 + $0x1570] sm:$0xff]  ;;  %v817_v49 = vld [vmem:[#allocation5 + $0x1558] sm:$0xff] }
 0x390   :  { %7155 = vmatpush1.bf16.msra.mxu0 %v10176_v7  ;;  %7483 = vmatpush1.bf16.msra.mxu1 %v10178_v24  ;;  %v772_v7 = vld [vmem:[#allocation5 + $0x13f0] sm:$0xff]  ;;  %v769_v24 = vld [vmem:[#allocation5 + $0x13d8] sm:$0xff] }
 0x391   :  { %7156 = vmatprep.subr.bf16.mxu0 %v10185_v8  ;;  %7484 = vmatprep.subr.bf16.mxu1 %v10187_v9  ;;  %v773_v8 = vld [vmem:[#allocation5 + $0x13f8] sm:$0xff]  ;;  %v10232_v9 = vcombine.low %v760_v62, %v764_v63  ;;  %v10241_v11 = vcombine.high %v768_v6, %v772_v7  ;;  %v10281_v62 = vcombine.high %v808_v53, %v812_v54  ;;  %v816_v63 = vld [vmem:[#allocation5 + $0x1550] sm:$0xff] }
 0x392   :  { %v10243_v12 = vcombine.high %v769_v24, %v773_v8  ;;  %v10242_v22 = vcombine.low %v769_v24, %v773_v8  ;;  %v828_v24 = vld [vmem:[#allocation5 + $0x15b0] sm:$0xff]  ;;  %v825_v8 = vld [vmem:[#allocation5 + $0x1598] sm:$0xff] }
 0x394   :  { %7157 = vmatpush1.bf16.msra.mxu0 %v10184_v16  ;;  %7485 = vmatpush1.bf16.msra.mxu1 %v10186_v18  ;;  %v780_v16 = vld [vmem:[#allocation5 + $0x1430] sm:$0xff]  ;;  %v777_v18 = vld [vmem:[#allocation5 + $0x1418] sm:$0xff] }
 0x395   :  { %7158 = vmatprep.subr.bf16.mxu0 %v10193_v20  ;;  %7486 = vmatprep.subr.bf16.mxu1 %v10195_v21  ;;  %v781_v20 = vld [vmem:[#allocation5 + $0x1438] sm:$0xff]  ;;  %v10240_v21 = vcombine.low %v768_v6, %v772_v7  ;;  %v10249_v28 = vcombine.high %v776_v14, %v780_v16  ;;  %v824_v7 = vld [vmem:[#allocation5 + $0x1590] sm:$0xff] }
 0x396   :  { %v10251_v55 = vcombine.high %v777_v18, %v781_v20  ;;  %v10250_v58 = vcombine.low %v777_v18, %v781_v20  ;;  %v836_v18 = vld [vmem:[#allocation5 + $0x15f0] sm:$0xff]  ;;  %v833_v20 = vld [vmem:[#allocation5 + $0x15d8] sm:$0xff] }
 0x398   :  { %7159 = vmatpush1.bf16.msra.mxu0 %v10192_v31  ;;  %7487 = vmatpush1.bf16.msra.mxu1 %v10194_v32  ;;  %v788_v31 = vld [vmem:[#allocation5 + $0x1470] sm:$0xff]  ;;  %v785_v32 = vld [vmem:[#allocation5 + $0x1458] sm:$0xff] }
 0x399   :  { %7160 = vmatprep.subr.bf16.mxu0 %v10201_v33  ;;  %7488 = vmatprep.subr.bf16.mxu1 %v10203_v34  ;;  %v789_v33 = vld [vmem:[#allocation5 + $0x1478] sm:$0xff]  ;;  %v10248_v34 = vcombine.low %v776_v14, %v780_v16  ;;  %v10257_v36 = vcombine.high %v784_v26, %v788_v31  ;;  %v832_v16 = vld [vmem:[#allocation5 + $0x15d0] sm:$0xff] }
 0x39a   :  { %v10259_v37 = vcombine.high %v785_v32, %v789_v33  ;;  %v10258_v42 = vcombine.low %v785_v32, %v789_v33  ;;  %v844_v32 = vld [vmem:[#allocation5 + $0x1630] sm:$0xff]  ;;  %v841_v33 = vld [vmem:[#allocation5 + $0x1618] sm:$0xff] }
 0x39c   :  { %7161 = vmatpush1.bf16.msra.mxu0 %v10200_v2  ;;  %7489 = vmatpush1.bf16.msra.mxu1 %v10202_v35  ;;  %v796_v2 = vld [vmem:[#allocation5 + $0x14b0] sm:$0xff]  ;;  %v793_v35 = vld [vmem:[#allocation5 + $0x1498] sm:$0xff] }
 0x39d   :  { %7162 = vmatprep.subr.bf16.mxu0 %v10209_v39  ;;  %7490 = vmatprep.subr.bf16.mxu1 %v10211_v41  ;;  %v797_v39 = vld [vmem:[#allocation5 + $0x14b8] sm:$0xff]  ;;  %v10256_v41 = vcombine.low %v784_v26, %v788_v31  ;;  %v10265_v43 = vcombine.high %v792_v38, %v796_v2  ;;  %v840_v31 = vld [vmem:[#allocation5 + $0x1610] sm:$0xff] }
 0x39e   :  { %v10267_v44 = vcombine.high %v793_v35, %v797_v39 }
 0x3a0   :  { %7163 = vmatpush1.bf16.msra.mxu0 %v10208_v47  ;;  %7491 = vmatpush1.bf16.msra.mxu1 %v10210_v48  ;;  %v804_v47 = vld [vmem:[#allocation5 + $0x14f0] sm:$0xff]  ;;  %v801_v48 = vld [vmem:[#allocation5 + $0x14d8] sm:$0xff] }
 0x3a1   :  { %7164 = vmatprep.subr.bf16.mxu0 %v10217_v50  ;;  %7492 = vmatprep.subr.bf16.mxu1 %v10219_v51  ;;  %v805_v50 = vld [vmem:[#allocation5 + $0x14f8] sm:$0xff]  ;;  %v10264_v51 = vcombine.low %v792_v38, %v796_v2  ;;  %v10273_v52 = vcombine.high %v800_v46, %v804_v47  ;;  %v848_v2 = vld [vmem:[#allocation5 + $0x1650] sm:$0xff] }
 0x3a2   :  { %v10275_v40 = vcombine.high %v801_v48, %v805_v50 }
 0x3a4   :  { %7165 = vmatpush1.bf16.msra.mxu0 %v10216_v56  ;;  %7493 = vmatpush1.bf16.msra.mxu1 %v10218_v59  ;;  %v809_v56 = vld [vmem:[#allocation5 + $0x1518] sm:$0xff] }
 0x3a5   :  { %7166 = vmatprep.subr.bf16.mxu0 %v10225_v60  ;;  %7494 = vmatprep.subr.bf16.mxu1 %v10227_v13  ;;  %v813_v59 = vld [vmem:[#allocation5 + $0x1538] sm:$0xff]  ;;  %v10272_v60 = vcombine.low %v800_v46, %v804_v47  ;;  %v10274_v13 = vcombine.low %v801_v48, %v805_v50  ;;  %v856_v47 = vld [vmem:[#allocation5 + $0x1690] sm:$0xff] }
 0x3a6   :  { %v860_v48 = vld [vmem:[#allocation5 + $0x16b0] sm:$0xff]  ;;  %v857_v50 = vld [vmem:[#allocation5 + $0x1698] sm:$0xff] }
 0x3a8   :  { %7167 = vmatpush1.bf16.msra.mxu0 %v10224_v1  ;;  %7495 = vmatpush1.bf16.msra.mxu1 %v10226_v3  ;;  %v821_v1 = vld [vmem:[#allocation5 + $0x1578] sm:$0xff]  ;;  %v10280_v3 = vcombine.low %v808_v53, %v812_v54  ;;  %v864_v54 = vld [vmem:[#allocation5 + $0x16d0] sm:$0xff] }
 0x3a9   :  { %7168 = vmatprep.subr.bf16.mxu0 %v10233_v4  ;;  %7496 = vmatprep.subr.bf16.mxu1 %v10235_v5  ;;  %v10282_v4 = vcombine.low %v809_v56, %v813_v59  ;;  %v10289_v5 = vcombine.high %v816_v63, %v820_v0  ;;  %v10291_v6 = vcombine.high %v817_v49, %v821_v1 }
 0x3ac   :  { %7169 = vmatpush1.bf16.msra.mxu0 %v10232_v9  ;;  %7497 = vmatpush1.bf16.msra.mxu1 %v10234_v10  ;;  %v829_v9 = vld [vmem:[#allocation5 + $0x15b8] sm:$0xff]  ;;  %v10288_v10 = vcombine.low %v816_v63, %v820_v0  ;;  %v872_v0 = vld [vmem:[#allocation5 + $0x1710] sm:$0xff] }
 0x3ad   :  { %7170 = vmatprep.subr.bf16.mxu0 %v10241_v11  ;;  %7498 = vmatprep.subr.bf16.mxu1 %v10243_v12  ;;  %v10290_v11 = vcombine.low %v817_v49, %v821_v1  ;;  %v10297_v12 = vcombine.high %v824_v7, %v828_v24  ;;  %v10299_v14 = vcombine.high %v825_v8, %v829_v9  ;;  %v876_v49 = vld [vmem:[#allocation5 + $0x1730] sm:$0xff]  ;;  %v873_v1 = vld [vmem:[#allocation5 + $0x1718] sm:$0xff] }
 0x3b0   :  { %7171 = vmatpush1.bf16.msra.mxu0 %v10240_v21  ;;  %7499 = vmatpush1.bf16.msra.mxu1 %v10242_v22  ;;  %v837_v21 = vld [vmem:[#allocation5 + $0x15f8] sm:$0xff]  ;;  %v10296_v22 = vcombine.low %v824_v7, %v828_v24  ;;  %v880_v24 = vld [vmem:[#allocation5 + $0x1750] sm:$0xff] }
 0x3b1   :  { %7181 = vmatprep.subr.bf16.mxu0 %v10249_v28  ;;  %7509 = vmatprep.subr.bf16.mxu1 %v10251_v55  ;;  %v10298_v28 = vcombine.low %v825_v8, %v829_v9  ;;  %v10305_v55 = vcombine.high %v832_v16, %v836_v18  ;;  %v10307_v26 = vcombine.high %v833_v20, %v837_v21  ;;  %v884_v8 = vld [vmem:[#allocation5 + $0x1770] sm:$0xff]  ;;  %v881_v9 = vld [vmem:[#allocation5 + $0x1758] sm:$0xff] }
 0x3b3   :  { %7173 = vmatmul.mubr.bf16.vlgmr.msra.gmra.mrb[4].mxu0 %v11729_v15  ;;  %7501 = vmatmul.mubr.bf16.vlgmr.msra.gmra.mrb[4].mxu1 %v11729_v15  ;;  %v10266_v15 = vcombine.low %v793_v35, %v797_v39  ;;  %v852_v35 = vld [vmem:[#allocation5 + $0x1670] sm:$0xff]  ;;  %v849_v39 = vld [vmem:[#allocation5 + $0x1658] sm:$0xff] }
 0x3b4   :  { %7182 = vmatpush1.bf16.msra.mxu0 %v10248_v34  ;;  %7510 = vmatpush1.bf16.msra.mxu1 %v10250_v58  ;;  %v845_v34 = vld [vmem:[#allocation5 + $0x1638] sm:$0xff]  ;;  %v10304_v58 = vcombine.low %v832_v16, %v836_v18  ;;  %v888_v18 = vld [vmem:[#allocation5 + $0x1790] sm:$0xff] }
 0x3b5   :  { %7183 = vmatprep.subr.bf16.mxu0 %v10257_v36  ;;  %7511 = vmatprep.subr.bf16.mxu1 %v10259_v37  ;;  %v10306_v36 = vcombine.low %v833_v20, %v837_v21  ;;  %v10313_v37 = vcombine.high %v840_v31, %v844_v32  ;;  %v10315_v38 = vcombine.high %v841_v33, %v845_v34  ;;  %v892_v20 = vld [vmem:[#allocation5 + $0x17b0] sm:$0xff]  ;;  %v889_v21 = vld [vmem:[#allocation5 + $0x1798] sm:$0xff] }
 0x3b6   :  { %7213 = vmatprep.mubr.bf16.mxu0 %v11731_v27  ;;  %7541 = vmatprep.mubr.bf16.mxu1 %v11731_v27  ;;  %v10283_v27 = vcombine.high %v809_v56, %v813_v59  ;;  %v868_v56 = vld [vmem:[#allocation5 + $0x16f0] sm:$0xff]  ;;  %v865_v59 = vld [vmem:[#allocation5 + $0x16d8] sm:$0xff] }
 0x3b8   :  { %7184 = vmatpush1.bf16.msra.mxu0 %v10256_v41  ;;  %7512 = vmatpush1.bf16.msra.mxu1 %v10258_v42  ;;  %v853_v41 = vld [vmem:[#allocation5 + $0x1678] sm:$0xff]  ;;  %v10312_v42 = vcombine.low %v840_v31, %v844_v32  ;;  %v896_v32 = vld [vmem:[#allocation5 + $0x17d0] sm:$0xff] }
 0x3b9   :  { %7185 = vmatprep.subr.bf16.mxu0 %v10265_v43  ;;  %7513 = vmatprep.subr.bf16.mxu1 %v10267_v44  ;;  %v10314_v43 = vcombine.low %v841_v33, %v845_v34  ;;  %v10321_v44 = vcombine.high %v848_v2, %v852_v35  ;;  %v10323_v46 = vcombine.high %v849_v39, %v853_v41  ;;  %v900_v33 = vld [vmem:[#allocation5 + $0x17f0] sm:$0xff]  ;;  %v897_v34 = vld [vmem:[#allocation5 + $0x17d8] sm:$0xff] }
 0x3bc   :  { %7186 = vmatpush1.bf16.msra.mxu0 %v10264_v51  ;;  %7514 = vmatpush1.bf16.msra.mxu1 %v10266_v15  ;;  %v861_v51 = vld [vmem:[#allocation5 + $0x16b8] sm:$0xff]  ;;  %v10320_v15 = vcombine.low %v848_v2, %v852_v35  ;;  %v904_v35 = vld [vmem:[#allocation5 + $0x1810] sm:$0xff] }
 0x3bd   :  { %7187 = vmatprep.subr.bf16.mxu0 %v10273_v52  ;;  %7515 = vmatprep.subr.bf16.mxu1 %v10275_v40  ;;  %v10322_v52 = vcombine.low %v849_v39, %v853_v41  ;;  %v10329_v40 = vcombine.high %v856_v47, %v860_v48  ;;  %v10331_v53 = vcombine.high %v857_v50, %v861_v51  ;;  %v908_v39 = vld [vmem:[#allocation5 + $0x1830] sm:$0xff]  ;;  %v905_v41 = vld [vmem:[#allocation5 + $0x1818] sm:$0xff] }
 0x3c0   :  { %7188 = vmatpush1.bf16.msra.mxu0 %v10272_v60  ;;  %7516 = vmatpush1.bf16.msra.mxu1 %v10274_v13  ;;  %v869_v60 = vld [vmem:[#allocation5 + $0x16f8] sm:$0xff]  ;;  %v10328_v13 = vcombine.low %v856_v47, %v860_v48  ;;  %v912_v48 = vld [vmem:[#allocation5 + $0x1850] sm:$0xff] }
 0x3c1   :  { %7189 = vmatprep.subr.bf16.mxu0 %v10281_v62  ;;  %7517 = vmatprep.subr.bf16.mxu1 %v10283_v27  ;;  %v10330_v62 = vcombine.low %v857_v50, %v861_v51  ;;  %v10337_v27 = vcombine.high %v864_v54, %v868_v56  ;;  %v10339_v63 = vcombine.high %v865_v59, %v869_v60  ;;  %v916_v50 = vld [vmem:[#allocation5 + $0x1870] sm:$0xff]  ;;  %v913_v51 = vld [vmem:[#allocation5 + $0x1858] sm:$0xff] }
 0x3c4   :  { %7190 = vmatpush1.bf16.msra.mxu0 %v10280_v3  ;;  %7518 = vmatpush1.bf16.msra.mxu1 %v10282_v4  ;;  %v877_v3 = vld [vmem:[#allocation5 + $0x1738] sm:$0xff]  ;;  %v10336_v4 = vcombine.low %v864_v54, %v868_v56  ;;  %v920_v56 = vld [vmem:[#allocation5 + $0x1890] sm:$0xff] }
 0x3c5   :  { %7191 = vmatprep.subr.bf16.mxu0 %v10289_v5  ;;  %7519 = vmatprep.subr.bf16.mxu1 %v10291_v6  ;;  %v10338_v5 = vcombine.low %v865_v59, %v869_v60  ;;  %v10345_v6 = vcombine.high %v872_v0, %v876_v49  ;;  %v10347_v7 = vcombine.high %v873_v1, %v877_v3  ;;  %v924_v59 = vld [vmem:[#allocation5 + $0x18b0] sm:$0xff]  ;;  %v921_v60 = vld [vmem:[#allocation5 + $0x1898] sm:$0xff] }
 0x3c8   :  { %7192 = vmatpush1.bf16.msra.mxu0 %v10288_v10  ;;  %7520 = vmatpush1.bf16.msra.mxu1 %v10290_v11  ;;  %v885_v10 = vld [vmem:[#allocation5 + $0x1778] sm:$0xff]  ;;  %v10344_v11 = vcombine.low %v872_v0, %v876_v49  ;;  %v928_v49 = vld [vmem:[#allocation5 + $0x18d0] sm:$0xff] }
 0x3c9   :  { %7193 = vmatprep.subr.bf16.mxu0 %v10297_v12  ;;  %7521 = vmatprep.subr.bf16.mxu1 %v10299_v14  ;;  %v10346_v12 = vcombine.low %v873_v1, %v877_v3  ;;  %v10353_v14 = vcombine.high %v880_v24, %v884_v8  ;;  %v10355_v16 = vcombine.high %v881_v9, %v885_v10  ;;  %v932_v1 = vld [vmem:[#allocation5 + $0x18f0] sm:$0xff]  ;;  %v929_v3 = vld [vmem:[#allocation5 + $0x18d8] sm:$0xff] }
 0x3cc   :  { %7194 = vmatpush1.bf16.msra.mxu0 %v10296_v22  ;;  %7522 = vmatpush1.bf16.msra.mxu1 %v10298_v28  ;;  %v893_v22 = vld [vmem:[#allocation5 + $0x17b8] sm:$0xff]  ;;  %v10352_v28 = vcombine.low %v880_v24, %v884_v8  ;;  %v936_v24 = vld [vmem:[#allocation5 + $0x1910] sm:$0xff] }
 0x3cd   :  { %7195 = vmatprep.subr.bf16.mxu0 %v10305_v55  ;;  %7523 = vmatprep.subr.bf16.mxu1 %v10307_v26  ;;  %v10354_v55 = vcombine.low %v881_v9, %v885_v10  ;;  %v10361_v26 = vcombine.high %v888_v18, %v892_v20  ;;  %v10363_v31 = vcombine.high %v889_v21, %v893_v22  ;;  %v940_v8 = vld [vmem:[#allocation5 + $0x1930] sm:$0xff]  ;;  %v937_v9 = vld [vmem:[#allocation5 + $0x1918] sm:$0xff] }
 0x3ce   :  { %v941_v10 = vld [vmem:[#allocation5 + $0x1938] sm:$0xff] }
 0x3d0   :  { %7196 = vmatpush1.bf16.msra.mxu0 %v10304_v58  ;;  %7524 = vmatpush1.bf16.msra.mxu1 %v10306_v36  ;;  %v901_v58 = vld [vmem:[#allocation5 + $0x17f8] sm:$0xff]  ;;  %v10360_v36 = vcombine.low %v888_v18, %v892_v20  ;;  %v948_v18 = vld [vmem:[#allocation5 + $0x1970] sm:$0xff] }
 0x3d1   :  { %7197 = vmatprep.subr.bf16.mxu0 %v10313_v37  ;;  %7525 = vmatprep.subr.bf16.mxu1 %v10315_v38  ;;  %v10362_v37 = vcombine.low %v889_v21, %v893_v22  ;;  %v10369_v38 = vcombine.high %v896_v32, %v900_v33  ;;  %v10371_v2 = vcombine.high %v897_v34, %v901_v58  ;;  %v945_v20 = vld [vmem:[#allocation5 + $0x1958] sm:$0xff] }
 0x3d2   :  { %v949_v21 = vld [vmem:[#allocation5 + $0x1978] sm:$0xff]  ;;  %v10408_v22 = vcombine.low %v936_v24, %v940_v8 }
 0x3d4   :  { %7198 = vmatpush1.bf16.msra.mxu0 %v10312_v42  ;;  %7526 = vmatpush1.bf16.msra.mxu1 %v10314_v43  ;;  %v909_v42 = vld [vmem:[#allocation5 + $0x1838] sm:$0xff]  ;;  %v10368_v43 = vcombine.low %v896_v32, %v900_v33  ;;  %v956_v32 = vld [vmem:[#allocation5 + $0x19b0] sm:$0xff] }
 0x3d5   :  { %7199 = vmatprep.subr.bf16.mxu0 %v10321_v44  ;;  %7527 = vmatprep.subr.bf16.mxu1 %v10323_v46  ;;  %v10370_v44 = vcombine.low %v897_v34, %v901_v58  ;;  %v10377_v46 = vcombine.high %v904_v35, %v908_v39  ;;  %v10379_v47 = vcombine.high %v905_v41, %v909_v42  ;;  %v953_v33 = vld [vmem:[#allocation5 + $0x1998] sm:$0xff] }
 0x3d6   :  { %v957_v34 = vld [vmem:[#allocation5 + $0x19b8] sm:$0xff] }
 0x3d8   :  { %7200 = vmatpush1.bf16.msra.mxu0 %v10320_v15  ;;  %7528 = vmatpush1.bf16.msra.mxu1 %v10322_v52  ;;  %v917_v15 = vld [vmem:[#allocation5 + $0x1878] sm:$0xff]  ;;  %v10376_v52 = vcombine.low %v904_v35, %v908_v39  ;;  %v964_v35 = vld [vmem:[#allocation5 + $0x19f0] sm:$0xff] }
 0x3d9   :  { %7201 = vmatprep.subr.bf16.mxu0 %v10329_v40  ;;  %7529 = vmatprep.subr.bf16.mxu1 %v10331_v53  ;;  %v10378_v40 = vcombine.low %v905_v41, %v909_v42  ;;  %v10385_v53 = vcombine.high %v912_v48, %v916_v50  ;;  %v10387_v54 = vcombine.high %v913_v51, %v917_v15  ;;  %v961_v39 = vld [vmem:[#allocation5 + $0x19d8] sm:$0xff] }
 0x3da   :  { %v965_v41 = vld [vmem:[#allocation5 + $0x19f8] sm:$0xff] }
 0x3dc   :  { %7202 = vmatpush1.bf16.msra.mxu0 %v10328_v13  ;;  %7530 = vmatpush1.bf16.msra.mxu1 %v10330_v62  ;;  %v925_v13 = vld [vmem:[#allocation5 + $0x18b8] sm:$0xff]  ;;  %v10384_v62 = vcombine.low %v912_v48, %v916_v50  ;;  %v972_v48 = vld [vmem:[#allocation5 + $0x1a30] sm:$0xff] }
 0x3dd   :  { %7203 = vmatprep.subr.bf16.mxu0 %v10337_v27  ;;  %7531 = vmatprep.subr.bf16.mxu1 %v10339_v63  ;;  %v10386_v27 = vcombine.low %v913_v51, %v917_v15  ;;  %v10393_v63 = vcombine.high %v920_v56, %v924_v59  ;;  %v10395_v0 = vcombine.high %v921_v60, %v925_v13  ;;  %v969_v50 = vld [vmem:[#allocation5 + $0x1a18] sm:$0xff] }
 0x3de   :  { %v973_v51 = vld [vmem:[#allocation5 + $0x1a38] sm:$0xff] }
 0x3e0   :  { %7204 = vmatpush1.bf16.msra.mxu0 %v10336_v4  ;;  %7532 = vmatpush1.bf16.msra.mxu1 %v10338_v5  ;;  %v933_v4 = vld [vmem:[#allocation5 + $0x18f8] sm:$0xff]  ;;  %v10392_v5 = vcombine.low %v920_v56, %v924_v59  ;;  %v980_v56 = vld [vmem:[#allocation5 + $0x1a70] sm:$0xff] }
 0x3e1   :  { %7205 = vmatprep.subr.bf16.mxu0 %v10345_v6  ;;  %7533 = vmatprep.subr.bf16.mxu1 %v10347_v7  ;;  %v10401_v6 = vcombine.high %v928_v49, %v932_v1  ;;  %v10403_v7 = vcombine.high %v929_v3, %v933_v4  ;;  %v977_v59 = vld [vmem:[#allocation5 + $0x1a58] sm:$0xff] }
 0x3e4   :  { %7206 = vmatpush1.bf16.msra.mxu0 %v10344_v11  ;;  %7534 = vmatpush1.bf16.msra.mxu1 %v10346_v12  ;;  %v10400_v11 = vcombine.low %v928_v49, %v932_v1  ;;  %v10402_v12 = vcombine.low %v929_v3, %v933_v4  ;;  %v988_v49 = vld [vmem:[#allocation5 + $0x1ab0] sm:$0xff]  ;;  %v985_v1 = vld [vmem:[#allocation5 + $0x1a98] sm:$0xff] }
 0x3e5   :  { %7207 = vmatprep.subr.bf16.mxu0 %v10353_v14  ;;  %7535 = vmatprep.subr.bf16.mxu1 %v10355_v16  ;;  %v10409_v14 = vcombine.high %v936_v24, %v940_v8  ;;  %v944_v16 = vld [vmem:[#allocation5 + $0x1950] sm:$0xff]  ;;  %v989_v3 = vld [vmem:[#allocation5 + $0x1ab8] sm:$0xff] }
 0x3e6   :  { %v10416_v58 = vcombine.low %v944_v16, %v948_v18  ;;  %v996_v24 = vld [vmem:[#allocation5 + $0x1af0] sm:$0xff]  ;;  %v993_v8 = vld [vmem:[#allocation5 + $0x1ad8] sm:$0xff] }
 0x3e8   :  { %7208 = vmatpush1.bf16.msra.mxu0 %v10352_v28  ;;  %7536 = vmatpush1.bf16.msra.mxu1 %v10354_v55  ;;  %v10410_v28 = vcombine.low %v937_v9, %v941_v10  ;;  %v10417_v55 = vcombine.high %v944_v16, %v948_v18  ;;  %v1004_v16 = vld [vmem:[#allocation5 + $0x1b30] sm:$0xff]  ;;  %v1001_v18 = vld [vmem:[#allocation5 + $0x1b18] sm:$0xff] }
 0x3e9   :  { %7209 = vmatprep.subr.bf16.mxu0 %v10361_v26  ;;  %7537 = vmatprep.subr.bf16.mxu1 %v10363_v31  ;;  %v10419_v26 = vcombine.high %v945_v20, %v949_v21  ;;  %v952_v31 = vld [vmem:[#allocation5 + $0x1990] sm:$0xff] }
 0x3ea   :  { %v10424_v42 = vcombine.low %v952_v31, %v956_v32 }
 0x3ec   :  { %7210 = vmatpush1.bf16.msra.mxu0 %v10360_v36  ;;  %7538 = vmatpush1.bf16.msra.mxu1 %v10362_v37  ;;  %v10418_v36 = vcombine.low %v945_v20, %v949_v21  ;;  %v10425_v37 = vcombine.high %v952_v31, %v956_v32  ;;  %v1005_v20 = vld [vmem:[#allocation5 + $0x1b38] sm:$0xff]  ;;  %v1012_v31 = vld [vmem:[#allocation5 + $0x1b70] sm:$0xff] }
 0x3ed   :  { %7211 = vmatprep.subr.bf16.mxu0 %v10369_v38  ;;  %7539 = vmatprep.subr.bf16.mxu1 %v10371_v2  ;;  %v10427_v38 = vcombine.high %v953_v33, %v957_v34  ;;  %v960_v2 = vld [vmem:[#allocation5 + $0x19d0] sm:$0xff]  ;;  %v1009_v32 = vld [vmem:[#allocation5 + $0x1b58] sm:$0xff] }
 0x3ee   :  { %v10432_v15 = vcombine.low %v960_v2, %v964_v35 }
 0x3f0   :  { %7212 = vmatpush1.bf16.msra.mxu0 %v10368_v43  ;;  %7540 = vmatpush1.bf16.msra.mxu1 %v10370_v44  ;;  %v10426_v43 = vcombine.low %v953_v33, %v957_v34  ;;  %v10433_v44 = vcombine.high %v960_v2, %v964_v35  ;;  %v1013_v33 = vld [vmem:[#allocation5 + $0x1b78] sm:$0xff]  ;;  %v1020_v2 = vld [vmem:[#allocation5 + $0x1bb0] sm:$0xff] }
 0x3f1   :  { %7222 = vmatprep.subr.bf16.mxu0 %v10377_v46  ;;  %7550 = vmatprep.subr.bf16.mxu1 %v10379_v47  ;;  %v10435_v46 = vcombine.high %v961_v39, %v965_v41  ;;  %v968_v47 = vld [vmem:[#allocation5 + $0x1a10] sm:$0xff]  ;;  %v1017_v35 = vld [vmem:[#allocation5 + $0x1b98] sm:$0xff] }
 0x3f3   :  { %7214 = vmatmul.mubr.bf16.vlgmr.msra.gmra.mrb[4].mxu0 %v11737_v45  ;;  %7542 = vmatmul.mubr.bf16.vlgmr.msra.gmra.mrb[4].mxu1 %v11737_v45  ;;  %v10394_v45 = vcombine.low %v921_v60, %v925_v13  ;;  %v981_v60 = vld [vmem:[#allocation5 + $0x1a78] sm:$0xff]  ;;  %v10440_v13 = vcombine.low %v968_v47, %v972_v48 }
 0x3f4   :  { %7223 = vmatpush1.bf16.msra.mxu0 %v10376_v52  ;;  %7551 = vmatpush1.bf16.msra.mxu1 %v10378_v40  ;;  %v10434_v52 = vcombine.low %v961_v39, %v965_v41  ;;  %v10441_v40 = vcombine.high %v968_v47, %v972_v48  ;;  %v1021_v39 = vld [vmem:[#allocation5 + $0x1bb8] sm:$0xff]  ;;  %v1028_v47 = vld [vmem:[#allocation5 + $0x1bf0] sm:$0xff] }
 0x3f5   :  { %7224 = vmatprep.subr.bf16.mxu0 %v10385_v53  ;;  %7552 = vmatprep.subr.bf16.mxu1 %v10387_v54  ;;  %v10443_v53 = vcombine.high %v969_v50, %v973_v51  ;;  %v976_v54 = vld [vmem:[#allocation5 + $0x1a50] sm:$0xff]  ;;  %v1025_v48 = vld [vmem:[#allocation5 + $0x1bd8] sm:$0xff] }
 0x3f6   :  { %7254 = vmatprep.mubr.bf16.mxu0 %v11739_v57  ;;  %7582 = vmatprep.mubr.bf16.mxu1 %v11739_v57  ;;  %v10411_v57 = vcombine.high %v937_v9, %v941_v10  ;;  %v10448_v4 = vcombine.low %v976_v54, %v980_v56  ;;  %v997_v9 = vld [vmem:[#allocation5 + $0x1af8] sm:$0xff] }
 0x3f8   :  { %7225 = vmatpush1.bf16.msra.mxu0 %v10384_v62  ;;  %7553 = vmatpush1.bf16.msra.mxu1 %v10386_v27  ;;  %v10442_v62 = vcombine.low %v969_v50, %v973_v51  ;;  %v10449_v27 = vcombine.high %v976_v54, %v980_v56  ;;  %v1029_v50 = vld [vmem:[#allocation5 + $0x1bf8] sm:$0xff]  ;;  %v1036_v54 = vld [vmem:[#allocation5 + $0x1c30] sm:$0xff] }
 0x3f9   :  { %7226 = vmatprep.subr.bf16.mxu0 %v10393_v63  ;;  %7554 = vmatprep.subr.bf16.mxu1 %v10395_v0  ;;  %v10451_v63 = vcombine.high %v977_v59, %v981_v60  ;;  %v984_v0 = vld [vmem:[#allocation5 + $0x1a90] sm:$0xff]  ;;  %v1033_v56 = vld [vmem:[#allocation5 + $0x1c18] sm:$0xff] }
 0x3fa   :  { %v10456_v10 = vcombine.low %v984_v0, %v988_v49 }
 0x3fc   :  { %7227 = vmatpush1.bf16.msra.mxu0 %v10392_v5  ;;  %7555 = vmatpush1.bf16.msra.mxu1 %v10394_v45  ;;  %v10450_v5 = vcombine.low %v977_v59, %v981_v60  ;;  %v10457_v45 = vcombine.high %v984_v0, %v988_v49  ;;  %v1037_v59 = vld [vmem:[#allocation5 + $0x1c38] sm:$0xff]  ;;  %v1044_v0 = vld [vmem:[#allocation5 + $0x1c70] sm:$0xff] }
 0x3fd   :  { %7228 = vmatprep.subr.bf16.mxu0 %v10401_v6  ;;  %7556 = vmatprep.subr.bf16.mxu1 %v10403_v7  ;;  %v10459_v6 = vcombine.high %v985_v1, %v989_v3  ;;  %v992_v7 = vld [vmem:[#allocation5 + $0x1ad0] sm:$0xff]  ;;  %v1041_v49 = vld [vmem:[#allocation5 + $0x1c58] sm:$0xff] }
 0x3fe   :  { %v10464_v21 = vcombine.low %v992_v7, %v996_v24 }
 0x400   :  { %7229 = vmatpush1.bf16.msra.mxu0 %v10400_v11  ;;  %7557 = vmatpush1.bf16.msra.mxu1 %v10402_v12  ;;  %v10458_v11 = vcombine.low %v985_v1, %v989_v3  ;;  %v10465_v12 = vcombine.high %v992_v7, %v996_v24  ;;  %v1045_v1 = vld [vmem:[#allocation5 + $0x1c78] sm:$0xff]  ;;  %v1052_v7 = vld [vmem:[#allocation5 + $0x1cb0] sm:$0xff] }
 0x401   :  { %7230 = vmatprep.subr.bf16.mxu0 %v10409_v14  ;;  %7558 = vmatprep.subr.bf16.mxu1 %v10411_v57  ;;  %v10467_v14 = vcombine.high %v993_v8, %v997_v9  ;;  %v1000_v57 = vld [vmem:[#allocation5 + $0x1b10] sm:$0xff]  ;;  %v1049_v24 = vld [vmem:[#allocation5 + $0x1c98] sm:$0xff] }
 0x402   :  { %v10472_v34 = vcombine.low %v1000_v57, %v1004_v16 }
 0x404   :  { %7231 = vmatpush1.bf16.msra.mxu0 %v10408_v22  ;;  %7559 = vmatpush1.bf16.msra.mxu1 %v10410_v28  ;;  %v10466_v22 = vcombine.low %v993_v8, %v997_v9  ;;  %v10473_v28 = vcombine.high %v1000_v57, %v1004_v16  ;;  %v1053_v8 = vld [vmem:[#allocation5 + $0x1cb8] sm:$0xff]  ;;  %v1060_v57 = vld [vmem:[#allocation5 + $0x1cf0] sm:$0xff] }
 0x405   :  { %7232 = vmatprep.subr.bf16.mxu0 %v10417_v55  ;;  %7560 = vmatprep.subr.bf16.mxu1 %v10419_v26  ;;  %v10475_v55 = vcombine.high %v1001_v18, %v1005_v20  ;;  %v1008_v26 = vld [vmem:[#allocation5 + $0x1b50] sm:$0xff]  ;;  %v1057_v16 = vld [vmem:[#allocation5 + $0x1cd8] sm:$0xff] }
 0x406   :  { %v10480_v41 = vcombine.low %v1008_v26, %v1012_v31 }
 0x408   :  { %7233 = vmatpush1.bf16.msra.mxu0 %v10416_v58  ;;  %7561 = vmatpush1.bf16.msra.mxu1 %v10418_v36  ;;  %v10474_v58 = vcombine.low %v1001_v18, %v1005_v20  ;;  %v10481_v36 = vcombine.high %v1008_v26, %v1012_v31  ;;  %v1061_v18 = vld [vmem:[#allocation5 + $0x1cf8] sm:$0xff] }
 0x409   :  { %7234 = vmatprep.subr.bf16.mxu0 %v10425_v37  ;;  %7562 = vmatprep.subr.bf16.mxu1 %v10427_v38  ;;  %v10483_v37 = vcombine.high %v1009_v32, %v1013_v33  ;;  %v1016_v38 = vld [vmem:[#allocation5 + $0x1b90] sm:$0xff]  ;;  %v1065_v26 = vld [vmem:[#allocation5 + $0x1d18] sm:$0xff] }
 0x40a   :  { %v10488_v51 = vcombine.low %v1016_v38, %v1020_v2  ;;  %v1069_v31 = vld [vmem:[#allocation5 + $0x1d38] sm:$0xff] }
 0x40c   :  { %7235 = vmatpush1.bf16.msra.mxu0 %v10424_v42  ;;  %7563 = vmatpush1.bf16.msra.mxu1 %v10426_v43  ;;  %v10482_v42 = vcombine.low %v1009_v32, %v1013_v33  ;;  %v10489_v43 = vcombine.high %v1016_v38, %v1020_v2  ;;  %v10530_v33 = vcombine.low %v1057_v16, %v1061_v18  ;;  %v1077_v38 = vld [vmem:[#allocation5 + $0x1d78] sm:$0xff] }
 0x40d   :  { %7236 = vmatprep.subr.bf16.mxu0 %v10433_v44  ;;  %7564 = vmatprep.subr.bf16.mxu1 %v10435_v46  ;;  %v10491_v44 = vcombine.high %v1017_v35, %v1021_v39  ;;  %v1024_v46 = vld [vmem:[#allocation5 + $0x1bd0] sm:$0xff] }
 0x40e   :  { %v10496_v60 = vcombine.low %v1024_v46, %v1028_v47 }
 0x410   :  { %7237 = vmatpush1.bf16.msra.mxu0 %v10432_v15  ;;  %7565 = vmatpush1.bf16.msra.mxu1 %v10434_v52  ;;  %v10490_v15 = vcombine.low %v1017_v35, %v1021_v39  ;;  %v10497_v52 = vcombine.high %v1024_v46, %v1028_v47  ;;  %v10538_v35 = vcombine.low %v1065_v26, %v1069_v31  ;;  %v1085_v46 = vld [vmem:[#allocation5 + $0x1db8] sm:$0xff] }
 0x411   :  { %7238 = vmatprep.subr.bf16.mxu0 %v10441_v40  ;;  %7566 = vmatprep.subr.bf16.mxu1 %v10443_v53  ;;  %v10499_v40 = vcombine.high %v1025_v48, %v1029_v50  ;;  %v1032_v53 = vld [vmem:[#allocation5 + $0x1c10] sm:$0xff] }
 0x412   :  { %v10504_v3 = vcombine.low %v1032_v53, %v1036_v54 }
 0x414   :  { %7239 = vmatpush1.bf16.msra.mxu0 %v10440_v13  ;;  %7567 = vmatpush1.bf16.msra.mxu1 %v10442_v62  ;;  %v10498_v13 = vcombine.low %v1025_v48, %v1029_v50  ;;  %v10505_v62 = vcombine.high %v1032_v53, %v1036_v54  ;;  %v1093_v53 = vld [vmem:[#allocation5 + $0x1df8] sm:$0xff] }
 0x415   :  { %7240 = vmatprep.subr.bf16.mxu0 %v10449_v27  ;;  %7568 = vmatprep.subr.bf16.mxu1 %v10451_v63  ;;  %v10507_v27 = vcombine.high %v1033_v56, %v1037_v59  ;;  %v1040_v63 = vld [vmem:[#allocation5 + $0x1c50] sm:$0xff] }
 0x416   :  { %v10512_v9 = vcombine.low %v1040_v63, %v1044_v0 }
 0x418   :  { %7241 = vmatpush1.bf16.msra.mxu0 %v10448_v4  ;;  %7569 = vmatpush1.bf16.msra.mxu1 %v10450_v5  ;;  %v10506_v4 = vcombine.low %v1033_v56, %v1037_v59  ;;  %v10513_v5 = vcombine.high %v1040_v63, %v1044_v0  ;;  %v1101_v63 = vld [vmem:[#allocation5 + $0x1e38] sm:$0xff] }
 0x419   :  { %7242 = vmatprep.subr.bf16.mxu0 %v10457_v45  ;;  %7570 = vmatprep.subr.bf16.mxu1 %v10459_v6  ;;  %v10515_v45 = vcombine.high %v1041_v49, %v1045_v1  ;;  %v1048_v6 = vld [vmem:[#allocation5 + $0x1c90] sm:$0xff] }
 0x41a   :  { %v10520_v20 = vcombine.low %v1048_v6, %v1052_v7 }
 0x41c   :  { %7243 = vmatpush1.bf16.msra.mxu0 %v10456_v10  ;;  %7571 = vmatpush1.bf16.msra.mxu1 %v10458_v11  ;;  %v10514_v10 = vcombine.low %v1041_v49, %v1045_v1  ;;  %v10521_v11 = vcombine.high %v1048_v6, %v1052_v7  ;;  %v1109_v6 = vld [vmem:[#allocation5 + $0x1e78] sm:$0xff] }
 0x41d   :  { %7244 = vmatprep.subr.bf16.mxu0 %v10465_v12  ;;  %7572 = vmatprep.subr.bf16.mxu1 %v10467_v14  ;;  %v10523_v12 = vcombine.high %v1049_v24, %v1053_v8  ;;  %v1056_v14 = vld [vmem:[#allocation5 + $0x1cd0] sm:$0xff] }
 0x41e   :  { %v10528_v32 = vcombine.low %v1056_v14, %v1060_v57 }
 0x420   :  { %7245 = vmatpush1.bf16.msra.mxu0 %v10464_v21  ;;  %7573 = vmatpush1.bf16.msra.mxu1 %v10466_v22  ;;  %v10529_v21 = vcombine.high %v1056_v14, %v1060_v57  ;;  %v10531_v22 = vcombine.high %v1057_v16, %v1061_v18  ;;  %v1117_v14 = vld [vmem:[#allocation5 + $0x1eb8] sm:$0xff] }
 0x421   :  { %7246 = vmatprep.subr.bf16.mxu0 %v10473_v28  ;;  %7574 = vmatprep.subr.bf16.mxu1 %v10475_v55  ;;  %v1064_v28 = vld [vmem:[#allocation5 + $0x1d10] sm:$0xff] }
 0x422   :  { %v1068_v55 = vld [vmem:[#allocation5 + $0x1d30] sm:$0xff] }
 0x423   :  { %v10536_v2 = vcombine.low %v1064_v28, %v1068_v55 }
 0x424   :  { %7247 = vmatpush1.bf16.msra.mxu0 %v10472_v34  ;;  %7575 = vmatpush1.bf16.msra.mxu1 %v10474_v58  ;;  %v10537_v34 = vcombine.high %v1064_v28, %v1068_v55  ;;  %v1072_v58 = vld [vmem:[#allocation5 + $0x1d50] sm:$0xff]  ;;  %v1125_v28 = vld [vmem:[#allocation5 + $0x1ef8] sm:$0xff] }
 0x425   :  { %7248 = vmatprep.subr.bf16.mxu0 %v10481_v36  ;;  %7576 = vmatprep.subr.bf16.mxu1 %v10483_v37  ;;  %v1076_v36 = vld [vmem:[#allocation5 + $0x1d70] sm:$0xff]  ;;  %v1073_v37 = vld [vmem:[#allocation5 + $0x1d58] sm:$0xff] }
 0x426   :  { %v10545_v39 = vcombine.high %v1072_v58, %v1076_v36  ;;  %v10544_v47 = vcombine.low %v1072_v58, %v1076_v36  ;;  %v10546_v48 = vcombine.low %v1073_v37, %v1077_v38  ;;  %v1129_v58 = vld [vmem:[#allocation5 + $0x1f18] sm:$0xff] }
 0x427   :  { %v1133_v36 = vld [vmem:[#allocation5 + $0x1f38] sm:$0xff] }
 0x428   :  { %7249 = vmatpush1.bf16.msra.mxu0 %v10480_v41  ;;  %7577 = vmatpush1.bf16.msra.mxu1 %v10482_v42  ;;  %v10547_v41 = vcombine.high %v1073_v37, %v1077_v38  ;;  %v1080_v42 = vld [vmem:[#allocation5 + $0x1d90] sm:$0xff] }
 0x429   :  { %7250 = vmatprep.subr.bf16.mxu0 %v10489_v43  ;;  %7578 = vmatprep.subr.bf16.mxu1 %v10491_v44  ;;  %v1084_v43 = vld [vmem:[#allocation5 + $0x1db0] sm:$0xff]  ;;  %v1081_v44 = vld [vmem:[#allocation5 + $0x1d98] sm:$0xff] }
 0x42a   :  { %v10553_v50 = vcombine.high %v1080_v42, %v1084_v43  ;;  %v10552_v54 = vcombine.low %v1080_v42, %v1084_v43  ;;  %v10554_v56 = vcombine.low %v1081_v44, %v1085_v46  ;;  %v1137_v43 = vld [vmem:[#allocation5 + $0x1f58] sm:$0xff] }
 0x42c   :  { %7251 = vmatpush1.bf16.msra.mxu0 %v10488_v51  ;;  %7579 = vmatpush1.bf16.msra.mxu1 %v10490_v15  ;;  %v10555_v51 = vcombine.high %v1081_v44, %v1085_v46  ;;  %v1088_v15 = vld [vmem:[#allocation5 + $0x1dd0] sm:$0xff]  ;;  %v1141_v44 = vld [vmem:[#allocation5 + $0x1f78] sm:$0xff] }
 0x42d   :  { %7252 = vmatprep.subr.bf16.mxu0 %v10497_v52  ;;  %7580 = vmatprep.subr.bf16.mxu1 %v10499_v40  ;;  %v1092_v52 = vld [vmem:[#allocation5 + $0x1df0] sm:$0xff]  ;;  %v1089_v40 = vld [vmem:[#allocation5 + $0x1dd8] sm:$0xff] }
 0x42e   :  { %v10561_v59 = vcombine.high %v1088_v15, %v1092_v52  ;;  %v10560_v0 = vcombine.low %v1088_v15, %v1092_v52  ;;  %v10562_v49 = vcombine.low %v1089_v40, %v1093_v53  ;;  %v1148_v15 = vld [vmem:[#allocation5 + $0x1fb0] sm:$0xff] }
 0x430   :  { %7253 = vmatpush1.bf16.msra.mxu0 %v10496_v60  ;;  %7581 = vmatpush1.bf16.msra.mxu1 %v10498_v13  ;;  %v10563_v60 = vcombine.high %v1089_v40, %v1093_v53  ;;  %v1096_v13 = vld [vmem:[#allocation5 + $0x1e10] sm:$0xff]  ;;  %v1145_v40 = vld [vmem:[#allocation5 + $0x1f98] sm:$0xff] }
 0x431   :  { %7263 = vmatprep.subr.bf16.mxu0 %v10505_v62  ;;  %7591 = vmatprep.subr.bf16.mxu1 %v10507_v27  ;;  %v1100_v62 = vld [vmem:[#allocation5 + $0x1e30] sm:$0xff]  ;;  %v1097_v27 = vld [vmem:[#allocation5 + $0x1e18] sm:$0xff] }
 0x432   :  { %v10569_v1 = vcombine.high %v1096_v13, %v1100_v62  ;;  %v10568_v7 = vcombine.low %v1096_v13, %v1100_v62  ;;  %v1149_v53 = vld [vmem:[#allocation5 + $0x1fb8] sm:$0xff]  ;;  %v1152_v62 = vld [vmem:[#allocation5 + $0x1fd0] sm:$0xff] }
 0x433   :  { %7255 = vmatmul.mubr.bf16.vlgmr.msra.gmra.mrb[4].mxu0 %v11745_v17  ;;  %7583 = vmatmul.mubr.bf16.vlgmr.msra.gmra.mrb[4].mxu1 %v11745_v17  ;;  %v10522_v17 = vcombine.low %v1049_v24, %v1053_v8  ;;  %v10570_v24 = vcombine.low %v1097_v27, %v1101_v63  ;;  %v10619_v13 = vcombine.high %v1145_v40, %v1149_v53 }
 0x434   :  { %7264 = vmatpush1.bf16.msra.mxu0 %v10504_v3  ;;  %7592 = vmatpush1.bf16.msra.mxu1 %v10506_v4  ;;  %v10571_v3 = vcombine.high %v1097_v27, %v1101_v63  ;;  %v1104_v4 = vld [vmem:[#allocation5 + $0x1e50] sm:$0xff] }
 0x435   :  { %7265 = vmatprep.subr.bf16.mxu0 %v10513_v5  ;;  %7593 = vmatprep.subr.bf16.mxu1 %v10515_v45  ;;  %v1108_v5 = vld [vmem:[#allocation5 + $0x1e70] sm:$0xff]  ;;  %v1105_v45 = vld [vmem:[#allocation5 + $0x1e58] sm:$0xff] }
 0x436   :  { %7295 = vmatprep.mubr.bf16.mxu0 %v11747_v30  ;;  %7623 = vmatprep.mubr.bf16.mxu1 %v11747_v30  ;;  %v10539_v30 = vcombine.high %v1065_v26, %v1069_v31  ;;  %v10577_v8 = vcombine.high %v1104_v4, %v1108_v5  ;;  %v10576_v57 = vcombine.low %v1104_v4, %v1108_v5  ;;  %v1156_v27 = vld [vmem:[#allocation5 + $0x1ff0] sm:$0xff] }
 0x437   :  { %v10578_v16 = vcombine.low %v1105_v45, %v1109_v6  ;;  %v10625_v4 = vcombine.high %v1152_v62, %v1156_v27 }
 0x438   :  { %7266 = vmatpush1.bf16.msra.mxu0 %v10512_v9  ;;  %7594 = vmatpush1.bf16.msra.mxu1 %v10514_v10  ;;  %v10579_v9 = vcombine.high %v1105_v45, %v1109_v6  ;;  %v1112_v10 = vld [vmem:[#allocation5 + $0x1e90] sm:$0xff]  ;;  %v10624_v6 = vcombine.low %v1152_v62, %v1156_v27  ;;  %v11111_v62 = vld [vmem:[#allocation8 + $0x164] ss:$16 sps:$4 sm:$0xff]  }
 0x439   :  { %7267 = vmatprep.subr.bf16.mxu0 %v10521_v11  ;;  %7595 = vmatprep.subr.bf16.mxu1 %v10523_v12  ;;  %v1116_v11 = vld [vmem:[#allocation5 + $0x1eb0] sm:$0xff]  ;;  %v1113_v12 = vld [vmem:[#allocation5 + $0x1e98] sm:$0xff] }
 0x43a   :  { %v10585_v18 = vcombine.high %v1112_v10, %v1116_v11  ;;  %v10584_v55 = vcombine.low %v1112_v10, %v1116_v11  ;;  %v10586_v26 = vcombine.low %v1113_v12, %v1117_v14  ;;  %v11043_v10 = vld [vmem:[#allocation8] ss:$16 sps:$4 sm:$0xff]   ;;  %v11046_v11 = vld [vmem:[#allocation8 + $0x8] ss:$16 sps:$4 sm:$0xff]   ;;  %v11114_v27 = vld [vmem:[#allocation8 + $0x16c] ss:$16 sps:$4 sm:$0xff]  }
 0x43c   :  { %7268 = vmatpush1.bf16.msra.mxu0 %v10520_v20  ;;  %7596 = vmatpush1.bf16.msra.mxu1 %v10522_v17  ;;  %v10587_v20 = vcombine.high %v1113_v12, %v1117_v14  ;;  %v1120_v17 = vld [vmem:[#allocation5 + $0x1ed0] sm:$0xff]  ;;  %v11051_v12 = vld [vmem:[#allocation8 + $0x24] ss:$16 sps:$4 sm:$0xff]  }
 0x43d   :  { %7269 = vmatprep.subr.bf16.mxu0 %v10529_v21  ;;  %7597 = vmatprep.subr.bf16.mxu1 %v10531_v22  ;;  %v1124_v21 = vld [vmem:[#allocation5 + $0x1ef0] sm:$0xff]  ;;  %v1121_v22 = vld [vmem:[#allocation5 + $0x1ed8] sm:$0xff] }
 0x43e   :  { %v10593_v31 = vcombine.high %v1120_v17, %v1124_v21  ;;  %v10592_v37 = vcombine.low %v1120_v17, %v1124_v21  ;;  %v10594_v38 = vcombine.low %v1121_v22, %v1125_v28  ;;  %v11055_v17 = vld [vmem:[#allocation8 + $0x40] ss:$16 sps:$4 sm:$0xff]   ;;  %v11058_v21 = vld [vmem:[#allocation8 + $0x48] ss:$16 sps:$4 sm:$0xff]  }
 0x440   :  { %7270 = vmatpush1.bf16.msra.mxu0 %v10528_v32  ;;  %7598 = vmatpush1.bf16.msra.mxu1 %v10530_v33  ;;  %v10595_v32 = vcombine.high %v1121_v22, %v1125_v28  ;;  %v1128_v33 = vld [vmem:[#allocation5 + $0x1f10] sm:$0xff]  ;;  %v11063_v22 = vld [vmem:[#allocation8 + $0x64] ss:$16 sps:$4 sm:$0xff]  }
 0x441   :  { %7271 = vmatprep.subr.bf16.mxu0 %v10537_v34  ;;  %7599 = vmatprep.subr.bf16.mxu1 %v10539_v30  ;;  %v1132_v34 = vld [vmem:[#allocation5 + $0x1f30] sm:$0xff]  ;;  %v1160_v30 = vlaneseq }
 0x442   :  { %v10600_v46 = vcombine.low %v1128_v33, %v1132_v34  ;;  %v11066_v28 = vld [vmem:[#allocation8 + $0x6c] ss:$16 sps:$4 sm:$0xff]  }
 0x443   :  { %v11795_v42 = vshrl.u32 %v1160_v30, 7  ;;  %v11078_v30 = vld [vmem:[#allocation8 + $0xac] ss:$16 sps:$4 sm:$0xff]  }
 0x444   :  { %7272 = vmatpush1.bf16.msra.mxu0 %v10536_v2  ;;  %7600 = vmatpush1.bf16.msra.mxu1 %v10538_v35  ;;  %v10601_v2 = vcombine.high %v1128_v33, %v1132_v34  ;;  %v10603_v35 = vcombine.high %v1129_v58, %v1133_v36  ;;  %v11070_v33 = vld [vmem:[#allocation8 + $0x88] ss:$16 sps:$4 sm:$0xff]   ;;  %v11075_v34 = vld [vmem:[#allocation8 + $0xa4] ss:$16 sps:$4 sm:$0xff]  }
 0x445   :  { %7273 = vmatprep.subr.bf16.mxu0 %v10545_v39  ;;  %7601 = vmatprep.subr.bf16.mxu1 %v10547_v41  ;;  %v1136_v39 = vld [vmem:[#allocation5 + $0x1f50] sm:$0xff]  ;;  %v1166_v52 = vsub.s32 1, %v11795_v42 }
 0x446   :  { %v1140_v41 = vld [vmem:[#allocation5 + $0x1f70] sm:$0xff] }
 0x448   :  { %7274 = vmatpush1.bf16.msra.mxu0 %v10544_v47  ;;  %7602 = vmatpush1.bf16.msra.mxu1 %v10546_v48  ;;  %v10602_v47 = vcombine.low %v1129_v58, %v1133_v36  ;;  %v10609_v48 = vcombine.high %v1136_v39, %v1140_v41  ;;  %v11073_v58 = vld [vmem:[#allocation8 + $0xa0] ss:$16 sps:$4 sm:$0xff]   ;;  %v11076_v36 = vld [vmem:[#allocation8 + $0xa8] ss:$16 sps:$4 sm:$0xff]  }
 0x449   :  { %7275 = vmatprep.subr.bf16.mxu0 %v10553_v50  ;;  %7603 = vmatprep.subr.bf16.mxu1 %v10555_v51  ;;  %v10611_v50 = vcombine.high %v1137_v43, %v1141_v44  ;;  %v1144_v51 = vld [vmem:[#allocation5 + $0x1f90] sm:$0xff] }
 0x44c   :  { %7276 = vmatpush1.bf16.msra.mxu0 %v10552_v54  ;;  %7604 = vmatpush1.bf16.msra.mxu1 %v10554_v56  ;;  %v11798_v54 = vld [vmem:[#allocation7] sm:$0xff]  ;;  %v10608_v56 = vcombine.low %v1136_v39, %v1140_v41  ;;  %v11087_v39 = vld [vmem:[#allocation8 + $0xe4] ss:$16 sps:$4 sm:$0xff]  }
 0x44d   :  { %7277 = vmatprep.subr.bf16.mxu0 %v10561_v59  ;;  %7605 = vmatprep.subr.bf16.mxu1 %v10563_v60  ;;  %v10610_v59 = vcombine.low %v1137_v43, %v1141_v44  ;;  %v10617_v60 = vcombine.high %v1144_v51, %v1148_v15  ;;  %v1167_v63 = vrot.slane %v11798_v54, %v1166_v52  ;;  %v11090_v41 = vld [vmem:[#allocation8 + $0xec] ss:$16 sps:$4 sm:$0xff]   ;;  %v11085_v43 = vld [vmem:[#allocation8 + $0xe0] ss:$16 sps:$4 sm:$0xff]   ;;  %v11088_v44 = vld [vmem:[#allocation8 + $0xe8] ss:$16 sps:$4 sm:$0xff]  }
 0x44f   :  { %v10886_v45 = vadd.f32 %v11775_v25, %v1167_v63  ;;  %v11054_v25 = vld [vmem:[#allocation8 + $0x2c] ss:$16 sps:$4 sm:$0xff]   ;;  %v11109_v63 = vld [vmem:[#allocation8 + $0x160] ss:$16 sps:$4 sm:$0xff]  }
 0x450   :  { %7278 = vmatpush1.bf16.msra.mxu0 %v10560_v0  ;;  %7606 = vmatpush1.bf16.msra.mxu1 %v10562_v49  ;;  %v1153_v0 = vld [vmem:[#allocation5 + $0x1fd8] sm:$0xff] }
 0x451   :  { %7279 = vmatprep.subr.bf16.mxu0 %v10569_v1  ;;  %7607 = vmatprep.subr.bf16.mxu1 %v10571_v3  ;;  %v1157_v49 = vld [vmem:[#allocation5 + $0x1ff8] sm:$0xff]  ;;  %v10616_v1 = vcombine.low %v1144_v51, %v1148_v15  ;;  %v10618_v3 = vcombine.low %v1145_v40, %v1149_v53  ;;  %v11102_v15 = vld [vmem:[#allocation8 + $0x12c] ss:$16 sps:$4 sm:$0xff]   ;;  %v11100_v53 = vld [vmem:[#allocation8 + $0x128] ss:$16 sps:$4 sm:$0xff]  }
 0x452   :  { %v10627_v5 = vcombine.high %v1153_v0, %v1157_v49  ;;  %v11099_v51 = vld [vmem:[#allocation8 + $0x124] ss:$16 sps:$4 sm:$0xff]   ;;  %v11097_v40 = vld [vmem:[#allocation8 + $0x120] ss:$16 sps:$4 sm:$0xff]  }
 0x454   :  { %7280 = vmatpush1.bf16.msra.mxu0 %v10568_v7  ;;  %7608 = vmatpush1.bf16.msra.mxu1 %v10570_v24  ;;  %v10626_v7 = vcombine.low %v1153_v0, %v1157_v49  ;;  %v11045_v24 = vld [vmem:[#allocation8 + $0x4] ss:$16 sps:$4 sm:$0xff]   ;;  %v11112_v0 = vld [vmem:[#allocation8 + $0x168] ss:$16 sps:$4 sm:$0xff]  }
 0x455   :  { %7281 = vmatprep.subr.bf16.mxu0 %v10577_v8  ;;  %7609 = vmatprep.subr.bf16.mxu1 %v10579_v9  ;;  %v11048_v8 = vld [vmem:[#allocation8 + $0xc] ss:$16 sps:$4 sm:$0xff]   ;;  %v7633_v9 = vmax.f32 %v10886_v45, 0.0  ;;  %v11117_v49 = vld [vmem:[#allocation8 + $0x184] ss:$16 sps:$4 sm:$0xff]  }
 0x456   :  { %v11123_v45 = vld [vmem:[#allocation8 + $0x1a4] ss:$16 sps:$4 sm:$0xff]  }
 0x457   :  { %v7641_v14 = vpack.c.bf16 %v7633_v9, %v7633_v9  ;;  %v11124_v9 = vld [vmem:[#allocation8 + $0x1a8] ss:$16 sps:$4 sm:$0xff]  }
 0x458   :  { %7282 = vmatpush1.bf16.msra.mxu0 %v10576_v57  ;;  %7610 = vmatpush1.bf16.msra.mxu1 %v10578_v16  ;;  %v11049_v57 = vld [vmem:[#allocation8 + $0x20] ss:$16 sps:$4 sm:$0xff]   ;;  %v11052_v16 = vld [vmem:[#allocation8 + $0x28] ss:$16 sps:$4 sm:$0xff]  }
 0x459   :  { %7283 = vmatprep.subr.bf16.mxu0 %v10585_v18  ;;  %7611 = vmatprep.subr.bf16.mxu1 %v10587_v20  ;;  %v11057_v18 = vld [vmem:[#allocation8 + $0x44] ss:$16 sps:$4 sm:$0xff]   ;;  %v11060_v20 = vld [vmem:[#allocation8 + $0x4c] ss:$16 sps:$4 sm:$0xff]  }
 0x45c   :  { %7284 = vmatpush1.bf16.msra.mxu0 %v10584_v55  ;;  %7612 = vmatpush1.bf16.msra.mxu1 %v10586_v26  ;;  %v11064_v55 = vld [vmem:[#allocation8 + $0x68] ss:$16 sps:$4 sm:$0xff]   ;;  %v11069_v26 = vld [vmem:[#allocation8 + $0x84] ss:$16 sps:$4 sm:$0xff]  }
 0x45d   :  { %7285 = vmatprep.subr.bf16.mxu0 %v10593_v31  ;;  %7613 = vmatprep.subr.bf16.mxu1 %v10595_v32  ;;  %v11072_v31 = vld [vmem:[#allocation8 + $0x8c] ss:$16 sps:$4 sm:$0xff]   ;;  %v11067_v32 = vld [vmem:[#allocation8 + $0x80] ss:$16 sps:$4 sm:$0xff]  }
 0x460   :  { %7286 = vmatpush1.bf16.msra.mxu0 %v10592_v37  ;;  %7614 = vmatpush1.bf16.msra.mxu1 %v10594_v38  ;;  %v11081_v37 = vld [vmem:[#allocation8 + $0xc4] ss:$16 sps:$4 sm:$0xff]   ;;  %v11084_v38 = vld [vmem:[#allocation8 + $0xcc] ss:$16 sps:$4 sm:$0xff]  }
 0x461   :  { %7287 = vmatprep.subr.bf16.mxu0 %v10601_v2  ;;  %7615 = vmatprep.subr.bf16.mxu1 %v10603_v35  ;;  %v11079_v2 = vld [vmem:[#allocation8 + $0xc0] ss:$16 sps:$4 sm:$0xff]   ;;  %v11082_v35 = vld [vmem:[#allocation8 + $0xc8] ss:$16 sps:$4 sm:$0xff]  }
 0x464   :  { %7288 = vmatpush1.bf16.msra.mxu0 %v10600_v46  ;;  %7616 = vmatpush1.bf16.msra.mxu1 %v10602_v47  ;;  %v11093_v46 = vld [vmem:[#allocation8 + $0x104] ss:$16 sps:$4 sm:$0xff]   ;;  %v11096_v47 = vld [vmem:[#allocation8 + $0x10c] ss:$16 sps:$4 sm:$0xff]  }
 0x465   :  { %7289 = vmatprep.subr.bf16.mxu0 %v10609_v48  ;;  %7617 = vmatprep.subr.bf16.mxu1 %v10611_v50  ;;  %v11091_v48 = vld [vmem:[#allocation8 + $0x100] ss:$16 sps:$4 sm:$0xff]   ;;  %v11094_v50 = vld [vmem:[#allocation8 + $0x108] ss:$16 sps:$4 sm:$0xff]  }
 0x468   :  { %7290 = vmatpush1.bf16.msra.mxu0 %v10608_v56  ;;  %7618 = vmatpush1.bf16.msra.mxu1 %v10610_v59  ;;  %v11105_v56 = vld [vmem:[#allocation8 + $0x144] ss:$16 sps:$4 sm:$0xff]   ;;  %v11108_v59 = vld [vmem:[#allocation8 + $0x14c] ss:$16 sps:$4 sm:$0xff]  }
 0x469   :  { %7291 = vmatprep.subr.bf16.mxu0 %v10617_v60  ;;  %7619 = vmatprep.subr.bf16.mxu1 %v10619_v13  ;;  %v11103_v60 = vld [vmem:[#allocation8 + $0x140] ss:$16 sps:$4 sm:$0xff]   ;;  %v11106_v13 = vld [vmem:[#allocation8 + $0x148] ss:$16 sps:$4 sm:$0xff]  }
 0x46c   :  { %7292 = vmatpush1.bf16.msra.mxu0 %v10616_v1  ;;  %7620 = vmatpush1.bf16.msra.mxu1 %v10618_v3  ;;  %v11120_v1 = vld [vmem:[#allocation8 + $0x18c] ss:$16 sps:$4 sm:$0xff]   ;;  %v11115_v3 = vld [vmem:[#allocation8 + $0x180] ss:$16 sps:$4 sm:$0xff]  }
 0x46d   :  { %7293 = vmatprep.subr.bf16.mxu0 %v10625_v4  ;;  %7621 = vmatprep.subr.bf16.mxu1 %v10627_v5  ;;  %v11807_v4 = vsub.s32 0, %v11795_v42  ;;  %v11118_v5 = vld [vmem:[#allocation8 + $0x188] ss:$16 sps:$4 sm:$0xff]  }
 0x470   :  { %7294 = vmatpush1.bf16.msra.mxu0 %v10624_v6  ;;  %7622 = vmatpush1.bf16.msra.mxu1 %v10626_v7  ;;  %v11126_v6 = vld [vmem:[#allocation8 + $0x1ac] ss:$16 sps:$4 sm:$0xff]   ;;  %v1174_v7 = vsub.s32 3, %v11795_v42 }
 0x471   :  { %9206 = vmatprep.subr.bf16.mxu0 %v11045_v24  ;;  %9370 = vmatprep.subr.bf16.mxu1 %v11048_v8  ;;  %v11121_v24 = vld [vmem:[#allocation8 + $0x1a0] ss:$16 sps:$4 sm:$0xff]   ;;  %v1163_v8 = vrot.slane %v11798_v54, %v11807_v4 }
 0x473   :  { %7296 = vmatmul.mubr.bf16.vlgmr.msra.gmra.mrb[4].mxu0 %v11753_v61  ;;  %7624 = vmatmul.mubr.bf16.vlgmr.msra.gmra.mrb[4].mxu1 %v11753_v61  ;;  %v11061_v61 = vld [vmem:[#allocation8 + $0x60] ss:$16 sps:$4 sm:$0xff]  }
 0x474   :  { %9207 = vmatpush1.bf16.msra.mxu0 %v11043_v10  ;;  %9238 = vmatprep.mubr.bf16.mxu0 %v7641_v14  ;;  %v11129_v10 = vld [vmem:[#allocation8 + $0x1c4] ss:$16 sps:$4 sm:$0xff]  }
 0x475   :  { %9371 = vmatpush1.bf16.msra.mxu1 %v11046_v11  ;;  %9402 = vmatprep.mubr.bf16.mxu1 %v7641_v14  ;;  %v11132_v11 = vld [vmem:[#allocation8 + $0x1cc] ss:$16 sps:$4 sm:$0xff]   ;;  %v11127_v14 = vld [vmem:[#allocation8 + $0x1c0] ss:$16 sps:$4 sm:$0xff]  }
 0x476   :  { %9208 = vmatprep.subr.bf16.mxu0 %v11051_v12  ;;  %9372 = vmatprep.subr.bf16.mxu1 %v11054_v25  ;;  %v1175_v12 = vrot.slane %v11798_v54, %v1174_v7  ;;  %v10885_v25 = vadd.f32 %v11771_v19, %v1163_v8  ;;  %v11139_v19 = vld [vmem:[#allocation8 + $0x200] ss:$16 sps:$4 sm:$0xff]   ;;  %v11204_v8 = vld [vmem:[#allocation8 + $0x34c] ss:$16 sps:$4 sm:$0xff]  }
 0x478   :  { %9209 = vmatpush1.bf16.msra.mxu0 %v11049_v57  ;;  %v11130_v57 = vld [vmem:[#allocation8 + $0x1c8] ss:$16 sps:$4 sm:$0xff]  }
 0x479   :  { %9373 = vmatpush1.bf16.msra.mxu1 %v11052_v16  ;;  %9210 = vmatprep.subr.bf16.mxu0 %v11057_v18  ;;  %v11135_v16 = vld [vmem:[#allocation8 + $0x1e4] ss:$16 sps:$4 sm:$0xff]   ;;  %v11138_v18 = vld [vmem:[#allocation8 + $0x1ec] ss:$16 sps:$4 sm:$0xff]  }
 0x47a   :  { %9374 = vmatprep.subr.bf16.mxu1 %v11060_v20  ;;  %v10888_v20 = vadd.f32 %v11777_v29, %v1175_v12  ;;  %v11150_v29 = vld [vmem:[#allocation8 + $0x22c] ss:$16 sps:$4 sm:$0xff]  }
 0x47b   :  { %v11210_v12 = vld [vmem:[#allocation8 + $0x36c] ss:$16 sps:$4 sm:$0xff]  }
 0x47c   :  { %9211 = vmatpush1.bf16.msra.mxu0 %v11055_v17  ;;  %v11133_v17 = vld [vmem:[#allocation8 + $0x1e0] ss:$16 sps:$4 sm:$0xff]  }
 0x47d   :  { %9375 = vmatpush1.bf16.msra.mxu1 %v11058_v21  ;;  %9212 = vmatprep.subr.bf16.mxu0 %v11063_v22  ;;  %v7632_v21 = vmax.f32 %v10885_v25, 0.0  ;;  %v11136_v22 = vld [vmem:[#allocation8 + $0x1e8] ss:$16 sps:$4 sm:$0xff]  }
 0x47e   :  { %9376 = vmatprep.subr.bf16.mxu1 %v11066_v28  ;;  %v11141_v28 = vld [vmem:[#allocation8 + $0x204] ss:$16 sps:$4 sm:$0xff]   ;;  %v11208_v25 = vld [vmem:[#allocation8 + $0x368] ss:$16 sps:$4 sm:$0xff]  }
 0x480   :  { %9213 = vmatpush1.bf16.msra.mxu0 %v11061_v61  ;;  %v11144_v61 = vld [vmem:[#allocation8 + $0x20c] ss:$16 sps:$4 sm:$0xff]  }
 0x481   :  { %9377 = vmatpush1.bf16.msra.mxu1 %v11064_v55  ;;  %9214 = vmatprep.subr.bf16.mxu0 %v11069_v26  ;;  %v7635_v55 = vmax.f32 %v10888_v20, 0.0  ;;  %v7640_v26 = vpack.c.bf16 %v7632_v21, %v7632_v21  ;;  %v11818_v20 = vsub.s32 2, %v11795_v42  ;;  %v11219_v21 = vld [vmem:[#allocation8 + $0x3a4] ss:$16 sps:$4 sm:$0xff]  }
 0x482   :  { %9378 = vmatprep.subr.bf16.mxu1 %v11072_v31  ;;  %v11142_v31 = vld [vmem:[#allocation8 + $0x208] ss:$16 sps:$4 sm:$0xff]  }
 0x484   :  { %9215 = vmatpush1.bf16.msra.mxu0 %v11067_v32  ;;  %v11147_v32 = vld [vmem:[#allocation8 + $0x224] ss:$16 sps:$4 sm:$0xff]  }
 0x485   :  { %9379 = vmatpush1.bf16.msra.mxu1 %v11070_v33  ;;  %9216 = vmatprep.subr.bf16.mxu0 %v11075_v34  ;;  %v7643_v33 = vpack.c.bf16 %v7635_v55, %v7635_v55  ;;  %v11145_v34 = vld [vmem:[#allocation8 + $0x220] ss:$16 sps:$4 sm:$0xff]   ;;  %v11220_v55 = vld [vmem:[#allocation8 + $0x3a8] ss:$16 sps:$4 sm:$0xff]  }
 0x486   :  { %9380 = vmatprep.subr.bf16.mxu1 %v11078_v30  ;;  %v11148_v30 = vld [vmem:[#allocation8 + $0x228] ss:$16 sps:$4 sm:$0xff]  }
 0x488   :  { %9217 = vmatpush1.bf16.msra.mxu0 %v11073_v58  ;;  %v11153_v58 = vld [vmem:[#allocation8 + $0x244] ss:$16 sps:$4 sm:$0xff]  }
 0x489   :  { %9381 = vmatpush1.bf16.msra.mxu1 %v11076_v36  ;;  %9218 = vmatprep.subr.bf16.mxu0 %v11081_v37  ;;  %v11156_v36 = vld [vmem:[#allocation8 + $0x24c] ss:$16 sps:$4 sm:$0xff]   ;;  %v11151_v37 = vld [vmem:[#allocation8 + $0x240] ss:$16 sps:$4 sm:$0xff]  }
 0x48a   :  { %9382 = vmatprep.subr.bf16.mxu1 %v11084_v38  ;;  %v11154_v38 = vld [vmem:[#allocation8 + $0x248] ss:$16 sps:$4 sm:$0xff]  }
 0x48c   :  { %9219 = vmatpush1.bf16.msra.mxu0 %v11079_v2  ;;  %v11159_v2 = vld [vmem:[#allocation8 + $0x264] ss:$16 sps:$4 sm:$0xff]  }
 0x48d   :  { %9383 = vmatpush1.bf16.msra.mxu1 %v11082_v35  ;;  %9220 = vmatprep.subr.bf16.mxu0 %v11087_v39  ;;  %v11162_v35 = vld [vmem:[#allocation8 + $0x26c] ss:$16 sps:$4 sm:$0xff]   ;;  %v11157_v39 = vld [vmem:[#allocation8 + $0x260] ss:$16 sps:$4 sm:$0xff]  }
 0x48e   :  { %9384 = vmatprep.subr.bf16.mxu1 %v11090_v41  ;;  %v11160_v41 = vld [vmem:[#allocation8 + $0x268] ss:$16 sps:$4 sm:$0xff]  }
 0x490   :  { %9221 = vmatpush1.bf16.msra.mxu0 %v11085_v43  ;;  %v11165_v43 = vld [vmem:[#allocation8 + $0x284] ss:$16 sps:$4 sm:$0xff]  }
 0x491   :  { %9385 = vmatpush1.bf16.msra.mxu1 %v11088_v44  ;;  %9222 = vmatprep.subr.bf16.mxu0 %v11093_v46  ;;  %v11168_v44 = vld [vmem:[#allocation8 + $0x28c] ss:$16 sps:$4 sm:$0xff]   ;;  %v11163_v46 = vld [vmem:[#allocation8 + $0x280] ss:$16 sps:$4 sm:$0xff]  }
 0x492   :  { %9386 = vmatprep.subr.bf16.mxu1 %v11096_v47  ;;  %v11166_v47 = vld [vmem:[#allocation8 + $0x288] ss:$16 sps:$4 sm:$0xff]  }
 0x494   :  { %9223 = vmatpush1.bf16.msra.mxu0 %v11091_v48  ;;  %v11171_v48 = vld [vmem:[#allocation8 + $0x2a4] ss:$16 sps:$4 sm:$0xff]  }
 0x495   :  { %9387 = vmatpush1.bf16.msra.mxu1 %v11094_v50  ;;  %9224 = vmatprep.subr.bf16.mxu0 %v11099_v51  ;;  %v11174_v50 = vld [vmem:[#allocation8 + $0x2ac] ss:$16 sps:$4 sm:$0xff]   ;;  %v11169_v51 = vld [vmem:[#allocation8 + $0x2a0] ss:$16 sps:$4 sm:$0xff]  }
 0x496   :  { %9388 = vmatprep.subr.bf16.mxu1 %v11102_v15  ;;  %v11172_v15 = vld [vmem:[#allocation8 + $0x2a8] ss:$16 sps:$4 sm:$0xff]  }
 0x498   :  { %9225 = vmatpush1.bf16.msra.mxu0 %v11097_v40  ;;  %v11177_v40 = vld [vmem:[#allocation8 + $0x2c4] ss:$16 sps:$4 sm:$0xff]  }
 0x499   :  { %9389 = vmatpush1.bf16.msra.mxu1 %v11100_v53  ;;  %9226 = vmatprep.subr.bf16.mxu0 %v11105_v56  ;;  %v11180_v53 = vld [vmem:[#allocation8 + $0x2cc] ss:$16 sps:$4 sm:$0xff]   ;;  %v11175_v56 = vld [vmem:[#allocation8 + $0x2c0] ss:$16 sps:$4 sm:$0xff]  }
 0x49a   :  { %9390 = vmatprep.subr.bf16.mxu1 %v11108_v59  ;;  %v11178_v59 = vld [vmem:[#allocation8 + $0x2c8] ss:$16 sps:$4 sm:$0xff]  }
 0x49c   :  { %9227 = vmatpush1.bf16.msra.mxu0 %v11103_v60  ;;  %v11183_v60 = vld [vmem:[#allocation8 + $0x2e4] ss:$16 sps:$4 sm:$0xff]  }
 0x49d   :  { %9391 = vmatpush1.bf16.msra.mxu1 %v11106_v13  ;;  %9228 = vmatprep.subr.bf16.mxu0 %v11111_v62  ;;  %v11186_v13 = vld [vmem:[#allocation8 + $0x2ec] ss:$16 sps:$4 sm:$0xff]   ;;  %v11181_v62 = vld [vmem:[#allocation8 + $0x2e0] ss:$16 sps:$4 sm:$0xff]  }
 0x49e   :  { %9392 = vmatprep.subr.bf16.mxu1 %v11114_v27  ;;  %v11184_v27 = vld [vmem:[#allocation8 + $0x2e8] ss:$16 sps:$4 sm:$0xff]  }
 0x4a0   :  { %9229 = vmatpush1.bf16.msra.mxu0 %v11109_v63  ;;  %v11189_v63 = vld [vmem:[#allocation8 + $0x304] ss:$16 sps:$4 sm:$0xff]  }
 0x4a1   :  { %9393 = vmatpush1.bf16.msra.mxu1 %v11112_v0  ;;  %9230 = vmatprep.subr.bf16.mxu0 %v11117_v49  ;;  %v11192_v0 = vld [vmem:[#allocation8 + $0x30c] ss:$16 sps:$4 sm:$0xff]   ;;  %v11187_v49 = vld [vmem:[#allocation8 + $0x300] ss:$16 sps:$4 sm:$0xff]  }
 0x4a2   :  { %9394 = vmatprep.subr.bf16.mxu1 %v11120_v1  ;;  %v11190_v1 = vld [vmem:[#allocation8 + $0x308] ss:$16 sps:$4 sm:$0xff]  }
 0x4a4   :  { %9231 = vmatpush1.bf16.msra.mxu0 %v11115_v3  ;;  %v11195_v3 = vld [vmem:[#allocation8 + $0x324] ss:$16 sps:$4 sm:$0xff]  }
 0x4a5   :  { %9395 = vmatpush1.bf16.msra.mxu1 %v11118_v5  ;;  %9232 = vmatprep.subr.bf16.mxu0 %v11123_v45  ;;  %v11198_v5 = vld [vmem:[#allocation8 + $0x32c] ss:$16 sps:$4 sm:$0xff]   ;;  %v11193_v45 = vld [vmem:[#allocation8 + $0x320] ss:$16 sps:$4 sm:$0xff]  }
 0x4a6   :  { %9396 = vmatprep.subr.bf16.mxu1 %v11126_v6  ;;  %v11196_v6 = vld [vmem:[#allocation8 + $0x328] ss:$16 sps:$4 sm:$0xff]  }
 0x4a8   :  { %9233 = vmatpush1.bf16.msra.mxu0 %v11121_v24  ;;  %v11201_v24 = vld [vmem:[#allocation8 + $0x344] ss:$16 sps:$4 sm:$0xff]  }
 0x4a9   :  { %9397 = vmatpush1.bf16.msra.mxu1 %v11124_v9  ;;  %9234 = vmatprep.subr.bf16.mxu0 %v11129_v10  ;;  %v11199_v9 = vld [vmem:[#allocation8 + $0x340] ss:$16 sps:$4 sm:$0xff]   ;;  %v11202_v10 = vld [vmem:[#allocation8 + $0x348] ss:$16 sps:$4 sm:$0xff]  }
 0x4aa   :  { %9398 = vmatprep.subr.bf16.mxu1 %v11132_v11  ;;  %v11207_v11 = vld [vmem:[#allocation8 + $0x364] ss:$16 sps:$4 sm:$0xff]  }
 0x4ac   :  { %9235 = vmatpush1.bf16.msra.mxu0 %v11127_v14  ;;  %v11205_v14 = vld [vmem:[#allocation8 + $0x360] ss:$16 sps:$4 sm:$0xff]  }
 0x4ad   :  { %9399 = vmatpush1.bf16.msra.mxu1 %v11130_v57  ;;  %9236 = vmatprep.subr.bf16.mxu0 %v11135_v16  ;;  %v11213_v57 = vld [vmem:[#allocation8 + $0x384] ss:$16 sps:$4 sm:$0xff]   ;;  %v11216_v16 = vld [vmem:[#allocation8 + $0x38c] ss:$16 sps:$4 sm:$0xff]  }
 0x4ae   :  { %9400 = vmatprep.subr.bf16.mxu1 %v11138_v18  ;;  %v11211_v18 = vld [vmem:[#allocation8 + $0x380] ss:$16 sps:$4 sm:$0xff]  }
 0x4b0   :  { %9237 = vmatpush1.bf16.msra.mxu0 %v11133_v17  ;;  %v11214_v17 = vld [vmem:[#allocation8 + $0x388] ss:$16 sps:$4 sm:$0xff]  }
 0x4b1   :  { %9401 = vmatpush1.bf16.msra.mxu1 %v11136_v22  ;;  %9247 = vmatprep.subr.bf16.mxu0 %v11141_v28  ;;  %v11222_v22 = vld [vmem:[#allocation8 + $0x3ac] ss:$16 sps:$4 sm:$0xff]   ;;  %v11217_v28 = vld [vmem:[#allocation8 + $0x3a0] ss:$16 sps:$4 sm:$0xff]  }
 0x4b2   :  { %9411 = vmatprep.subr.bf16.mxu1 %v11144_v61  ;;  %v1171_v61 = vrot.slane %v11798_v54, %v11818_v20 }
 0x4b3   :  { %9239 = vmatmul.mubr.bf16.vlgmr.msra.gmra.mrb[8].mxu0 %v7640_v26 }
 0x4b4   :  { %9403 = vmatmul.mubr.bf16.vlgmr.msra.gmra.mrb[8].mxu1 %v7640_v26  ;;  %9248 = vmatpush1.bf16.msra.mxu0 %v11139_v19  ;;  %v11225_v19 = vld [vmem:[#allocation8 + $0x3c4] ss:$16 sps:$4 sm:$0xff]   ;;  %v11228_v26 = vld [vmem:[#allocation8 + $0x3cc] ss:$16 sps:$4 sm:$0xff]  }
 0x4b5   :  { %9279 = vmatprep.mubr.bf16.mxu0 %v7643_v33  ;;  %9412 = vmatpush1.bf16.msra.mxu1 %v11142_v31  ;;  %v11223_v31 = vld [vmem:[#allocation8 + $0x3c0] ss:$16 sps:$4 sm:$0xff]  }
 0x4b6   :  { %9443 = vmatprep.mubr.bf16.mxu1 %v7643_v33  ;;  %9249 = vmatprep.subr.bf16.mxu0 %v11147_v32  ;;  %v10887_v32 = vadd.f32 %v11773_v23, %v1171_v61  ;;  %v11226_v33 = vld [vmem:[#allocation8 + $0x3c8] ss:$16 sps:$4 sm:$0xff]   ;;  %v11306_v61 = vld [vmem:[#allocation8 + $0x56c] ss:$16 sps:$4 sm:$0xff]  }
 0x4b7   :  { %9413 = vmatprep.subr.bf16.mxu1 %v11150_v29  ;;  %v11231_v29 = vld [vmem:[#allocation8 + $0x3e4] ss:$16 sps:$4 sm:$0xff]   ;;  %v11238_v23 = vld [vmem:[#allocation8 + $0x408] ss:$16 sps:$4 sm:$0xff]  }
 0x4b8   :  { %9250 = vmatpush1.bf16.msra.mxu0 %v11145_v34  ;;  %v11234_v34 = vld [vmem:[#allocation8 + $0x3ec] ss:$16 sps:$4 sm:$0xff]  }
 0x4b9   :  { %9414 = vmatpush1.bf16.msra.mxu1 %v11148_v30  ;;  %9251 = vmatprep.subr.bf16.mxu0 %v11153_v58  ;;  %v11229_v30 = vld [vmem:[#allocation8 + $0x3e0] ss:$16 sps:$4 sm:$0xff]   ;;  %v7634_v58 = vmax.f32 %v10887_v32, 0.0 }
 0x4ba   :  { %9415 = vmatprep.subr.bf16.mxu1 %v11156_v36  ;;  %v11232_v36 = vld [vmem:[#allocation8 + $0x3e8] ss:$16 sps:$4 sm:$0xff]   ;;  %v11307_v32 = vld [vmem:[#allocation8 + $0x580] ss:$16 sps:$4 sm:$0xff]  }
 0x4bc   :  { %9252 = vmatpush1.bf16.msra.mxu0 %v11151_v37  ;;  %v11237_v37 = vld [vmem:[#allocation8 + $0x404] ss:$16 sps:$4 sm:$0xff]  }
 0x4bd   :  { %9416 = vmatpush1.bf16.msra.mxu1 %v11154_v38  ;;  %9253 = vmatprep.subr.bf16.mxu0 %v11159_v2  ;;  %v11240_v38 = vld [vmem:[#allocation8 + $0x40c] ss:$16 sps:$4 sm:$0xff]   ;;  %v11235_v2 = vld [vmem:[#allocation8 + $0x400] ss:$16 sps:$4 sm:$0xff]  }
 0x4be   :  { %9417 = vmatprep.subr.bf16.mxu1 %v11162_v35  ;;  %v7642_v35 = vpack.c.bf16 %v7634_v58, %v7634_v58  ;;  %v11316_v58 = vld [vmem:[#allocation8 + $0x5a8] ss:$16 sps:$4 sm:$0xff]  }
 0x4c0   :  { %9254 = vmatpush1.bf16.msra.mxu0 %v11157_v39  ;;  %v11243_v39 = vld [vmem:[#allocation8 + $0x424] ss:$16 sps:$4 sm:$0xff]  }
 0x4c1   :  { %9418 = vmatpush1.bf16.msra.mxu1 %v11160_v41  ;;  %9255 = vmatprep.subr.bf16.mxu0 %v11165_v43  ;;  %v11246_v41 = vld [vmem:[#allocation8 + $0x42c] ss:$16 sps:$4 sm:$0xff]   ;;  %v11241_v43 = vld [vmem:[#allocation8 + $0x420] ss:$16 sps:$4 sm:$0xff]  }
 0x4c2   :  { %9419 = vmatprep.subr.bf16.mxu1 %v11168_v44  ;;  %v11244_v44 = vld [vmem:[#allocation8 + $0x428] ss:$16 sps:$4 sm:$0xff]  }
 0x4c4   :  { %9256 = vmatpush1.bf16.msra.mxu0 %v11163_v46  ;;  %v11249_v46 = vld [vmem:[#allocation8 + $0x444] ss:$16 sps:$4 sm:$0xff]  }
 0x4c5   :  { %9420 = vmatpush1.bf16.msra.mxu1 %v11166_v47  ;;  %9257 = vmatprep.subr.bf16.mxu0 %v11171_v48  ;;  %v11252_v47 = vld [vmem:[#allocation8 + $0x44c] ss:$16 sps:$4 sm:$0xff]   ;;  %v11247_v48 = vld [vmem:[#allocation8 + $0x440] ss:$16 sps:$4 sm:$0xff]  }
 0x4c6   :  { %9421 = vmatprep.subr.bf16.mxu1 %v11174_v50  ;;  %v11250_v50 = vld [vmem:[#allocation8 + $0x448] ss:$16 sps:$4 sm:$0xff]  }
 0x4c8   :  { %9258 = vmatpush1.bf16.msra.mxu0 %v11169_v51  ;;  %v11255_v51 = vld [vmem:[#allocation8 + $0x464] ss:$16 sps:$4 sm:$0xff]  }
 0x4c9   :  { %9422 = vmatpush1.bf16.msra.mxu1 %v11172_v15  ;;  %9259 = vmatprep.subr.bf16.mxu0 %v11177_v40  ;;  %v11258_v15 = vld [vmem:[#allocation8 + $0x46c] ss:$16 sps:$4 sm:$0xff]   ;;  %v11253_v40 = vld [vmem:[#allocation8 + $0x460] ss:$16 sps:$4 sm:$0xff]  }
 0x4ca   :  { %9423 = vmatprep.subr.bf16.mxu1 %v11180_v53  ;;  %v11256_v53 = vld [vmem:[#allocation8 + $0x468] ss:$16 sps:$4 sm:$0xff]  }
 0x4cc   :  { %9260 = vmatpush1.bf16.msra.mxu0 %v11175_v56  ;;  %v11261_v56 = vld [vmem:[#allocation8 + $0x484] ss:$16 sps:$4 sm:$0xff]  }
 0x4cd   :  { %9424 = vmatpush1.bf16.msra.mxu1 %v11178_v59  ;;  %9261 = vmatprep.subr.bf16.mxu0 %v11183_v60  ;;  %v11264_v59 = vld [vmem:[#allocation8 + $0x48c] ss:$16 sps:$4 sm:$0xff]   ;;  %v11259_v60 = vld [vmem:[#allocation8 + $0x480] ss:$16 sps:$4 sm:$0xff]  }
 0x4ce   :  { %9425 = vmatprep.subr.bf16.mxu1 %v11186_v13  ;;  %v11262_v13 = vld [vmem:[#allocation8 + $0x488] ss:$16 sps:$4 sm:$0xff]  }
 0x4d0   :  { %9262 = vmatpush1.bf16.msra.mxu0 %v11181_v62  ;;  %v11267_v62 = vld [vmem:[#allocation8 + $0x4a4] ss:$16 sps:$4 sm:$0xff]  }
 0x4d1   :  { %9426 = vmatpush1.bf16.msra.mxu1 %v11184_v27  ;;  %9263 = vmatprep.subr.bf16.mxu0 %v11189_v63  ;;  %v11270_v27 = vld [vmem:[#allocation8 + $0x4ac] ss:$16 sps:$4 sm:$0xff]   ;;  %v11265_v63 = vld [vmem:[#allocation8 + $0x4a0] ss:$16 sps:$4 sm:$0xff]  }
 0x4d2   :  { %9427 = vmatprep.subr.bf16.mxu1 %v11192_v0  ;;  %v11268_v0 = vld [vmem:[#allocation8 + $0x4a8] ss:$16 sps:$4 sm:$0xff]  }
 0x4d4   :  { %9264 = vmatpush1.bf16.msra.mxu0 %v11187_v49  ;;  %v11273_v49 = vld [vmem:[#allocation8 + $0x4c4] ss:$16 sps:$4 sm:$0xff]  }
 0x4d5   :  { %9428 = vmatpush1.bf16.msra.mxu1 %v11190_v1  ;;  %9265 = vmatprep.subr.bf16.mxu0 %v11195_v3  ;;  %v11276_v1 = vld [vmem:[#allocation8 + $0x4cc] ss:$16 sps:$4 sm:$0xff]   ;;  %v11271_v3 = vld [vmem:[#allocation8 + $0x4c0] ss:$16 sps:$4 sm:$0xff]  }
 0x4d6   :  { %9429 = vmatprep.subr.bf16.mxu1 %v11198_v5  ;;  %v11274_v5 = vld [vmem:[#allocation8 + $0x4c8] ss:$16 sps:$4 sm:$0xff]  }
 0x4d8   :  { %9266 = vmatpush1.bf16.msra.mxu0 %v11193_v45  ;;  %v11279_v45 = vld [vmem:[#allocation8 + $0x4e4] ss:$16 sps:$4 sm:$0xff]  }
 0x4d9   :  { %9430 = vmatpush1.bf16.msra.mxu1 %v11196_v6  ;;  %9267 = vmatprep.subr.bf16.mxu0 %v11201_v24  ;;  %v11282_v6 = vld [vmem:[#allocation8 + $0x4ec] ss:$16 sps:$4 sm:$0xff]   ;;  %v11277_v24 = vld [vmem:[#allocation8 + $0x4e0] ss:$16 sps:$4 sm:$0xff]  }
 0x4da   :  { %9431 = vmatprep.subr.bf16.mxu1 %v11204_v8  ;;  %v11280_v8 = vld [vmem:[#allocation8 + $0x4e8] ss:$16 sps:$4 sm:$0xff]  }
 0x4dc   :  { %9268 = vmatpush1.bf16.msra.mxu0 %v11199_v9  ;;  %v11285_v9 = vld [vmem:[#allocation8 + $0x504] ss:$16 sps:$4 sm:$0xff]  }
 0x4dd   :  { %9432 = vmatpush1.bf16.msra.mxu1 %v11202_v10  ;;  %9269 = vmatprep.subr.bf16.mxu0 %v11207_v11  ;;  %v11288_v10 = vld [vmem:[#allocation8 + $0x50c] ss:$16 sps:$4 sm:$0xff]   ;;  %v11283_v11 = vld [vmem:[#allocation8 + $0x500] ss:$16 sps:$4 sm:$0xff]  }
 0x4de   :  { %9433 = vmatprep.subr.bf16.mxu1 %v11210_v12  ;;  %v11286_v12 = vld [vmem:[#allocation8 + $0x508] ss:$16 sps:$4 sm:$0xff]  }
 0x4e0   :  { %9270 = vmatpush1.bf16.msra.mxu0 %v11205_v14  ;;  %v11291_v14 = vld [vmem:[#allocation8 + $0x524] ss:$16 sps:$4 sm:$0xff]  }
 0x4e1   :  { %9434 = vmatpush1.bf16.msra.mxu1 %v11208_v25  ;;  %9271 = vmatprep.subr.bf16.mxu0 %v11213_v57  ;;  %v11294_v25 = vld [vmem:[#allocation8 + $0x52c] ss:$16 sps:$4 sm:$0xff]   ;;  %v11289_v57 = vld [vmem:[#allocation8 + $0x520] ss:$16 sps:$4 sm:$0xff]  }
 0x4e2   :  { %9435 = vmatprep.subr.bf16.mxu1 %v11216_v16  ;;  %v11292_v16 = vld [vmem:[#allocation8 + $0x528] ss:$16 sps:$4 sm:$0xff]  }
 0x4e4   :  { %9272 = vmatpush1.bf16.msra.mxu0 %v11211_v18  ;;  %v11297_v18 = vld [vmem:[#allocation8 + $0x544] ss:$16 sps:$4 sm:$0xff]  }
 0x4e5   :  { %9436 = vmatpush1.bf16.msra.mxu1 %v11214_v17  ;;  %9273 = vmatprep.subr.bf16.mxu0 %v11219_v21  ;;  %v11300_v17 = vld [vmem:[#allocation8 + $0x54c] ss:$16 sps:$4 sm:$0xff]   ;;  %v11295_v21 = vld [vmem:[#allocation8 + $0x540] ss:$16 sps:$4 sm:$0xff]  }
 0x4e6   :  { %9437 = vmatprep.subr.bf16.mxu1 %v11222_v22  ;;  %v11298_v22 = vld [vmem:[#allocation8 + $0x548] ss:$16 sps:$4 sm:$0xff]  }
 0x4e8   :  { %9274 = vmatpush1.bf16.msra.mxu0 %v11217_v28  ;;  %v11303_v28 = vld [vmem:[#allocation8 + $0x564] ss:$16 sps:$4 sm:$0xff]  }
 0x4e9   :  { %9438 = vmatpush1.bf16.msra.mxu1 %v11220_v55  ;;  %9275 = vmatprep.subr.bf16.mxu0 %v11225_v19  ;;  %v11301_v55 = vld [vmem:[#allocation8 + $0x560] ss:$16 sps:$4 sm:$0xff]   ;;  %v11304_v19 = vld [vmem:[#allocation8 + $0x568] ss:$16 sps:$4 sm:$0xff]  }
 0x4ea   :  { %9439 = vmatprep.subr.bf16.mxu1 %v11228_v26  ;;  %v11309_v26 = vld [vmem:[#allocation8 + $0x584] ss:$16 sps:$4 sm:$0xff]  }
 0x4ec   :  { %9276 = vmatpush1.bf16.msra.mxu0 %v11223_v31  ;;  %v11312_v31 = vld [vmem:[#allocation8 + $0x58c] ss:$16 sps:$4 sm:$0xff]  }
 0x4ed   :  { %9440 = vmatpush1.bf16.msra.mxu1 %v11226_v33  ;;  %9277 = vmatprep.subr.bf16.mxu0 %v11231_v29  ;;  %v11310_v33 = vld [vmem:[#allocation8 + $0x588] ss:$16 sps:$4 sm:$0xff]   ;;  %v11315_v29 = vld [vmem:[#allocation8 + $0x5a4] ss:$16 sps:$4 sm:$0xff]  }
 0x4ee   :  { %9441 = vmatprep.subr.bf16.mxu1 %v11234_v34  ;;  %v11318_v34 = vld [vmem:[#allocation8 + $0x5ac] ss:$16 sps:$4 sm:$0xff]  }
 0x4f0   :  { %9278 = vmatpush1.bf16.msra.mxu0 %v11229_v30  ;;  %v11313_v30 = vld [vmem:[#allocation8 + $0x5a0] ss:$16 sps:$4 sm:$0xff]  }
 0x4f1   :  { %9442 = vmatpush1.bf16.msra.mxu1 %v11232_v36  ;;  %9288 = vmatprep.subr.bf16.mxu0 %v11237_v37  ;;  %v11321_v36 = vld [vmem:[#allocation8 + $0x5c4] ss:$16 sps:$4 sm:$0xff]   ;;  %v11324_v37 = vld [vmem:[#allocation8 + $0x5cc] ss:$16 sps:$4 sm:$0xff]  }
 0x4f2   :  { %9452 = vmatprep.subr.bf16.mxu1 %v11240_v38  ;;  %v11319_v38 = vld [vmem:[#allocation8 + $0x5c0] ss:$16 sps:$4 sm:$0xff]  }
 0x4f3   :  { %9280 = vmatmul.mubr.bf16.vlgmr.msra.gmra.mrb[8].mxu0 %v7642_v35 }
 0x4f4   :  { %9444 = vmatmul.mubr.bf16.vlgmr.msra.gmra.mrb[8].mxu1 %v7642_v35  ;;  %9289 = vmatpush1.bf16.msra.mxu0 %v11235_v2  ;;  %v11322_v2 = vld [vmem:[#allocation8 + $0x5c8] ss:$16 sps:$4 sm:$0xff]   ;;  %v11327_v35 = vld [vmem:[#allocation8 + $0x5e4] ss:$16 sps:$4 sm:$0xff]  }
 0x4f5   :  { %9453 = vmatpush1.bf16.msra.mxu1 %v11238_v23  ;;  %9290 = vmatprep.subr.bf16.mxu0 %v11243_v39  ;;  %v11330_v23 = vld [vmem:[#allocation8 + $0x5ec] ss:$16 sps:$4 sm:$0xff]   ;;  %v11325_v39 = vld [vmem:[#allocation8 + $0x5e0] ss:$16 sps:$4 sm:$0xff]  }
 0x4f6   :  { %9454 = vmatprep.subr.bf16.mxu1 %v11246_v41  ;;  %v11328_v41 = vld [vmem:[#allocation8 + $0x5e8] ss:$16 sps:$4 sm:$0xff]  }
 0x4f8   :  { %9291 = vmatpush1.bf16.msra.mxu0 %v11241_v43  ;;  %v11333_v43 = vld [vmem:[#allocation8 + $0x604] ss:$16 sps:$4 sm:$0xff]  }
 0x4f9   :  { %9455 = vmatpush1.bf16.msra.mxu1 %v11244_v44  ;;  %9292 = vmatprep.subr.bf16.mxu0 %v11249_v46  ;;  %v11336_v44 = vld [vmem:[#allocation8 + $0x60c] ss:$16 sps:$4 sm:$0xff]   ;;  %v1178_v46 = vsub.s32 4, %v11795_v42 }
 0x4fa   :  { %9456 = vmatprep.subr.bf16.mxu1 %v11252_v47  ;;  %v1182_v47 = vsub.s32 5, %v11795_v42 }
 0x4fc   :  { %9293 = vmatpush1.bf16.msra.mxu0 %v11247_v48  ;;  %v1190_v48 = vsub.s32 7, %v11795_v42 }
 0x4fd   :  { %9457 = vmatpush1.bf16.msra.mxu1 %v11250_v50  ;;  %9294 = vmatprep.subr.bf16.mxu0 %v11255_v51  ;;  %v1179_v50 = vrot.slane %v11798_v54, %v1178_v46  ;;  %v1183_v51 = vrot.slane %v11798_v54, %v1182_v47  ;;  %v11385_v47 = vld [vmem:[#allocation8 + $0x720] ss:$16 sps:$4 sm:$0xff]  }
 0x4fe   :  { %9458 = vmatprep.subr.bf16.mxu1 %v11258_v15  ;;  %v1191_v15 = vrot.slane %v11798_v54, %v1190_v48  ;;  %v11339_v54 = vld [vmem:[#allocation8 + $0x624] ss:$16 sps:$4 sm:$0xff]   ;;  %v11388_v48 = vld [vmem:[#allocation8 + $0x728] ss:$16 sps:$4 sm:$0xff]  }
 0x500   :  { %9295 = vmatpush1.bf16.msra.mxu0 %v11253_v40 }
 0x501   :  { %9459 = vmatpush1.bf16.msra.mxu1 %v11256_v53  ;;  %9296 = vmatprep.subr.bf16.mxu0 %v11261_v56 }
 0x502   :  { %9460 = vmatprep.subr.bf16.mxu1 %v11264_v59 }
 0x504   :  { %9297 = vmatpush1.bf16.msra.mxu0 %v11259_v60 }
 0x505   :  { %9461 = vmatpush1.bf16.msra.mxu1 %v11262_v13  ;;  %9298 = vmatprep.subr.bf16.mxu0 %v11267_v62 }
 0x506   :  { %9462 = vmatprep.subr.bf16.mxu1 %v11270_v27 }
 0x508   :  { %9299 = vmatpush1.bf16.msra.mxu0 %v11265_v63 }
 0x509   :  { %9463 = vmatpush1.bf16.msra.mxu1 %v11268_v0  ;;  %9300 = vmatprep.subr.bf16.mxu0 %v11273_v49 }
 0x50a   :  { %9464 = vmatprep.subr.bf16.mxu1 %v11276_v1 }
 0x50c   :  { %9301 = vmatpush1.bf16.msra.mxu0 %v11271_v3 }
 0x50d   :  { %9465 = vmatpush1.bf16.msra.mxu1 %v11274_v5  ;;  %9302 = vmatprep.subr.bf16.mxu0 %v11279_v45 }
 0x50e   :  { %9466 = vmatprep.subr.bf16.mxu1 %v11282_v6  ;;  %v11331_v6 = vld [vmem:[#allocation8 + $0x600] ss:$16 sps:$4 sm:$0xff]  }
 0x510   :  { %9303 = vmatpush1.bf16.msra.mxu0 %v11277_v24  ;;  %v11334_v24 = vld [vmem:[#allocation8 + $0x608] ss:$16 sps:$4 sm:$0xff]  }
 0x511   :  { %9467 = vmatpush1.bf16.msra.mxu1 %v11280_v8  ;;  %9304 = vmatprep.subr.bf16.mxu0 %v11285_v9  ;;  %v11342_v9 = vld [vmem:[#allocation8 + $0x62c] ss:$16 sps:$4 sm:$0xff]  }
 0x512   :  { %9468 = vmatprep.subr.bf16.mxu1 %v11288_v10 }
 0x514   :  { %9305 = vmatpush1.bf16.msra.mxu0 %v11283_v11  ;;  %v11337_v11 = vld [vmem:[#allocation8 + $0x620] ss:$16 sps:$4 sm:$0xff]  }
 0x515   :  { %9469 = vmatpush1.bf16.msra.mxu1 %v11286_v12  ;;  %9306 = vmatprep.subr.bf16.mxu0 %v11291_v14  ;;  %v11340_v12 = vld [vmem:[#allocation8 + $0x628] ss:$16 sps:$4 sm:$0xff]   ;;  %v11345_v14 = vld [vmem:[#allocation8 + $0x644] ss:$16 sps:$4 sm:$0xff]  }
 0x516   :  { %9470 = vmatprep.subr.bf16.mxu1 %v11294_v25  ;;  %v11348_v25 = vld [vmem:[#allocation8 + $0x64c] ss:$16 sps:$4 sm:$0xff]  }
 0x518   :  { %9307 = vmatpush1.bf16.msra.mxu0 %v11289_v57  ;;  %v11343_v57 = vld [vmem:[#allocation8 + $0x640] ss:$16 sps:$4 sm:$0xff]  }
 0x519   :  { %9471 = vmatpush1.bf16.msra.mxu1 %v11292_v16  ;;  %9308 = vmatprep.subr.bf16.mxu0 %v11297_v18  ;;  %v11346_v16 = vld [vmem:[#allocation8 + $0x648] ss:$16 sps:$4 sm:$0xff]   ;;  %v11351_v18 = vld [vmem:[#allocation8 + $0x664] ss:$16 sps:$4 sm:$0xff]  }
 0x51a   :  { %9472 = vmatprep.subr.bf16.mxu1 %v11300_v17  ;;  %v11354_v17 = vld [vmem:[#allocation8 + $0x66c] ss:$16 sps:$4 sm:$0xff]  }
 0x51c   :  { %9309 = vmatpush1.bf16.msra.mxu0 %v11295_v21  ;;  %v11349_v21 = vld [vmem:[#allocation8 + $0x660] ss:$16 sps:$4 sm:$0xff]  }
 0x51d   :  { %9473 = vmatpush1.bf16.msra.mxu1 %v11298_v22  ;;  %9310 = vmatprep.subr.bf16.mxu0 %v11303_v28  ;;  %v11352_v22 = vld [vmem:[#allocation8 + $0x668] ss:$16 sps:$4 sm:$0xff]   ;;  %v11357_v28 = vld [vmem:[#allocation8 + $0x684] ss:$16 sps:$4 sm:$0xff]  }
 0x51e   :  { %9474 = vmatprep.subr.bf16.mxu1 %v11306_v61  ;;  %v11360_v61 = vld [vmem:[#allocation8 + $0x68c] ss:$16 sps:$4 sm:$0xff]  }
 0x520   :  { %9311 = vmatpush1.bf16.msra.mxu0 %v11301_v55  ;;  %v11355_v55 = vld [vmem:[#allocation8 + $0x680] ss:$16 sps:$4 sm:$0xff]  }
 0x521   :  { %9475 = vmatpush1.bf16.msra.mxu1 %v11304_v19  ;;  %9312 = vmatprep.subr.bf16.mxu0 %v11309_v26  ;;  %v11358_v19 = vld [vmem:[#allocation8 + $0x688] ss:$16 sps:$4 sm:$0xff]   ;;  %v11363_v26 = vld [vmem:[#allocation8 + $0x6a4] ss:$16 sps:$4 sm:$0xff]  }
 0x522   :  { %9476 = vmatprep.subr.bf16.mxu1 %v11312_v31  ;;  %v11366_v31 = vld [vmem:[#allocation8 + $0x6ac] ss:$16 sps:$4 sm:$0xff]  }
 0x524   :  { %9313 = vmatpush1.bf16.msra.mxu0 %v11307_v32  ;;  %v11361_v32 = vld [vmem:[#allocation8 + $0x6a0] ss:$16 sps:$4 sm:$0xff]  }
 0x525   :  { %9477 = vmatpush1.bf16.msra.mxu1 %v11310_v33  ;;  %9314 = vmatprep.subr.bf16.mxu0 %v11315_v29  ;;  %v11364_v33 = vld [vmem:[#allocation8 + $0x6a8] ss:$16 sps:$4 sm:$0xff]   ;;  %v11369_v29 = vld [vmem:[#allocation8 + $0x6c4] ss:$16 sps:$4 sm:$0xff]  }
 0x526   :  { %9478 = vmatprep.subr.bf16.mxu1 %v11318_v34  ;;  %v11372_v34 = vld [vmem:[#allocation8 + $0x6cc] ss:$16 sps:$4 sm:$0xff]  }
 0x528   :  { %9315 = vmatpush1.bf16.msra.mxu0 %v11313_v30  ;;  %v11367_v30 = vld [vmem:[#allocation8 + $0x6c0] ss:$16 sps:$4 sm:$0xff]  }
 0x529   :  { %9479 = vmatpush1.bf16.msra.mxu1 %v11316_v58  ;;  %9316 = vmatprep.subr.bf16.mxu0 %v11321_v36  ;;  %v11370_v58 = vld [vmem:[#allocation8 + $0x6c8] ss:$16 sps:$4 sm:$0xff]   ;;  %v11375_v36 = vld [vmem:[#allocation8 + $0x6e4] ss:$16 sps:$4 sm:$0xff]  }
 0x52a   :  { %9480 = vmatprep.subr.bf16.mxu1 %v11324_v37  ;;  %v11378_v37 = vld [vmem:[#allocation8 + $0x6ec] ss:$16 sps:$4 sm:$0xff]  }
 0x52c   :  { %9317 = vmatpush1.bf16.msra.mxu0 %v11319_v38  ;;  %v11373_v38 = vld [vmem:[#allocation8 + $0x6e0] ss:$16 sps:$4 sm:$0xff]  }
 0x52d   :  { %9481 = vmatpush1.bf16.msra.mxu1 %v11322_v2  ;;  %9318 = vmatprep.subr.bf16.mxu0 %v11327_v35  ;;  %v11376_v2 = vld [vmem:[#allocation8 + $0x6e8] ss:$16 sps:$4 sm:$0xff]   ;;  %v11381_v35 = vld [vmem:[#allocation8 + $0x704] ss:$16 sps:$4 sm:$0xff]  }
 0x52e   :  { %9482 = vmatprep.subr.bf16.mxu1 %v11330_v23  ;;  %v11384_v23 = vld [vmem:[#allocation8 + $0x70c] ss:$16 sps:$4 sm:$0xff]  }
 0x530   :  { %9319 = vmatpush1.bf16.msra.mxu0 %v11325_v39  ;;  %v11379_v39 = vld [vmem:[#allocation8 + $0x700] ss:$16 sps:$4 sm:$0xff]  }
 0x531   :  { %9483 = vmatpush1.bf16.msra.mxu1 %v11328_v41  ;;  %9329 = vmatprep.subr.bf16.mxu0 %v11333_v43  ;;  %v11382_v41 = vld [vmem:[#allocation8 + $0x708] ss:$16 sps:$4 sm:$0xff]   ;;  %v11387_v43 = vld [vmem:[#allocation8 + $0x724] ss:$16 sps:$4 sm:$0xff]  }
 0x532   :  { %9493 = vmatprep.subr.bf16.mxu1 %v11336_v44  ;;  %v11390_v44 = vld [vmem:[#allocation8 + $0x72c] ss:$16 sps:$4 sm:$0xff]  }
 0x546   :  { %v7297_v40 = vpop.f32.mrb[4].mxu0  ;;  %v11831_v56 = vpop.f32.mrb[4].mxu1 }
 0x547   :  { %v10889_v53 = vadd.f32 %v7297_v40, %v1179_v50  ;;  %v7299_v59 = vpop.f32.mrb[5].mxu0  ;;  %v7627_v13 = vpop.f32.mrb[5].mxu1  ;;  %v11393_v50 = vld [vmem:[#allocation8 + $0x744] ss:$16 sps:$4 sm:$0xff]   ;;  %v11394_v40 = vld [vmem:[#allocation8 + $0x748] ss:$16 sps:$4 sm:$0xff]  }
 0x548   :  { %v10890_v60 = vadd.f32 %v7299_v59, %v1183_v51  ;;  %v7301_v62 = vpop.f32.mrb[6].mxu0  ;;  %v10892_v63 = vadd.f32 %v7627_v13, %v1191_v15  ;;  %v7629_v0 = vpop.f32.mrb[6].mxu1  ;;  %v11396_v51 = vld [vmem:[#allocation8 + $0x74c] ss:$16 sps:$4 sm:$0xff]   ;;  %v11391_v15 = vld [vmem:[#allocation8 + $0x740] ss:$16 sps:$4 sm:$0xff]  }
 0x549   :  { %v7636_v27 = vmax.f32 %v10889_v53, 0.0  ;;  %v7302_v49 = vpop.f32.mrb[7].mxu0  ;;  %v7630_v3 = vpop.f32.mrb[7].mxu1  ;;  %v11399_v53 = vld [vmem:[#allocation8 + $0x764] ss:$16 sps:$4 sm:$0xff]  }
 0x54a   :  { %v7637_v1 = vmax.f32 %v10890_v60, 0.0  ;;  %v7639_v5 = vmax.f32 %v10892_v63, 0.0  ;;  %v11402_v59 = vld [vmem:[#allocation8 + $0x76c] ss:$16 sps:$4 sm:$0xff]   ;;  %v11397_v60 = vld [vmem:[#allocation8 + $0x760] ss:$16 sps:$4 sm:$0xff]  }
 0x54b   :  { %v7644_v8 = vpack.c.bf16 %v7636_v27, %v7636_v27  ;;  %v11400_v13 = vld [vmem:[#allocation8 + $0x768] ss:$16 sps:$4 sm:$0xff]   ;;  %v11405_v62 = vld [vmem:[#allocation8 + $0x784] ss:$16 sps:$4 sm:$0xff]   ;;  %v11408_v27 = vld [vmem:[#allocation8 + $0x78c] ss:$16 sps:$4 sm:$0xff]  }
 0x54c   :  { %v7645_v45 = vpack.c.bf16 %v7637_v1, %v7637_v1  ;;  %v7647_v10 = vpack.c.bf16 %v7639_v5, %v7639_v5  ;;  %v11403_v63 = vld [vmem:[#allocation8 + $0x780] ss:$16 sps:$4 sm:$0xff]   ;;  %v11406_v0 = vld [vmem:[#allocation8 + $0x788] ss:$16 sps:$4 sm:$0xff]   ;;  %v1186_v49 = vsub.s32 6, %v11795_v42 }
 0x54d   :  { %v11411_v1 = vld [vmem:[#allocation8 + $0x7a4] ss:$16 sps:$4 sm:$0xff]   ;;  %v11414_v3 = vld [vmem:[#allocation8 + $0x7ac] ss:$16 sps:$4 sm:$0xff]   ;;  %v11409_v5 = vld [vmem:[#allocation8 + $0x7a0] ss:$16 sps:$4 sm:$0xff]  }
 0x54e   :  { %9320 = vmatprep.mubr.bf16.mxu0 %v7645_v45  ;;  %9484 = vmatprep.mubr.bf16.mxu1 %v7645_v45  ;;  %v11412_v45 = vld [vmem:[#allocation8 + $0x7a8] ss:$16 sps:$4 sm:$0xff]  }
 0x54f   :  { %9321 = vmatmul.mubr.bf16.vlgmr.msra.gmra.mrb[8].mxu0 %v7644_v8  ;;  %9485 = vmatmul.mubr.bf16.vlgmr.msra.gmra.mrb[8].mxu1 %v7644_v8  ;;  %v11417_v8 = vld [vmem:[#allocation8 + $0x7c4] ss:$16 sps:$4 sm:$0xff]  }
 0x550   :  { %9330 = vmatpush1.bf16.msra.mxu0 %v11331_v6  ;;  %9494 = vmatpush1.bf16.msra.mxu1 %v11334_v24  ;;  %v11427_v6 = vld [vmem:[#allocation7] sm:$0xff] }
 0x551   :  { %9361 = vmatprep.mubr.bf16.mxu0 %v7647_v10  ;;  %9525 = vmatprep.mubr.bf16.mxu1 %v7647_v10  ;;  %v1187_v24 = vrot.slane %v11427_v6, %v1186_v49  ;;  %v11418_v10 = vld [vmem:[#allocation8 + $0x7c8] ss:$16 sps:$4 sm:$0xff]  }
 0x552   :  { %9331 = vmatprep.subr.bf16.mxu0 %v11339_v54  ;;  %9495 = vmatprep.subr.bf16.mxu1 %v11342_v9  ;;  %v11420_v54 = vld [vmem:[#allocation8 + $0x7cc] ss:$16 sps:$4 sm:$0xff]   ;;  %v11415_v9 = vld [vmem:[#allocation8 + $0x7c0] ss:$16 sps:$4 sm:$0xff]  }
 0x554   :  { %9332 = vmatpush1.bf16.msra.mxu0 %v11337_v11  ;;  %9496 = vmatpush1.bf16.msra.mxu1 %v11340_v12  ;;  %v10891_v11 = vadd.f32 %v11831_v56, %v1187_v24  ;;  %v11423_v12 = vld [vmem:[#allocation8 + $0x7e4] ss:$16 sps:$4 sm:$0xff]  }
 0x555   :  { %9333 = vmatprep.subr.bf16.mxu0 %v11345_v14  ;;  %9497 = vmatprep.subr.bf16.mxu1 %v11348_v25  ;;  %v11426_v14 = vld [vmem:[#allocation8 + $0x7ec] ss:$16 sps:$4 sm:$0xff]   ;;  %v11421_v25 = vld [vmem:[#allocation8 + $0x7e0] ss:$16 sps:$4 sm:$0xff]  }
 0x558   :  { %9334 = vmatpush1.bf16.msra.mxu0 %v11343_v57  ;;  %9498 = vmatpush1.bf16.msra.mxu1 %v11346_v16  ;;  %v11424_v57 = vld [vmem:[#allocation8 + $0x7e8] ss:$16 sps:$4 sm:$0xff]   ;;  %v7638_v16 = vmax.f32 %v10891_v11, 0.0 }
 0x559   :  { %9335 = vmatprep.subr.bf16.mxu0 %v11351_v18  ;;  %9499 = vmatprep.subr.bf16.mxu1 %v11354_v17  ;;  %v9538_v17 = vld [vmem:[#allocation11] sm:$0xf] }
 0x55a   :  { %v7646_v18 = vpack.c.bf16 %v7638_v16, %v7638_v16 }
 0x55c   :  { %9336 = vmatpush1.bf16.msra.mxu0 %v11349_v21  ;;  %9500 = vmatpush1.bf16.msra.mxu1 %v11352_v22  ;;  %v9539_v21 = vunpack.c.l.bf16 %v9538_v17  ;;  %v7904_v22 = vld [vmem:[#allocation10] sm:$0xf] }
 0x55d   :  { %9337 = vmatprep.subr.bf16.mxu0 %v11357_v28  ;;  %9501 = vmatprep.subr.bf16.mxu1 %v11360_v61  ;;  %v7909_v28 = vrot.slane %v7904_v22, %v11807_v4 }
 0x55e   :  { %v9552_v56 = vrot.slane %v9539_v21, %v1178_v46  ;;  %v9544_v61 = vrot.slane %v9539_v21, %v11807_v4 }
 0x560   :  { %9338 = vmatpush1.bf16.msra.mxu0 %v11355_v55  ;;  %9502 = vmatpush1.bf16.msra.mxu1 %v11358_v19  ;;  %v7917_v55 = vrot.slane %v7904_v22, %v11818_v20  ;;  %v7913_v19 = vrot.slane %v7904_v22, %v1166_v52 }
 0x561   :  { %9339 = vmatprep.subr.bf16.mxu0 %v11363_v26  ;;  %9503 = vmatprep.subr.bf16.mxu1 %v11366_v31  ;;  %v9548_v26 = vrot.slane %v9539_v21, %v11818_v20  ;;  %v7921_v31 = vrot.slane %v7904_v22, %v1174_v7  ;;  %v9556_v20 = vrot.slane %v9539_v21, %v1186_v49 }
 0x564   :  { %9340 = vmatpush1.bf16.msra.mxu0 %v11361_v32  ;;  %9504 = vmatpush1.bf16.msra.mxu1 %v11364_v33 }
 0x565   :  { %9341 = vmatprep.subr.bf16.mxu0 %v11369_v29  ;;  %9505 = vmatprep.subr.bf16.mxu1 %v11372_v34  ;;  %v9564_v34 = vrot.slane %v9544_v61, %v11807_v4 }
 0x568   :  { %9342 = vmatpush1.bf16.msra.mxu0 %v11367_v30  ;;  %9506 = vmatpush1.bf16.msra.mxu1 %v11370_v58  ;;  %v9572_v30 = vrot.slane %v9552_v56, %v11807_v4 }
 0x569   :  { %9343 = vmatprep.subr.bf16.mxu0 %v11375_v36  ;;  %9507 = vmatprep.subr.bf16.mxu1 %v11378_v37 }
 0x56c   :  { %9344 = vmatpush1.bf16.msra.mxu0 %v11373_v38  ;;  %9508 = vmatpush1.bf16.msra.mxu1 %v11376_v2  ;;  %v9568_v38 = vrot.slane %v9548_v26, %v11807_v4 }
 0x56d   :  { %9345 = vmatprep.subr.bf16.mxu0 %v11381_v35  ;;  %9509 = vmatprep.subr.bf16.mxu1 %v11384_v23 }
 0x570   :  { %9346 = vmatpush1.bf16.msra.mxu0 %v11379_v39  ;;  %9510 = vmatpush1.bf16.msra.mxu1 %v11382_v41 }
 0x571   :  { %9347 = vmatprep.subr.bf16.mxu0 %v11387_v43  ;;  %9511 = vmatprep.subr.bf16.mxu1 %v11390_v44 }
 0x574   :  { %9348 = vmatpush1.bf16.msra.mxu0 %v11385_v47  ;;  %9512 = vmatpush1.bf16.msra.mxu1 %v11388_v48 }
 0x575   :  { %9349 = vmatprep.subr.bf16.mxu0 %v11393_v50  ;;  %9513 = vmatprep.subr.bf16.mxu1 %v11396_v51  ;;  %v9576_v50 = vrot.slane %v9556_v20, %v11807_v4 }
 0x578   :  { %9350 = vmatpush1.bf16.msra.mxu0 %v11391_v15  ;;  %9514 = vmatpush1.bf16.msra.mxu1 %v11394_v40 }
 0x579   :  { %9351 = vmatprep.subr.bf16.mxu0 %v11399_v53  ;;  %9515 = vmatprep.subr.bf16.mxu1 %v11402_v59  ;;  %v10884_v59 = vld [vmem:[#allocation2] ss:$0 sm:$0xff] }
 0x57c   :  { %9352 = vmatpush1.bf16.msra.mxu0 %v11397_v60  ;;  %9516 = vmatpush1.bf16.msra.mxu1 %v11400_v13 }
 0x57d   :  { %9353 = vmatprep.subr.bf16.mxu0 %v11405_v62  ;;  %9517 = vmatprep.subr.bf16.mxu1 %v11408_v27 }
 0x580   :  { %9354 = vmatpush1.bf16.msra.mxu0 %v11403_v63  ;;  %9518 = vmatpush1.bf16.msra.mxu1 %v11406_v0 }
 0x581   :  { %9355 = vmatprep.subr.bf16.mxu0 %v11411_v1  ;;  %9519 = vmatprep.subr.bf16.mxu1 %v11414_v3 }
 0x584   :  { %9356 = vmatpush1.bf16.msra.mxu0 %v11409_v5  ;;  %9520 = vmatpush1.bf16.msra.mxu1 %v11412_v45 }
 0x585   :  { %9357 = vmatprep.subr.bf16.mxu0 %v11417_v8  ;;  %9521 = vmatprep.subr.bf16.mxu1 %v11420_v54 }
 0x588   :  { %9358 = vmatpush1.bf16.msra.mxu0 %v11415_v9  ;;  %9522 = vmatpush1.bf16.msra.mxu1 %v11418_v10 }
 0x589   :  { %9359 = vmatprep.subr.bf16.mxu0 %v11423_v12  ;;  %9523 = vmatprep.subr.bf16.mxu1 %v11426_v14 }
 0x58c   :  { %9360 = vmatpush1.bf16.msra.mxu0 %v11421_v25  ;;  %9524 = vmatpush1.bf16.msra.mxu1 %v11424_v57 }
 0x58f   :  { %9362 = vmatmul.mubr.bf16.vlgmr.msra.gmra.mrb[8].mxu0 %v7646_v18  ;;  %9526 = vmatmul.mubr.bf16.vlgmr.msra.gmra.mrb[8].mxu1 %v7646_v18 }
 0x662   :  { %v9363_v32 = vpop.f32.mrb[8].mxu0  ;;  %v9527_v33 = vpop.f32.mrb[8].mxu1 }
 0x663   :  { %v10893_v29 = vadd.f32 %v9363_v32, %v7909_v28  ;;  %v10895_v46 = vadd.f32 %v9527_v33, %v7917_v55  ;;  %v9365_v58 = vpop.f32.mrb[9].mxu0  ;;  %v9529_v36 = vpop.f32.mrb[9].mxu1 }
 0x664   :  { %v10894_v37 = vadd.f32 %v9365_v58, %v7913_v19  ;;  %v10896_v2 = vadd.f32 %v9529_v36, %v7921_v31  ;;  %v9367_v52 = vpop.f32.mrb[10].mxu0  ;;  %v9531_v35 = vpop.f32.mrb[10].mxu1 }
 0x665   :  { %v9534_v23 = vmax.f32 %v10893_v29, 0.0  ;;  %v9536_v42 = vmax.f32 %v10895_v46, 0.0  ;;  %v9368_v7 = vpop.f32.mrb[11].mxu0  ;;  %v9532_v39 = vpop.f32.mrb[11].mxu1 }
 0x666   :  { %v9535_v41 = vmax.f32 %v10894_v37, 0.0  ;;  %v9537_v48 = vmax.f32 %v10896_v2, 0.0 }
 0x667   :  { %v9577_v43 = vmul.f32 %v9564_v34, %v9534_v23  ;;  %v9579_v44 = vmul.f32 %v9572_v30, %v9536_v42 }
 0x668   :  { %v9578_v47 = vmul.f32 %v9568_v38, %v9535_v41  ;;  %v9580_v15 = vmul.f32 %v9576_v50, %v9537_v48 }
 0x66a   :  { %v9581_v51 = vadd.f32 %v9578_v47, %v9577_v43 }
 0x66c   :  { %v9582_v40 = vadd.f32 %v9581_v51, %v9579_v44 }
 0x66e   :  { %v9583_v53 = vadd.f32 %v9582_v40, %v9580_v15 }
 0x670   :  { %9584 = vadd.xlane.f32.xlu0 %v9583_v53 }
 0x6fd   :  { %v9585_v60 = vpop.xlane.xlu0 %9584 }
 0x6fe   :  { %v9593_v13 = vadd.f32 %v10884_v59, %v9585_v60 }
 0x700   :  { %9595 = vst.msk [vmem:[%s11859_s7] sm:$0xff] %vm9594_vm0, %v9593_v13 }
 0x701   :  { %9600 = vsyncpa [#allocation4], 1 }
 0x702   :  { %9601 = vsyncpa [#allocation6], 1 }
 0x703   :  { %9602 = vsyncpa [#allocation9], 1 }
 0x704   :  { %9603 = vsyncpa [#allocation12], 1 }

</bundles_post_ra>
